<compile_context>
chip_gen: v5e
topology: v5e:2x2
jax: 0.10.0
libtpu: 0.0.40
codegen_flags: <defaults>
</compile_context>

<pallas_src>
import functools
from typing import NamedTuple

import jax
import jax.numpy as jnp
from jax.experimental import pallas as pl
from jax.experimental.pallas import tpu as pltpu


def _round_up(x, m):
    return (x + m - 1) // m * m


def _leaky(v):
    return jnp.where(v >= 0, v, 0.2 * v)


def _sigmoid(v):
    return 1.0 / (1.0 + jnp.exp(-v))


# --------------------------------- kernels ----------------------------------


def _fused_kernel(x_ref, w1_ref, b1_ref, w2_ref, b2_ref, w3_ref, b3_ref,
                  w4_ref, b4_ref, o_ref, acc_ref):
    """Whole network with a full-width (1024) N tile.  Grid = (K-blocks,).

    W1 is streamed block-by-block (bf16); the tail weights have constant
    index_maps so they stay VMEM-resident across the whole reduction."""
    k = pl.program_id(0)

    @pl.when(k == 0)
    def _():
        acc_ref[...] = jnp.zeros_like(acc_ref)

    # x arrives f32; cast on the VPU (idle in this DMA-bound kernel).
    acc_ref[...] += jnp.dot(x_ref[...].astype(jnp.bfloat16), w1_ref[...],
                            preferred_element_type=jnp.float32)

    @pl.when(k == pl.num_programs(0) - 1)
    def _():
        h = _leaky(acc_ref[...] + b1_ref[...])
        h = _leaky(jnp.dot(h, w2_ref[...],
                           preferred_element_type=jnp.float32) + b2_ref[...])
        h = _leaky(jnp.dot(h, w3_ref[...],
                           preferred_element_type=jnp.float32) + b3_ref[...])
        logit = jnp.dot(h, w4_ref[...],
                        preferred_element_type=jnp.float32) + b4_ref[...]
        o_ref[...] = _sigmoid(logit).astype(o_ref.dtype)


def _layer1_kernel(x_ref, w1_ref, b1_ref, h_ref):
    """h1 = leaky_relu(x @ w1 + b1).  Grid = (N-blocks, K-blocks).

    Accumulates directly into the f32 output block (resident across K):
    no scratch accumulator, no final vreg->vreg copy."""
    k = pl.program_id(1)

    @pl.when(k == 0)
    def _():
        h_ref[...] = jnp.zeros_like(h_ref)

    h_ref[...] += jnp.dot(x_ref[...].astype(jnp.bfloat16), w1_ref[...],
                          preferred_element_type=jnp.float32)

    @pl.when(k == pl.num_programs(1) - 1)
    def _():
        h_ref[...] = _leaky(h_ref[...] + b1_ref[...])


def _tail_kernel(h_ref, w2_ref, b2_ref, w3_ref, b3_ref, w4_ref, b4_ref, o_ref):
    """Layers 2-4 + sigmoid, fully resident in VMEM (all operands are tiny)."""
    h = _leaky(jnp.dot(h_ref[...], w2_ref[...],
                       preferred_element_type=jnp.float32) + b2_ref[...])
    h = _leaky(jnp.dot(h, w3_ref[...],
                       preferred_element_type=jnp.float32) + b3_ref[...])
    logit = jnp.dot(h, w4_ref[...],
                    preferred_element_type=jnp.float32) + b4_ref[...]
    o_ref[...] = _sigmoid(logit).astype(o_ref.dtype)


# ------------------------------ configuration -------------------------------


class DiscConfig(NamedTuple):
    d_in: int
    k_pad: int
    tk: int
    tn: int
    n_k: int
    n_n: int
    fused: bool
    vmem_limit: int


def _pick_tk(d_in, tk):
    """Largest K tile <= tk that is a multiple of 512 and divides d_in
    (98304 = 3*128*128*2 divides 8192), so the padding path never triggers at
    real sizes; only pad K (once, at prep time) if no such divisor exists."""
    tk = min(tk, _round_up(d_in, 512))
    if d_in % tk == 0:
        return tk, d_in
    t = (tk // 512) * 512
    while t >= 512:
        if d_in % t == 0:
            return t, d_in
        t -= 512
    return tk, _round_up(d_in, tk)


def _dual_core_chip():
    """True if each chip has >1 TensorCore (v7x / v4 / v5p)."""
    try:
        kind = jax.devices()[0].device_kind.lower()
    except Exception:
        return True  # conservative fallback: keep the megacore-friendly split
    single_core = ("lite" in kind) or ("v5e" in kind) or ("v6" in kind)
    return not single_core


def make_config(d_in, *, tk=8192, tn=None, h1=1024):
    if tn is None:
        # Single-core chips: full-width N tile (contiguous W1 rows, fused tail).
        # Dual-core chips: tn=512 so the 'parallel' N axis splits W1 streaming.
        tn = 512 if _dual_core_chip() else h1
    assert h1 % tn == 0, "layer-1 width must be divisible by tn"
    tk_eff, k_pad = _pick_tk(d_in, tk)
    n_k = k_pad // tk_eff
    n_n = h1 // tn
    fused = (n_n == 1)
    # Fused path (v5e/v6e, 128 MiB physical VMEM): up to 2x16 MiB W1 buffers.
    # Split path (v7x, 64 MiB per core): cap well below physical.
    vmem_limit = (64 << 20) if fused else (48 << 20)
    return DiscConfig(d_in, k_pad, tk_eff, tn, n_k, n_n, fused, vmem_limit)


def prepare_params(params, cfg):
    """One-time prep OUTSIDE the per-call path: W1 -> bf16 (+ K padding if the
    rare fallback requires it).  Everything else stays f32."""
    prep = dict(params)
    w1 = params["w1"].astype(jnp.bfloat16)
    if cfg.k_pad != cfg.d_in:
        w1 = jnp.pad(w1, ((0, cfg.k_pad - cfg.d_in), (0, 0)))
    prep["w1"] = w1
    return prep


# --------------------------------- forward ----------------------------------


def stylegan_discriminator(x, prep, *, cfg):
    """x: (B, F, 3, H, W) float32.  prep: prepare_params() output."""
    B = x.shape[0]
    x2d = x.reshape(B, -1)                      # == torch x.view(B, -1)
    assert x2d.shape[1] == cfg.d_in
    if cfg.k_pad != cfg.d_in:
        # Rare fallback only (d_in has no 512-multiple divisor <= tk).
        x2d = jnp.pad(x2d, ((0, 0), (0, cfg.k_pad - cfg.d_in)))

    w1, b1 = prep["w1"], prep["b1"]
    w2, b2 = prep["w2"], prep["b2"]
    w3, b3 = prep["w3"], prep["b3"]
    w4, b4 = prep["w4"], prep["b4"]
    H1, H2, H3 = w1.shape[1], w2.shape[1], w3.shape[1]
    tk, tn = cfg.tk, cfg.tn

    bytes_l1 = int(w1.size) * 2 + int(x2d.size) * 4 + B * H1 * 4
    flops_l1 = 2 * B * cfg.d_in * H1
    flops_tail = 2 * B * (H1 * H2 + H2 * H3 + H3 * 1)

    if cfg.fused:
        cost = pl.CostEstimate(
            flops=flops_l1 + flops_tail,
            transcendentals=B,
            bytes_accessed=bytes_l1 + (H1 * H2 + H2 * H3 + H3) * 4 + B * 4)
        return pl.pallas_call(
            _fused_kernel,
            out_shape=jax.ShapeDtypeStruct((B, 1), jnp.float32),
            grid_spec=pltpu.PrefetchScalarGridSpec(
                num_scalar_prefetch=0,
                grid=(cfg.n_k,),
                in_specs=[
                    pl.BlockSpec((B, tk), lambda k: (0, k)),     # x tile
                    pl.BlockSpec((tk, H1), lambda k: (k, 0)),    # w1 tile (bf16)
                    pl.BlockSpec((1, H1), lambda k: (0, 0)),     # b1 (resident)
                    pl.BlockSpec((H1, H2), lambda k: (0, 0)),    # w2 (resident)
                    pl.BlockSpec((1, H2), lambda k: (0, 0)),
                    pl.BlockSpec((H2, H3), lambda k: (0, 0)),    # w3 (resident)
                    pl.BlockSpec((1, H3), lambda k: (0, 0)),
                    pl.BlockSpec((H3, 1), lambda k: (0, 0)),     # w4 (resident)
                    pl.BlockSpec((1, 1), lambda k: (0, 0)),
                ],
                out_specs=pl.BlockSpec((B, 1), lambda k: (0, 0)),
                scratch_shapes=[pltpu.VMEM((B, H1), jnp.float32)],
            ),
            compiler_params=pltpu.CompilerParams(
                dimension_semantics=("arbitrary",),
                vmem_limit_bytes=cfg.vmem_limit),
            cost_estimate=cost,
        )(x2d, w1, b1, w2, b2, w3, b3, w4, b4)

    # ---- split path (dual-TensorCore chips: megacore-parallel N axis) ------
    h1 = pl.pallas_call(
        _layer1_kernel,
        out_shape=jax.ShapeDtypeStruct((B, H1), jnp.float32),
        grid_spec=pltpu.PrefetchScalarGridSpec(
            num_scalar_prefetch=0,
            grid=(cfg.n_n, cfg.n_k),
            in_specs=[
                pl.BlockSpec((B, tk), lambda j, k: (0, k)),      # x tile
                pl.BlockSpec((tk, tn), lambda j, k: (k, j)),     # w1 tile (bf16)
                pl.BlockSpec((1, tn), lambda j, k: (0, j)),      # b1 slice
            ],
            out_specs=pl.BlockSpec((B, tn), lambda j, k: (0, j)),
        ),
        compiler_params=pltpu.CompilerParams(
            dimension_semantics=("parallel", "arbitrary"),
            vmem_limit_bytes=cfg.vmem_limit),
        cost_estimate=pl.CostEstimate(flops=flops_l1, transcendentals=0,
                                      bytes_accessed=bytes_l1),
    )(x2d, w1, b1)

    return pl.pallas_call(
        _tail_kernel,
        out_shape=jax.ShapeDtypeStruct((B, 1), jnp.float32),
        grid_spec=pltpu.PrefetchScalarGridSpec(
            num_scalar_prefetch=0,
            grid=(1,),
            in_specs=[
                pl.BlockSpec((B, H1), lambda i: (0, 0)),
                pl.BlockSpec((H1, H2), lambda i: (0, 0)),
                pl.BlockSpec((1, H2), lambda i: (0, 0)),
                pl.BlockSpec((H2, H3), lambda i: (0, 0)),
                pl.BlockSpec((1, H3), lambda i: (0, 0)),
                pl.BlockSpec((H3, 1), lambda i: (0, 0)),
                pl.BlockSpec((1, 1), lambda i: (0, 0)),
            ],
            out_specs=pl.BlockSpec((B, 1), lambda i: (0, 0)),
        ),
        compiler_params=pltpu.CompilerParams(
            dimension_semantics=("arbitrary",),
            vmem_limit_bytes=cfg.vmem_limit),
        cost_estimate=pl.CostEstimate(flops=flops_tail, transcendentals=B,
                                      bytes_accessed=(H1 * H2 + H2 * H3 + H3) * 4
                                      + B * (H1 + 1) * 4),
    )(h1, w2, b2, w3, b3, w4, b4)


# --------------------------- init & f32 reference ---------------------------


def init_params(key, d_in):
    """Deterministic PyTorch-style Linear init: U(-1/sqrt(fan_in), +...)."""
    dims = [d_in, 1024, 512, 256, 1]
    params = {}
    for i in range(4):
        key, kw, kb = jax.random.split(key, 3)
        fan_in, fan_out = dims[i], dims[i + 1]
        bound = 1.0 / jnp.sqrt(fan_in)
        params[f"w{i + 1}"] = jax.random.uniform(
            kw, (fan_in, fan_out), jnp.float32, -bound, bound)
        params[f"b{i + 1}"] = jax.random.uniform(
            kb, (1, fan_out), jnp.float32, -bound, bound)
    return params


def reference_forward(x, params):
    h = x.reshape(x.shape[0], -1)
    for i in range(1, 4):
        h = h @ params[f"w{i}"] + params[f"b{i}"]
        h = jnp.where(h >= 0, h, 0.2 * h)
    h = h @ params["w4"] + params["b4"]
    return jax.nn.sigmoid(h)


if __name__ == "__main__":
    # Small test shapes consistent with the module's flatten semantics.
    # (The real module uses H = W = 128; we shrink spatial to 16 for the test.)
    B, F, C, Hh, Ww = 2, 2, 3, 16, 16          # D_IN = 3*16*16*2 = 1536
    d_in = C * Hh * Ww * F

    key = jax.random.PRNGKey(0)
    kx, kp = jax.random.split(key)
    x = jax.random.normal(kx, (B, F, C, Hh, Ww), dtype=jnp.float32)
    params = init_params(kp, d_in)

    cfg = make_config(d_in, tk=8192)
    prep = prepare_params(params, cfg)         # one-time W1 bf16 cast (no pad)

    fwd = jax.jit(functools.partial(stylegan_discriminator, cfg=cfg))
    out = jax.block_until_ready(fwd(x, prep))

    ref = reference_forward(x, params)
    assert out.shape == (B, 1)
    # W1 is bf16 in the kernel (f32 accumulation), so compare against the f32
    # reference with a correspondingly loosened tolerance.
    assert jnp.allclose(out, ref, atol=2e-2, rtol=2e-2), (out, ref)
    print("KERNEL_OK")
</pallas_src>

<mosaic_0001>
module attributes {stable_mosaic.version = 11 : i64} {
  func.func @_tail_kernel(%arg0: i32, %arg1: memref<2x1024xf32, #tpu.memory_space<vmem>>, %arg2: memref<1024x512xf32, #tpu.memory_space<vmem>>, %arg3: memref<1x512xf32, #tpu.memory_space<vmem>>, %arg4: memref<512x256xf32, #tpu.memory_space<vmem>>, %arg5: memref<1x256xf32, #tpu.memory_space<vmem>>, %arg6: memref<256x1xf32, #tpu.memory_space<vmem>>, %arg7: memref<1x1xf32, #tpu.memory_space<vmem>>, %arg8: memref<2x1xf32, #tpu.memory_space<vmem>>) attributes {dimension_semantics = [#tpu.dimension_semantics<arbitrary>], iteration_bounds = array<i64: 1>, scalar_prefetch = 0 : i64, scratch_operands = 0 : i64, tpu.core_type = #tpu.core_type<tc>, window_params = [{pipeline_mode = #tpu.pipeline_mode<synchronous>, transform_indices = @transform_0, window_bounds = array<i64: 2, 1024>}, {pipeline_mode = #tpu.pipeline_mode<synchronous>, transform_indices = @transform_1, window_bounds = array<i64: 1024, 512>}, {pipeline_mode = #tpu.pipeline_mode<synchronous>, transform_indices = @transform_2, window_bounds = array<i64: 1, 512>}, {pipeline_mode = #tpu.pipeline_mode<synchronous>, transform_indices = @transform_3, window_bounds = array<i64: 512, 256>}, {pipeline_mode = #tpu.pipeline_mode<synchronous>, transform_indices = @transform_4, window_bounds = array<i64: 1, 256>}, {pipeline_mode = #tpu.pipeline_mode<synchronous>, transform_indices = @transform_5, window_bounds = array<i64: 256, 1>}, {pipeline_mode = #tpu.pipeline_mode<synchronous>, transform_indices = @transform_6, window_bounds = array<i64: 1, 1>}, {pipeline_mode = #tpu.pipeline_mode<synchronous>, transform_indices = @transform_7, window_bounds = array<i64: 2, 1>}]} {
    %c0 = arith.constant 0 : index
    %c0_0 = arith.constant 0 : index
    %0 = vector.load %arg1[%c0, %c0_0] : memref<2x1024xf32, #tpu.memory_space<vmem>>, vector<2x1024xf32>
    %c0_1 = arith.constant 0 : index
    %c0_2 = arith.constant 0 : index
    %1 = vector.load %arg2[%c0_1, %c0_2] : memref<1024x512xf32, #tpu.memory_space<vmem>>, vector<1024x512xf32>
    %cst = arith.constant dense<0.000000e+00> : vector<2x512xf32>
    %2 = tpu.matmul %0, %1, %cst {dimension_numbers = #tpu.dot_dimension_numbers<[1], [0], [0], [1], [0, 0, 1, 1], [], []>} : vector<2x1024xf32>, vector<1024x512xf32>, vector<2x512xf32> -> vector<2x512xf32>
    %c0_3 = arith.constant 0 : index
    %c0_4 = arith.constant 0 : index
    %3 = vector.load %arg3[%c0_3, %c0_4] : memref<1x512xf32, #tpu.memory_space<vmem>>, vector<1x512xf32>
    %4 = vector.broadcast %3 : vector<1x512xf32> to vector<2x512xf32>
    %5 = arith.addf %2, %4 : vector<2x512xf32>
    %cst_5 = arith.constant 0.000000e+00 : f32
    %6 = vector.broadcast %cst_5 : f32 to vector<2x512xf32>
    %7 = arith.cmpf oge, %5, %6 : vector<2x512xf32>
    %cst_6 = arith.constant 2.000000e-01 : f32
    %8 = vector.broadcast %cst_6 : f32 to vector<2x512xf32>
    %9 = arith.mulf %8, %5 : vector<2x512xf32>
    %10 = arith.select %7, %5, %9 : vector<2x512xi1>, vector<2x512xf32>
    %c0_7 = arith.constant 0 : index
    %c0_8 = arith.constant 0 : index
    %11 = vector.load %arg4[%c0_7, %c0_8] : memref<512x256xf32, #tpu.memory_space<vmem>>, vector<512x256xf32>
    %cst_9 = arith.constant dense<0.000000e+00> : vector<2x256xf32>
    %12 = tpu.matmul %10, %11, %cst_9 {dimension_numbers = #tpu.dot_dimension_numbers<[1], [0], [0], [1], [0, 0, 1, 1], [], []>} : vector<2x512xf32>, vector<512x256xf32>, vector<2x256xf32> -> vector<2x256xf32>
    %c0_10 = arith.constant 0 : index
    %c0_11 = arith.constant 0 : index
    %13 = vector.load %arg5[%c0_10, %c0_11] : memref<1x256xf32, #tpu.memory_space<vmem>>, vector<1x256xf32>
    %14 = vector.broadcast %13 : vector<1x256xf32> to vector<2x256xf32>
    %15 = arith.addf %12, %14 : vector<2x256xf32>
    %cst_12 = arith.constant 0.000000e+00 : f32
    %16 = vector.broadcast %cst_12 : f32 to vector<2x256xf32>
    %17 = arith.cmpf oge, %15, %16 : vector<2x256xf32>
    %cst_13 = arith.constant 2.000000e-01 : f32
    %18 = vector.broadcast %cst_13 : f32 to vector<2x256xf32>
    %19 = arith.mulf %18, %15 : vector<2x256xf32>
    %20 = arith.select %17, %15, %19 : vector<2x256xi1>, vector<2x256xf32>
    %c0_14 = arith.constant 0 : index
    %c0_15 = arith.constant 0 : index
    %21 = vector.load %arg6[%c0_14, %c0_15] : memref<256x1xf32, #tpu.memory_space<vmem>>, vector<256x1xf32>
    %cst_16 = arith.constant dense<0.000000e+00> : vector<2x1xf32>
    %22 = tpu.matmul %20, %21, %cst_16 {dimension_numbers = #tpu.dot_dimension_numbers<[1], [0], [0], [1], [0, 0, 1, 1], [], []>} : vector<2x256xf32>, vector<256x1xf32>, vector<2x1xf32> -> vector<2x1xf32>
    %c0_17 = arith.constant 0 : index
    %c0_18 = arith.constant 0 : index
    %23 = vector.load %arg7[%c0_17, %c0_18] : memref<1x1xf32, #tpu.memory_space<vmem>>, vector<1x1xf32>
    %24 = vector.broadcast %23 : vector<1x1xf32> to vector<2x1xf32>
    %25 = arith.addf %22, %24 : vector<2x1xf32>
    %cst_19 = arith.constant 0.000000e+00 : f32
    %26 = vector.broadcast %cst_19 : f32 to vector<2x1xf32>
    %27 = arith.subf %26, %25 : vector<2x1xf32>
    %28 = math.exp %27 : vector<2x1xf32>
    %cst_20 = arith.constant 1.000000e+00 : f32
    %29 = vector.broadcast %cst_20 : f32 to vector<2x1xf32>
    %30 = arith.addf %29, %28 : vector<2x1xf32>
    %cst_21 = arith.constant 1.000000e+00 : f32
    %31 = vector.broadcast %cst_21 : f32 to vector<2x1xf32>
    %32 = arith.divf %31, %30 : vector<2x1xf32>
    %c0_22 = arith.constant 0 : index
    %c0_23 = arith.constant 0 : index
    %33 = vector.load %arg8[%c0_22, %c0_23] : memref<2x1xf32, #tpu.memory_space<vmem>>, vector<2x1xf32>
    tpu.vector_store %arg8[%c0_22, %c0_23], %32 {strides = array<i32>} : memref<2x1xf32, #tpu.memory_space<vmem>>, vector<2x1xf32>,
    return
  }
  func.func @transform_0(%arg0: i32) -> (i32, i32) {
    %c0_i32 = arith.constant 0 : i32
    %c0_i32_0 = arith.constant 0 : i32
    %c0_i32_1 = arith.constant 0 : i32
    return %c0_i32, %c0_i32_0 : i32, i32
  }
  func.func @transform_1(%arg0: i32) -> (i32, i32) {
    %c0_i32 = arith.constant 0 : i32
    %c0_i32_0 = arith.constant 0 : i32
    %c0_i32_1 = arith.constant 0 : i32
    return %c0_i32, %c0_i32_0 : i32, i32
  }
  func.func @transform_2(%arg0: i32) -> (i32, i32) {
    %c0_i32 = arith.constant 0 : i32
    %c0_i32_0 = arith.constant 0 : i32
    %c0_i32_1 = arith.constant 0 : i32
    return %c0_i32, %c0_i32_0 : i32, i32
  }
  func.func @transform_3(%arg0: i32) -> (i32, i32) {
    %c0_i32 = arith.constant 0 : i32
    %c0_i32_0 = arith.constant 0 : i32
    %c0_i32_1 = arith.constant 0 : i32
    return %c0_i32, %c0_i32_0 : i32, i32
  }
  func.func @transform_4(%arg0: i32) -> (i32, i32) {
    %c0_i32 = arith.constant 0 : i32
    %c0_i32_0 = arith.constant 0 : i32
    %c0_i32_1 = arith.constant 0 : i32
    return %c0_i32, %c0_i32_0 : i32, i32
  }
  func.func @transform_5(%arg0: i32) -> (i32, i32) {
    %c0_i32 = arith.constant 0 : i32
    %c0_i32_0 = arith.constant 0 : i32
    %c0_i32_1 = arith.constant 0 : i32
    return %c0_i32, %c0_i32_0 : i32, i32
  }
  func.func @transform_6(%arg0: i32) -> (i32, i32) {
    %c0_i32 = arith.constant 0 : i32
    %c0_i32_0 = arith.constant 0 : i32
    %c0_i32_1 = arith.constant 0 : i32
    return %c0_i32, %c0_i32_0 : i32, i32
  }
  func.func @transform_7(%arg0: i32) -> (i32, i32) {
    %c0_i32 = arith.constant 0 : i32
    %c0_i32_0 = arith.constant 0 : i32
    %c0_i32_1 = arith.constant 0 : i32
    return %c0_i32, %c0_i32_0 : i32, i32
  }
}

module attributes {stable_mosaic.version = 11 : i64} {
  func.func @_layer1_kernel(%arg0: i32, %arg1: i32, %arg2: memref<2x1536xf32, #tpu.memory_space<vmem>>, %arg3: memref<1536x512xbf16, #tpu.memory_space<vmem>>, %arg4: memref<1x512xf32, #tpu.memory_space<vmem>>, %arg5: memref<2x512xf32, #tpu.memory_space<vmem>>) attributes {dimension_semantics = [#tpu.dimension_semantics<parallel>, #tpu.dimension_semantics<arbitrary>], iteration_bounds = array<i64: 2, 1>, scalar_prefetch = 0 : i64, scratch_operands = 0 : i64, tpu.core_type = #tpu.core_type<tc>, window_params = [{transform_indices = @transform_0, window_bounds = array<i64: 2, 1536>}, {transform_indices = @transform_1, window_bounds = array<i64: 1536, 512>}, {transform_indices = @transform_2, window_bounds = array<i64: 1, 512>}, {transform_indices = @transform_3, window_bounds = array<i64: 2, 512>}]} {
    %c0_i32 = arith.constant 0 : i32
    %0 = arith.cmpi eq, %arg1, %c0_i32 : i32
    %1 = arith.extui %0 : i1 to i32
    %c0_i32_0 = arith.constant 0 : i32
    %2 = arith.cmpi ne, %1, %c0_i32_0 : i32
    scf.if %2 {
      %cst_10 = arith.constant 0.000000e+00 : f32
      %13 = vector.broadcast %cst_10 : f32 to vector<2x512xf32>
      %c0_11 = arith.constant 0 : index
      %c0_12 = arith.constant 0 : index
      %14 = vector.load %arg5[%c0_11, %c0_12] : memref<2x512xf32, #tpu.memory_space<vmem>>, vector<2x512xf32>
      tpu.vector_store %arg5[%c0_11, %c0_12], %13 {strides = array<i32>} : memref<2x512xf32, #tpu.memory_space<vmem>>, vector<2x512xf32>,
    } else {
    }
    %c0 = arith.constant 0 : index
    %c0_1 = arith.constant 0 : index
    %3 = vector.load %arg5[%c0, %c0_1] : memref<2x512xf32, #tpu.memory_space<vmem>>, vector<2x512xf32>
    %c0_2 = arith.constant 0 : index
    %c0_3 = arith.constant 0 : index
    %4 = vector.load %arg2[%c0_2, %c0_3] : memref<2x1536xf32, #tpu.memory_space<vmem>>, vector<2x1536xf32>
    %5 = arith.truncf %4 : vector<2x1536xf32> to vector<2x1536xbf16>
    %c0_4 = arith.constant 0 : index
    %c0_5 = arith.constant 0 : index
    %6 = vector.load %arg3[%c0_4, %c0_5] : memref<1536x512xbf16, #tpu.memory_space<vmem>>, vector<1536x512xbf16>
    %cst = arith.constant dense<0.000000e+00> : vector<2x512xf32>
    %7 = tpu.matmul %5, %6, %cst {dimension_numbers = #tpu.dot_dimension_numbers<[1], [0], [0], [1], [0, 0, 1, 1], [], []>} : vector<2x1536xbf16>, vector<1536x512xbf16>, vector<2x512xf32> -> vector<2x512xf32>
    %8 = arith.addf %3, %7 : vector<2x512xf32>
    %c0_6 = arith.constant 0 : index
    %c0_7 = arith.constant 0 : index
    %9 = vector.load %arg5[%c0_6, %c0_7] : memref<2x512xf32, #tpu.memory_space<vmem>>, vector<2x512xf32>
    tpu.vector_store %arg5[%c0_6, %c0_7], %8 {strides = array<i32>} : memref<2x512xf32, #tpu.memory_space<vmem>>, vector<2x512xf32>,
    %c0_i32_8 = arith.constant 0 : i32
    %10 = arith.cmpi eq, %arg1, %c0_i32_8 : i32
    %11 = arith.extui %10 : i1 to i32
    %c0_i32_9 = arith.constant 0 : i32
    %12 = arith.cmpi ne, %11, %c0_i32_9 : i32
    scf.if %12 {
      %c0_10 = arith.constant 0 : index
      %c0_11 = arith.constant 0 : index
      %13 = vector.load %arg5[%c0_10, %c0_11] : memref<2x512xf32, #tpu.memory_space<vmem>>, vector<2x512xf32>
      %c0_12 = arith.constant 0 : index
      %c0_13 = arith.constant 0 : index
      %14 = vector.load %arg4[%c0_12, %c0_13] : memref<1x512xf32, #tpu.memory_space<vmem>>, vector<1x512xf32>
      %15 = vector.broadcast %14 : vector<1x512xf32> to vector<2x512xf32>
      %16 = arith.addf %13, %15 : vector<2x512xf32>
      %cst_14 = arith.constant 0.000000e+00 : f32
      %17 = vector.broadcast %cst_14 : f32 to vector<2x512xf32>
      %18 = arith.cmpf oge, %16, %17 : vector<2x512xf32>
      %cst_15 = arith.constant 2.000000e-01 : f32
      %19 = vector.broadcast %cst_15 : f32 to vector<2x512xf32>
      %20 = arith.mulf %19, %16 : vector<2x512xf32>
      %21 = arith.select %18, %16, %20 : vector<2x512xi1>, vector<2x512xf32>
      %c0_16 = arith.constant 0 : index
      %c0_17 = arith.constant 0 : index
      %22 = vector.load %arg5[%c0_16, %c0_17] : memref<2x512xf32, #tpu.memory_space<vmem>>, vector<2x512xf32>
      tpu.vector_store %arg5[%c0_16, %c0_17], %21 {strides = array<i32>} : memref<2x512xf32, #tpu.memory_space<vmem>>, vector<2x512xf32>,
    } else {
    }
    return
  }
  func.func @transform_0(%arg0: i32, %arg1: i32) -> (i32, i32) {
    %c0_i32 = arith.constant 0 : i32
    %c0_i32_0 = arith.constant 0 : i32
    return %c0_i32, %arg1 : i32, i32
  }
  func.func @transform_1(%arg0: i32, %arg1: i32) -> (i32, i32) {
    %c0_i32 = arith.constant 0 : i32
    return %arg1, %arg0 : i32, i32
  }
  func.func @transform_2(%arg0: i32, %arg1: i32) -> (i32, i32) {
    %c0_i32 = arith.constant 0 : i32
    %c0_i32_0 = arith.constant 0 : i32
    return %c0_i32, %arg0 : i32, i32
  }
  func.func @transform_3(%arg0: i32, %arg1: i32) -> (i32, i32) {
    %c0_i32 = arith.constant 0 : i32
    %c0_i32_0 = arith.constant 0 : i32
    return %c0_i32, %arg0 : i32, i32
  }
}

</mosaic_0001>

<bundles_post_ra>
// kernel: stylegan_discriminator.3
= control target key start
LH: loop header
LB: loop body
LE: loop exit
PB: predicated region body
PF: predicated region fallthrough
CT: control target
= control target key end

     0   :  { %vm1620_vm9 = vcmask 1024   ;;  %s3815_s1 = inlined_call_operand.vmem [shape: f32[1024,512], index: 1, kind: input, shape index: {}]   ;;  %s3816_s0 = inlined_call_operand.vmem [shape: f32[2,1024], index: 0, kind: input, shape index: {}]   ;;  %s3817_s2 = inlined_call_operand.vmem [shape: f32[1,512], index: 2, kind: input, shape index: {}]   ;;  %s3818_s3 = inlined_call_operand.vmem [shape: f32[512,256], index: 3, kind: input, shape index: {}]   ;;  %s3819_s5 = inlined_call_operand.vmem [shape: f32[256,1], index: 5, kind: input, shape index: {}]   ;;  %s3820_s6 = inlined_call_operand.<no memory space> [shape: f32[1,1], index: 6, kind: input, shape index: {}]   ;;  %s3821_s4 = inlined_call_operand.vmem [shape: f32[1,256], index: 4, kind: input, shape index: {}]   ;;  %s3822_s7 = inlined_call_operand.vmem [shape: f32[2,1], index: 7, kind: output, shape index: {}]  }
   0x1   :  { %v90_v0 = vld [vmem:[%s3815_s1 + $0x1e0] sm:$0xff] }
   0x2   :  { %v154_v1 = vld [vmem:[%s3815_s1 + $0x3e0] sm:$0xff]  ;;  %573 = vmatpush.msra.mxu0 %v90_v0 }
   0x3   :  { %v218_v2 = vld [vmem:[%s3815_s1 + $0x5e0] sm:$0xff]  ;;  %593 = vmatpush.msra.mxu1 %v154_v1 }
   0x4   :  { %v86_v3 = vld [vmem:[%s3815_s1 + $0x1c0] sm:$0xff]  ;;  %613 = vmatpush.msra.mxu2 %v218_v2 }
   0x5   :  { %v150_v4 = vld [vmem:[%s3815_s1 + $0x3c0] sm:$0xff]  ;;  %574 = vmatpush.msra.mxu0 %v86_v3 }
   0x6   :  { %v214_v5 = vld [vmem:[%s3815_s1 + $0x5c0] sm:$0xff]  ;;  %594 = vmatpush.msra.mxu1 %v150_v4 }
   0x7   :  { %v282_v6 = vld [vmem:[%s3815_s1 + $0x7e0] sm:$0xff]  ;;  %614 = vmatpush.msra.mxu2 %v214_v5 }
   0x8   :  { %v82_v7 = vld [vmem:[%s3815_s1 + $0x1a0] sm:$0xff]  ;;  %633 = vmatpush.msra.mxu3 %v282_v6 }
   0x9   :  { %v146_v8 = vld [vmem:[%s3815_s1 + $0x3a0] sm:$0xff]  ;;  %575 = vmatpush.msra.mxu0 %v82_v7 }
   0xa   :  { %v210_v9 = vld [vmem:[%s3815_s1 + $0x5a0] sm:$0xff]  ;;  %595 = vmatpush.msra.mxu1 %v146_v8 }
   0xb   :  { %v278_v10 = vld [vmem:[%s3815_s1 + $0x7c0] sm:$0xff]  ;;  %615 = vmatpush.msra.mxu2 %v210_v9 }
   0xc   :  { %v78_v11 = vld [vmem:[%s3815_s1 + $0x180] sm:$0xff]  ;;  %634 = vmatpush.msra.mxu3 %v278_v10 }
   0xd   :  { %v142_v12 = vld [vmem:[%s3815_s1 + $0x380] sm:$0xff]  ;;  %576 = vmatpush.msra.mxu0 %v78_v11 }
   0xe   :  { %v206_v13 = vld [vmem:[%s3815_s1 + $0x580] sm:$0xff]  ;;  %596 = vmatpush.msra.mxu1 %v142_v12 }
   0xf   :  { %v274_v14 = vld [vmem:[%s3815_s1 + $0x7a0] sm:$0xff]  ;;  %616 = vmatpush.msra.mxu2 %v206_v13 }
  0x10   :  { %v74_v15 = vld [vmem:[%s3815_s1 + $0x160] sm:$0xff]  ;;  %635 = vmatpush.msra.mxu3 %v274_v14 }
  0x11   :  { %v138_v16 = vld [vmem:[%s3815_s1 + $0x360] sm:$0xff]  ;;  %577 = vmatpush.msra.mxu0 %v74_v15 }
  0x12   :  { %v202_v17 = vld [vmem:[%s3815_s1 + $0x560] sm:$0xff]  ;;  %597 = vmatpush.msra.mxu1 %v138_v16 }
  0x13   :  { %v270_v18 = vld [vmem:[%s3815_s1 + $0x780] sm:$0xff]  ;;  %617 = vmatpush.msra.mxu2 %v202_v17 }
  0x14   :  { %v70_v19 = vld [vmem:[%s3815_s1 + $0x140] sm:$0xff]  ;;  %636 = vmatpush.msra.mxu3 %v270_v18 }
  0x15   :  { %v134_v20 = vld [vmem:[%s3815_s1 + $0x340] sm:$0xff]  ;;  %578 = vmatpush.msra.mxu0 %v70_v19 }
  0x16   :  { %v198_v21 = vld [vmem:[%s3815_s1 + $0x540] sm:$0xff]  ;;  %598 = vmatpush.msra.mxu1 %v134_v20 }
  0x17   :  { %v266_v22 = vld [vmem:[%s3815_s1 + $0x760] sm:$0xff]  ;;  %618 = vmatpush.msra.mxu2 %v198_v21 }
  0x18   :  { %v66_v23 = vld [vmem:[%s3815_s1 + $0x120] sm:$0xff]  ;;  %637 = vmatpush.msra.mxu3 %v266_v22 }
  0x19   :  { %v130_v24 = vld [vmem:[%s3815_s1 + $0x320] sm:$0xff]  ;;  %579 = vmatpush.msra.mxu0 %v66_v23 }
  0x1a   :  { %v194_v25 = vld [vmem:[%s3815_s1 + $0x520] sm:$0xff]  ;;  %599 = vmatpush.msra.mxu1 %v130_v24 }
  0x1b   :  { %v262_v26 = vld [vmem:[%s3815_s1 + $0x740] sm:$0xff]  ;;  %619 = vmatpush.msra.mxu2 %v194_v25 }
  0x1c   :  { %v62_v27 = vld [vmem:[%s3815_s1 + $0x100] sm:$0xff]  ;;  %638 = vmatpush.msra.mxu3 %v262_v26 }
  0x1d   :  { %v126_v28 = vld [vmem:[%s3815_s1 + $0x300] sm:$0xff]  ;;  %580 = vmatpush.msra.mxu0 %v62_v27 }
  0x1e   :  { %v190_v29 = vld [vmem:[%s3815_s1 + $0x500] sm:$0xff]  ;;  %600 = vmatpush.msra.mxu1 %v126_v28 }
  0x1f   :  { %v258_v30 = vld [vmem:[%s3815_s1 + $0x720] sm:$0xff]  ;;  %620 = vmatpush.msra.mxu2 %v190_v29 }
  0x20   :  { %v58_v31 = vld [vmem:[%s3815_s1 + $0xe0] sm:$0xff]  ;;  %639 = vmatpush.msra.mxu3 %v258_v30 }
  0x21   :  { %v122_v32 = vld [vmem:[%s3815_s1 + $0x2e0] sm:$0xff]  ;;  %581 = vmatpush.msra.mxu0 %v58_v31 }
  0x22   :  { %v186_v33 = vld [vmem:[%s3815_s1 + $0x4e0] sm:$0xff]  ;;  %601 = vmatpush.msra.mxu1 %v122_v32 }
  0x23   :  { %v254_v34 = vld [vmem:[%s3815_s1 + $0x700] sm:$0xff]  ;;  %621 = vmatpush.msra.mxu2 %v186_v33 }
  0x24   :  { %v54_v35 = vld [vmem:[%s3815_s1 + $0xc0] sm:$0xff]  ;;  %640 = vmatpush.msra.mxu3 %v254_v34  ;;  %v29_v34 = vld [vmem:[%s3816_s0 + $0x8] sm:$0xff] }
  0x25   :  { %v118_v36 = vld [vmem:[%s3815_s1 + $0x2c0] sm:$0xff]  ;;  %582 = vmatpush.msra.mxu0 %v54_v35  ;;  %556 = vst [vmem:[#allocation1 + $0x20] ss:$4 sm:$0xff] %v29_v34  ;;  %v131_v34 = vld [vmem:[%s3815_s1 + $0x328] sm:$0xff] }
  0x26   :  { %v182_v37 = vld [vmem:[%s3815_s1 + $0x4c0] sm:$0xff]  ;;  %602 = vmatpush.msra.mxu1 %v118_v36 }
  0x27   :  { %v250_v38 = vld [vmem:[%s3815_s1 + $0x6e0] sm:$0xff]  ;;  %622 = vmatpush.msra.mxu2 %v182_v37 }
  0x28   :  { %v50_v39 = vld [vmem:[%s3815_s1 + $0xa0] sm:$0xff]  ;;  %641 = vmatpush.msra.mxu3 %v250_v38 }
  0x29   :  { %v114_v40 = vld [vmem:[%s3815_s1 + $0x2a0] sm:$0xff]  ;;  %583 = vmatpush.msra.mxu0 %v50_v39 }
  0x2a   :  { %v178_v41 = vld [vmem:[%s3815_s1 + $0x4a0] sm:$0xff]  ;;  %603 = vmatpush.msra.mxu1 %v114_v40 }
  0x2b   :  { %v246_v42 = vld [vmem:[%s3815_s1 + $0x6c0] sm:$0xff]  ;;  %623 = vmatpush.msra.mxu2 %v178_v41 }
  0x2c   :  { %v46_v43 = vld [vmem:[%s3815_s1 + $0x80] sm:$0xff]  ;;  %642 = vmatpush.msra.mxu3 %v246_v42 }
  0x2d   :  { %v110_v44 = vld [vmem:[%s3815_s1 + $0x280] sm:$0xff]  ;;  %584 = vmatpush.msra.mxu0 %v46_v43 }
  0x2e   :  { %v174_v45 = vld [vmem:[%s3815_s1 + $0x480] sm:$0xff]  ;;  %604 = vmatpush.msra.mxu1 %v110_v44 }
  0x2f   :  { %v242_v46 = vld [vmem:[%s3815_s1 + $0x6a0] sm:$0xff]  ;;  %624 = vmatpush.msra.mxu2 %v174_v45 }
  0x30   :  { %v42_v47 = vld [vmem:[%s3815_s1 + $0x60] sm:$0xff]  ;;  %643 = vmatpush.msra.mxu3 %v242_v46 }
  0x31   :  { %v106_v48 = vld [vmem:[%s3815_s1 + $0x260] sm:$0xff]  ;;  %585 = vmatpush.msra.mxu0 %v42_v47 }
  0x32   :  { %v170_v49 = vld [vmem:[%s3815_s1 + $0x460] sm:$0xff]  ;;  %605 = vmatpush.msra.mxu1 %v106_v48 }
  0x33   :  { %v238_v50 = vld [vmem:[%s3815_s1 + $0x680] sm:$0xff]  ;;  %625 = vmatpush.msra.mxu2 %v170_v49 }
  0x34   :  { %v38_v51 = vld [vmem:[%s3815_s1 + $0x40] sm:$0xff]  ;;  %644 = vmatpush.msra.mxu3 %v238_v50 }
  0x35   :  { %v102_v52 = vld [vmem:[%s3815_s1 + $0x240] sm:$0xff]  ;;  %586 = vmatpush.msra.mxu0 %v38_v51 }
  0x36   :  { %v166_v53 = vld [vmem:[%s3815_s1 + $0x440] sm:$0xff]  ;;  %606 = vmatpush.msra.mxu1 %v102_v52 }
  0x37   :  { %v234_v54 = vld [vmem:[%s3815_s1 + $0x660] sm:$0xff]  ;;  %626 = vmatpush.msra.mxu2 %v166_v53 }
  0x38   :  { %v34_v55 = vld [vmem:[%s3815_s1 + $0x20] sm:$0xff]  ;;  %645 = vmatpush.msra.mxu3 %v234_v54 }
  0x39   :  { %v98_v56 = vld [vmem:[%s3815_s1 + $0x220] sm:$0xff]  ;;  %587 = vmatpush.msra.mxu0 %v34_v55 }
  0x3a   :  { %v162_v57 = vld [vmem:[%s3815_s1 + $0x420] sm:$0xff]  ;;  %607 = vmatpush.msra.mxu1 %v98_v56 }
  0x3b   :  { %v230_v58 = vld [vmem:[%s3815_s1 + $0x640] sm:$0xff]  ;;  %627 = vmatpush.msra.mxu2 %v162_v57 }
  0x3c   :  { %v30_v59 = vld [vmem:[%s3815_s1] sm:$0xff]  ;;  %646 = vmatpush.msra.mxu3 %v230_v58 }
  0x3d   :  { %v94_v60 = vld [vmem:[%s3815_s1 + $0x200] sm:$0xff]  ;;  %588 = vmatpush.msra.mxu0 %v30_v59 }
  0x3e   :  { %v158_v61 = vld [vmem:[%s3815_s1 + $0x400] sm:$0xff]  ;;  %608 = vmatpush.msra.mxu1 %v94_v60 }
  0x3f   :  { %v226_v62 = vld [vmem:[%s3815_s1 + $0x620] sm:$0xff]  ;;  %628 = vmatpush.msra.mxu2 %v158_v61 }
  0x40   :  { %v346_v63 = vld [vmem:[%s3815_s1 + $0x9e0] sm:$0xff]  ;;  %647 = vmatpush.msra.mxu3 %v226_v62 }
  0x41   :  { %v410_v0 = vld [vmem:[%s3815_s1 + $0xbe0] sm:$0xff]  ;;  %653 = vmatpush.msrb.mxu0 %v346_v63 }
  0x42   :  { %v474_v1 = vld [vmem:[%s3815_s1 + $0xde0] sm:$0xff]  ;;  %673 = vmatpush.msrb.mxu1 %v410_v0 }
  0x43   :  { %v222_v2 = vld [vmem:[%s3815_s1 + $0x600] sm:$0xff]  ;;  %693 = vmatpush.msrb.mxu2 %v474_v1 }
  0x44   :  { %v342_v3 = vld [vmem:[%s3815_s1 + $0x9c0] sm:$0xff]  ;;  %648 = vmatpush.msra.mxu3 %v222_v2 }
  0x45   :  { %v406_v4 = vld [vmem:[%s3815_s1 + $0xbc0] sm:$0xff]  ;;  %654 = vmatpush.msrb.mxu0 %v342_v3 }
  0x46   :  { %v470_v5 = vld [vmem:[%s3815_s1 + $0xdc0] sm:$0xff]  ;;  %674 = vmatpush.msrb.mxu1 %v406_v4 }
  0x47   :  { %v538_v6 = vld [vmem:[%s3815_s1 + $0xfe0] sm:$0xff]  ;;  %694 = vmatpush.msrb.mxu2 %v470_v5  ;;  %v91_v5 = vld [vmem:[%s3815_s1 + $0x1e8] sm:$0xff] }
  0x48   :  { %v338_v7 = vld [vmem:[%s3815_s1 + $0x9a0] sm:$0xff]  ;;  %713 = vmatpush.msrb.mxu3 %v538_v6  ;;  %v155_v6 = vld [vmem:[%s3815_s1 + $0x3e8] sm:$0xff] }
  0x49   :  { %v402_v8 = vld [vmem:[%s3815_s1 + $0xba0] sm:$0xff]  ;;  %655 = vmatpush.msrb.mxu0 %v338_v7  ;;  %v219_v7 = vld [vmem:[%s3815_s1 + $0x5e8] sm:$0xff] }
  0x4a   :  { %v466_v9 = vld [vmem:[%s3815_s1 + $0xda0] sm:$0xff]  ;;  %675 = vmatpush.msrb.mxu1 %v402_v8 }
  0x4b   :  { %v534_v10 = vld [vmem:[%s3815_s1 + $0xfc0] sm:$0xff]  ;;  %695 = vmatpush.msrb.mxu2 %v466_v9  ;;  %v87_v9 = vld [vmem:[%s3815_s1 + $0x1c8] sm:$0xff] }
  0x4c   :  { %v334_v11 = vld [vmem:[%s3815_s1 + $0x980] sm:$0xff]  ;;  %714 = vmatpush.msrb.mxu3 %v534_v10  ;;  %v151_v10 = vld [vmem:[%s3815_s1 + $0x3c8] sm:$0xff] }
  0x4d   :  { %v398_v12 = vld [vmem:[%s3815_s1 + $0xb80] sm:$0xff]  ;;  %656 = vmatpush.msrb.mxu0 %v334_v11  ;;  %v215_v11 = vld [vmem:[%s3815_s1 + $0x5c8] sm:$0xff] }
  0x4e   :  { %v462_v13 = vld [vmem:[%s3815_s1 + $0xd80] sm:$0xff]  ;;  %676 = vmatpush.msrb.mxu1 %v398_v12  ;;  %v283_v12 = vld [vmem:[%s3815_s1 + $0x7e8] sm:$0xff] }
  0x4f   :  { %v530_v14 = vld [vmem:[%s3815_s1 + $0xfa0] sm:$0xff]  ;;  %696 = vmatpush.msrb.mxu2 %v462_v13  ;;  %v83_v13 = vld [vmem:[%s3815_s1 + $0x1a8] sm:$0xff] }
  0x50   :  { %v330_v15 = vld [vmem:[%s3815_s1 + $0x960] sm:$0xff]  ;;  %715 = vmatpush.msrb.mxu3 %v530_v14  ;;  %v147_v14 = vld [vmem:[%s3815_s1 + $0x3a8] sm:$0xff] }
  0x51   :  { %v394_v16 = vld [vmem:[%s3815_s1 + $0xb60] sm:$0xff]  ;;  %657 = vmatpush.msrb.mxu0 %v330_v15  ;;  %v211_v15 = vld [vmem:[%s3815_s1 + $0x5a8] sm:$0xff] }
  0x52   :  { %v458_v17 = vld [vmem:[%s3815_s1 + $0xd60] sm:$0xff]  ;;  %677 = vmatpush.msrb.mxu1 %v394_v16  ;;  %v279_v16 = vld [vmem:[%s3815_s1 + $0x7c8] sm:$0xff] }
  0x53   :  { %v526_v18 = vld [vmem:[%s3815_s1 + $0xf80] sm:$0xff]  ;;  %697 = vmatpush.msrb.mxu2 %v458_v17  ;;  %v2114_v17 = vld.sshfl [vmem:[#allocation1 + $0x30] sm:$0xff pattern:$0x73625140] }
  0x54   :  { %v326_v19 = vld [vmem:[%s3815_s1 + $0x940] sm:$0xff]  ;;  %716 = vmatpush.msrb.mxu3 %v526_v18  ;;  %v79_v18 = vld [vmem:[%s3815_s1 + $0x188] sm:$0xff] }
  0x55   :  { %v390_v20 = vld [vmem:[%s3815_s1 + $0xb40] sm:$0xff]  ;;  %658 = vmatpush.msrb.mxu0 %v326_v19  ;;  %v143_v19 = vld [vmem:[%s3815_s1 + $0x388] sm:$0xff] }
  0x56   :  { %v454_v21 = vld [vmem:[%s3815_s1 + $0xd40] sm:$0xff]  ;;  %678 = vmatpush.msrb.mxu1 %v390_v20  ;;  %v207_v20 = vld [vmem:[%s3815_s1 + $0x588] sm:$0xff] }
  0x57   :  { %v522_v22 = vld [vmem:[%s3815_s1 + $0xf60] sm:$0xff]  ;;  %698 = vmatpush.msrb.mxu2 %v454_v21  ;;  %v275_v21 = vld [vmem:[%s3815_s1 + $0x7a8] sm:$0xff] }
  0x58   :  { %v28_v23 = vld [vmem:[%s3816_s0] sm:$0xff]  ;;  %717 = vmatpush.msrb.mxu3 %v522_v22 }
  0x59   :  { %v322_v24 = vld [vmem:[%s3815_s1 + $0x920] sm:$0xff]  ;;  %554 = vst [vmem:[#allocation1] ss:$4 sm:$0xff] %v28_v23  ;;  %v2131_v23 = vld.sshfl [vmem:[#allocation1 + $0x38] sm:$0xff pattern:$0x73625140] }
  0x5a   :  { %v386_v25 = vld [vmem:[%s3815_s1 + $0xb20] sm:$0xff]  ;;  %659 = vmatpush.msrb.mxu0 %v322_v24  ;;  %v75_v24 = vld [vmem:[%s3815_s1 + $0x168] sm:$0xff] }
  0x5b   :  { %v450_v26 = vld [vmem:[%s3815_s1 + $0xd20] sm:$0xff]  ;;  %679 = vmatpush.msrb.mxu1 %v386_v25  ;;  %v139_v25 = vld [vmem:[%s3815_s1 + $0x368] sm:$0xff] }
  0x5c   :  { %v518_v27 = vld [vmem:[%s3815_s1 + $0xf40] sm:$0xff]  ;;  %699 = vmatpush.msrb.mxu2 %v450_v26  ;;  %v203_v26 = vld [vmem:[%s3815_s1 + $0x568] sm:$0xff] }
  0x5d   :  { %v318_v28 = vld [vmem:[%s3815_s1 + $0x900] sm:$0xff]  ;;  %718 = vmatpush.msrb.mxu3 %v518_v27  ;;  %v271_v27 = vld [vmem:[%s3815_s1 + $0x788] sm:$0xff] }
  0x5e   :  { %v382_v29 = vld [vmem:[%s3815_s1 + $0xb00] sm:$0xff]  ;;  %660 = vmatpush.msrb.mxu0 %v318_v28  ;;  %v2146_v28 = vld.sshfl [vmem:[#allocation1 + $0x28] sm:$0xff pattern:$0x73625140] }
  0x5f   :  { %v446_v30 = vld [vmem:[%s3815_s1 + $0xd00] sm:$0xff]  ;;  %680 = vmatpush.msrb.mxu1 %v382_v29  ;;  %v71_v29 = vld [vmem:[%s3815_s1 + $0x148] sm:$0xff] }
  0x60   :  { %v514_v31 = vld [vmem:[%s3815_s1 + $0xf20] sm:$0xff]  ;;  %700 = vmatpush.msrb.mxu2 %v446_v30  ;;  %v2054_v61 = vld.sshfl [vmem:[#allocation1 + $0x10] sm:$0xff pattern:$0x73625140]  ;;  %v135_v30 = vld [vmem:[%s3815_s1 + $0x348] sm:$0xff] }
  0x61   :  { %v314_v32 = vld [vmem:[%s3815_s1 + $0x8e0] sm:$0xff]  ;;  %719 = vmatpush.msrb.mxu3 %v514_v31  ;;  %629 = vmatmul.f32.vlgmr.msra.gmra.mxu2 %v2054_v61  ;;  %v2071_v3 = vld.sshfl [vmem:[#allocation1 + $0x8] sm:$0xff pattern:$0x73625140] }
  0x62   :  { %v378_v33 = vld [vmem:[%s3815_s1 + $0xae0] sm:$0xff]  ;;  %661 = vmatpush.msrb.mxu0 %v314_v32  ;;  %v2073_v4 = vld.sshfl [vmem:[#allocation1 + $0x18] sm:$0xff pattern:$0x73625140]  ;;  %609 = vmatmul.f32.vlgmr.msra.gmra.mxu1 %v2071_v3  ;;  %v199_v31 = vld [vmem:[%s3815_s1 + $0x548] sm:$0xff] }
  0x63   :  { %v442_v35 = vld [vmem:[%s3815_s1 + $0xce0] sm:$0xff]  ;;  %681 = vmatpush.msrb.mxu1 %v378_v33  ;;  %649 = vmatmul.f32.vlgmr.msra.gmra.mxu3 %v2073_v4  ;;  %v267_v32 = vld [vmem:[%s3815_s1 + $0x768] sm:$0xff] }
  0x64   :  { %v510_v36 = vld [vmem:[%s3815_s1 + $0xf00] sm:$0xff]  ;;  %701 = vmatpush.msrb.mxu2 %v442_v35  ;;  %v67_v33 = vld [vmem:[%s3815_s1 + $0x128] sm:$0xff] }
  0x65   :  { %v310_v37 = vld [vmem:[%s3815_s1 + $0x8c0] sm:$0xff]  ;;  %720 = vmatpush.msrb.mxu3 %v510_v36  ;;  %v195_v35 = vld [vmem:[%s3815_s1 + $0x528] sm:$0xff] }
  0x66   :  { %v374_v38 = vld [vmem:[%s3815_s1 + $0xac0] sm:$0xff]  ;;  %662 = vmatpush.msrb.mxu0 %v310_v37  ;;  %v263_v36 = vld [vmem:[%s3815_s1 + $0x748] sm:$0xff] }
  0x67   :  { %v438_v39 = vld [vmem:[%s3815_s1 + $0xcc0] sm:$0xff]  ;;  %682 = vmatpush.msrb.mxu1 %v374_v38  ;;  %v63_v37 = vld [vmem:[%s3815_s1 + $0x108] sm:$0xff] }
  0x68   :  { %v506_v40 = vld [vmem:[%s3815_s1 + $0xee0] sm:$0xff]  ;;  %702 = vmatpush.msrb.mxu2 %v438_v39  ;;  %v127_v38 = vld [vmem:[%s3815_s1 + $0x308] sm:$0xff] }
  0x69   :  { %v306_v41 = vld [vmem:[%s3815_s1 + $0x8a0] sm:$0xff]  ;;  %721 = vmatpush.msrb.mxu3 %v506_v40  ;;  %v191_v39 = vld [vmem:[%s3815_s1 + $0x508] sm:$0xff] }
  0x6a   :  { %v370_v42 = vld [vmem:[%s3815_s1 + $0xaa0] sm:$0xff]  ;;  %663 = vmatpush.msrb.mxu0 %v306_v41  ;;  %v259_v40 = vld [vmem:[%s3815_s1 + $0x728] sm:$0xff] }
  0x6b   :  { %v434_v43 = vld [vmem:[%s3815_s1 + $0xca0] sm:$0xff]  ;;  %683 = vmatpush.msrb.mxu1 %v370_v42  ;;  %v59_v41 = vld [vmem:[%s3815_s1 + $0xe8] sm:$0xff] }
  0x6c   :  { %v502_v44 = vld [vmem:[%s3815_s1 + $0xec0] sm:$0xff]  ;;  %703 = vmatpush.msrb.mxu2 %v434_v43  ;;  %v123_v42 = vld [vmem:[%s3815_s1 + $0x2e8] sm:$0xff] }
  0x6d   :  { %v302_v45 = vld [vmem:[%s3815_s1 + $0x880] sm:$0xff]  ;;  %722 = vmatpush.msrb.mxu3 %v502_v44  ;;  %v187_v43 = vld [vmem:[%s3815_s1 + $0x4e8] sm:$0xff] }
  0x6e   :  { %v366_v46 = vld [vmem:[%s3815_s1 + $0xa80] sm:$0xff]  ;;  %664 = vmatpush.msrb.mxu0 %v302_v45  ;;  %v255_v44 = vld [vmem:[%s3815_s1 + $0x708] sm:$0xff] }
  0x6f   :  { %v430_v47 = vld [vmem:[%s3815_s1 + $0xc80] sm:$0xff]  ;;  %684 = vmatpush.msrb.mxu1 %v366_v46  ;;  %v55_v45 = vld [vmem:[%s3815_s1 + $0xc8] sm:$0xff] }
  0x70   :  { %v498_v48 = vld [vmem:[%s3815_s1 + $0xea0] sm:$0xff]  ;;  %704 = vmatpush.msrb.mxu2 %v430_v47  ;;  %v119_v46 = vld [vmem:[%s3815_s1 + $0x2c8] sm:$0xff] }
  0x71   :  { %v298_v49 = vld [vmem:[%s3815_s1 + $0x860] sm:$0xff]  ;;  %723 = vmatpush.msrb.mxu3 %v498_v48  ;;  %v183_v47 = vld [vmem:[%s3815_s1 + $0x4c8] sm:$0xff] }
  0x72   :  { %v362_v50 = vld [vmem:[%s3815_s1 + $0xa60] sm:$0xff]  ;;  %665 = vmatpush.msrb.mxu0 %v298_v49  ;;  %v251_v48 = vld [vmem:[%s3815_s1 + $0x6e8] sm:$0xff] }
  0x73   :  { %v426_v51 = vld [vmem:[%s3815_s1 + $0xc60] sm:$0xff]  ;;  %685 = vmatpush.msrb.mxu1 %v362_v50  ;;  %v51_v49 = vld [vmem:[%s3815_s1 + $0xa8] sm:$0xff] }
  0x74   :  { %v494_v52 = vld [vmem:[%s3815_s1 + $0xe80] sm:$0xff]  ;;  %705 = vmatpush.msrb.mxu2 %v426_v51  ;;  %v115_v50 = vld [vmem:[%s3815_s1 + $0x2a8] sm:$0xff] }
  0x75   :  { %v294_v53 = vld [vmem:[%s3815_s1 + $0x840] sm:$0xff]  ;;  %724 = vmatpush.msrb.mxu3 %v494_v52  ;;  %v179_v51 = vld [vmem:[%s3815_s1 + $0x4a8] sm:$0xff] }
  0x76   :  { %v358_v54 = vld [vmem:[%s3815_s1 + $0xa40] sm:$0xff]  ;;  %666 = vmatpush.msrb.mxu0 %v294_v53  ;;  %v247_v52 = vld [vmem:[%s3815_s1 + $0x6c8] sm:$0xff] }
  0x77   :  { %v422_v55 = vld [vmem:[%s3815_s1 + $0xc40] sm:$0xff]  ;;  %686 = vmatpush.msrb.mxu1 %v358_v54  ;;  %v47_v53 = vld [vmem:[%s3815_s1 + $0x88] sm:$0xff] }
  0x78   :  { %v490_v56 = vld [vmem:[%s3815_s1 + $0xe60] sm:$0xff]  ;;  %706 = vmatpush.msrb.mxu2 %v422_v55  ;;  %v111_v54 = vld [vmem:[%s3815_s1 + $0x288] sm:$0xff] }
  0x79   :  { %v290_v57 = vld [vmem:[%s3815_s1 + $0x820] sm:$0xff]  ;;  %725 = vmatpush.msrb.mxu3 %v490_v56  ;;  %v175_v55 = vld [vmem:[%s3815_s1 + $0x488] sm:$0xff] }
  0x7a   :  { %v354_v58 = vld [vmem:[%s3815_s1 + $0xa20] sm:$0xff]  ;;  %667 = vmatpush.msrb.mxu0 %v290_v57  ;;  %v243_v56 = vld [vmem:[%s3815_s1 + $0x6a8] sm:$0xff] }
  0x7b   :  { %v418_v59 = vld [vmem:[%s3815_s1 + $0xc20] sm:$0xff]  ;;  %687 = vmatpush.msrb.mxu1 %v354_v58  ;;  %v43_v57 = vld [vmem:[%s3815_s1 + $0x68] sm:$0xff] }
  0x7c   :  { %v486_v60 = vld [vmem:[%s3815_s1 + $0xe40] sm:$0xff]  ;;  %707 = vmatpush.msrb.mxu2 %v418_v59  ;;  %v107_v58 = vld [vmem:[%s3815_s1 + $0x268] sm:$0xff] }
  0x7d   :  { %v286_v62 = vld [vmem:[%s3815_s1 + $0x800] sm:$0xff]  ;;  %726 = vmatpush.msrb.mxu3 %v486_v60  ;;  %v171_v59 = vld [vmem:[%s3815_s1 + $0x468] sm:$0xff] }
  0x7e   :  { %v350_v63 = vld [vmem:[%s3815_s1 + $0xa00] sm:$0xff]  ;;  %668 = vmatpush.msrb.mxu0 %v286_v62  ;;  %v239_v60 = vld [vmem:[%s3815_s1 + $0x688] sm:$0xff] }
  0x7f   :  { %v414_v0 = vld [vmem:[%s3815_s1 + $0xc00] sm:$0xff]  ;;  %688 = vmatpush.msrb.mxu1 %v350_v63  ;;  %v39_v62 = vld [vmem:[%s3815_s1 + $0x48] sm:$0xff] }
  0x80   :  { %v482_v1 = vld [vmem:[%s3815_s1 + $0xe20] sm:$0xff]  ;;  %708 = vmatpush.msrb.mxu2 %v414_v0  ;;  %689 = vmatmul.f32.vlgmr.msrb.gmra.mxu1 %v2146_v28  ;;  %v103_v63 = vld [vmem:[%s3815_s1 + $0x248] sm:$0xff] }
  0x81   :  { %v2068_v2 = vld.sshfl [vmem:[#allocation1] sm:$0xff pattern:$0x73625140]  ;;  %727 = vmatpush.msrb.mxu3 %v482_v1  ;;  %753 = vmatpush.msra.mxu1 %v155_v6  ;;  %v167_v0 = vld [vmem:[%s3815_s1 + $0x448] sm:$0xff] }
  0x82   :  { %589 = vmatmul.f32.vlgmr.msra.gmra.mxu0 %v2068_v2  ;;  %v478_v8 = vld [vmem:[%s3815_s1 + $0xe00] sm:$0xff]  ;;  %773 = vmatpush.msra.mxu2 %v219_v7  ;;  %v235_v1 = vld [vmem:[%s3815_s1 + $0x668] sm:$0xff] }
  0x83   :  { %733 = vmatpush.msra.mxu0 %v91_v5  ;;  %728 = vmatpush.msrb.mxu3 %v478_v8  ;;  %v2128_v22 = vld.sshfl [vmem:[#allocation1 + $0x20] sm:$0xff pattern:$0x73625140]  ;;  %v35_v5 = vld [vmem:[%s3815_s1 + $0x28] sm:$0xff] }
  0x84   :  { %754 = vmatpush.msra.mxu1 %v151_v10  ;;  %774 = vmatpush.msra.mxu2 %v215_v11  ;;  %v99_v6 = vld [vmem:[%s3815_s1 + $0x228] sm:$0xff] }
  0x85   :  { %734 = vmatpush.msra.mxu0 %v87_v9  ;;  %793 = vmatpush.msra.mxu3 %v283_v12  ;;  %v163_v7 = vld [vmem:[%s3815_s1 + $0x428] sm:$0xff] }
  0x86   :  { %755 = vmatpush.msra.mxu1 %v147_v14  ;;  %775 = vmatpush.msra.mxu2 %v211_v15  ;;  %v231_v8 = vld [vmem:[%s3815_s1 + $0x648] sm:$0xff] }
  0x87   :  { %735 = vmatpush.msra.mxu0 %v83_v13  ;;  %794 = vmatpush.msra.mxu3 %v279_v16  ;;  %v31_v9 = vld [vmem:[%s3815_s1 + $0x8] sm:$0xff] }
  0x88   :  { %709 = vmatmul.f32.vlgmr.msrb.gmra.mxu2 %v2114_v17  ;;  %756 = vmatpush.msra.mxu1 %v143_v19  ;;  %v95_v10 = vld [vmem:[%s3815_s1 + $0x208] sm:$0xff] }
  0x89   :  { %736 = vmatpush.msra.mxu0 %v79_v18  ;;  %776 = vmatpush.msra.mxu2 %v207_v20  ;;  %v159_v11 = vld [vmem:[%s3815_s1 + $0x408] sm:$0xff] }
  0x8a   :  { %795 = vmatpush.msra.mxu3 %v275_v21  ;;  %669 = vmatmul.f32.vlgmr.msrb.gmra.mxu0 %v2128_v22  ;;  %v227_v12 = vld [vmem:[%s3815_s1 + $0x628] sm:$0xff] }
  0x8b   :  { %729 = vmatmul.f32.vlgmr.msrb.gmra.mxu3 %v2131_v23  ;;  %737 = vmatpush.msra.mxu0 %v75_v24  ;;  %v347_v13 = vld [vmem:[%s3815_s1 + $0x9e8] sm:$0xff] }
  0x8c   :  { %757 = vmatpush.msra.mxu1 %v139_v25  ;;  %777 = vmatpush.msra.mxu2 %v203_v26  ;;  %v411_v14 = vld [vmem:[%s3815_s1 + $0xbe8] sm:$0xff] }
  0x8d   :  { %796 = vmatpush.msra.mxu3 %v271_v27  ;;  %738 = vmatpush.msra.mxu0 %v71_v29  ;;  %v475_v15 = vld [vmem:[%s3815_s1 + $0xde8] sm:$0xff] }
  0x8e   :  { %758 = vmatpush.msra.mxu1 %v135_v30  ;;  %778 = vmatpush.msra.mxu2 %v199_v31  ;;  %v223_v16 = vld [vmem:[%s3815_s1 + $0x608] sm:$0xff] }
  0x8f   :  { %797 = vmatpush.msra.mxu3 %v267_v32  ;;  %739 = vmatpush.msra.mxu0 %v67_v33  ;;  %v343_v18 = vld [vmem:[%s3815_s1 + $0x9c8] sm:$0xff] }
  0x90   :  { %759 = vmatpush.msra.mxu1 %v131_v34  ;;  %779 = vmatpush.msra.mxu2 %v195_v35  ;;  %v407_v19 = vld [vmem:[%s3815_s1 + $0xbc8] sm:$0xff] }
  0x91   :  { %798 = vmatpush.msra.mxu3 %v263_v36  ;;  %740 = vmatpush.msra.mxu0 %v63_v37  ;;  %v471_v20 = vld [vmem:[%s3815_s1 + $0xdc8] sm:$0xff] }
  0x92   :  { %760 = vmatpush.msra.mxu1 %v127_v38  ;;  %780 = vmatpush.msra.mxu2 %v191_v39  ;;  %v539_v21 = vld [vmem:[%s3815_s1 + $0xfe8] sm:$0xff] }
  0x93   :  { %799 = vmatpush.msra.mxu3 %v259_v40  ;;  %741 = vmatpush.msra.mxu0 %v59_v41  ;;  %v339_v24 = vld [vmem:[%s3815_s1 + $0x9a8] sm:$0xff] }
  0x94   :  { %761 = vmatpush.msra.mxu1 %v123_v42  ;;  %781 = vmatpush.msra.mxu2 %v187_v43  ;;  %v403_v25 = vld [vmem:[%s3815_s1 + $0xba8] sm:$0xff] }
  0x95   :  { %800 = vmatpush.msra.mxu3 %v255_v44  ;;  %742 = vmatpush.msra.mxu0 %v55_v45  ;;  %v467_v26 = vld [vmem:[%s3815_s1 + $0xda8] sm:$0xff] }
  0x96   :  { %762 = vmatpush.msra.mxu1 %v119_v46  ;;  %782 = vmatpush.msra.mxu2 %v183_v47  ;;  %v535_v27 = vld [vmem:[%s3815_s1 + $0xfc8] sm:$0xff] }
  0x97   :  { %801 = vmatpush.msra.mxu3 %v251_v48  ;;  %743 = vmatpush.msra.mxu0 %v51_v49  ;;  %v335_v29 = vld [vmem:[%s3815_s1 + $0x988] sm:$0xff] }
  0x98   :  { %763 = vmatpush.msra.mxu1 %v115_v50  ;;  %783 = vmatpush.msra.mxu2 %v179_v51  ;;  %v399_v30 = vld [vmem:[%s3815_s1 + $0xb88] sm:$0xff] }
  0x99   :  { %802 = vmatpush.msra.mxu3 %v247_v52  ;;  %744 = vmatpush.msra.mxu0 %v47_v53  ;;  %v463_v31 = vld [vmem:[%s3815_s1 + $0xd88] sm:$0xff] }
  0x9a   :  { %764 = vmatpush.msra.mxu1 %v111_v54  ;;  %784 = vmatpush.msra.mxu2 %v175_v55  ;;  %v531_v32 = vld [vmem:[%s3815_s1 + $0xfa8] sm:$0xff] }
  0x9b   :  { %803 = vmatpush.msra.mxu3 %v243_v56  ;;  %745 = vmatpush.msra.mxu0 %v43_v57  ;;  %v331_v33 = vld [vmem:[%s3815_s1 + $0x968] sm:$0xff] }
  0x9c   :  { %765 = vmatpush.msra.mxu1 %v107_v58  ;;  %785 = vmatpush.msra.mxu2 %v171_v59  ;;  %v395_v34 = vld [vmem:[%s3815_s1 + $0xb68] sm:$0xff] }
  0x9d   :  { %804 = vmatpush.msra.mxu3 %v239_v60  ;;  %746 = vmatpush.msra.mxu0 %v39_v62  ;;  %v459_v35 = vld [vmem:[%s3815_s1 + $0xd68] sm:$0xff] }
  0x9e   :  { %766 = vmatpush.msra.mxu1 %v103_v63  ;;  %786 = vmatpush.msra.mxu2 %v167_v0  ;;  %v527_v36 = vld [vmem:[%s3815_s1 + $0xf88] sm:$0xff] }
  0x9f   :  { %805 = vmatpush.msra.mxu3 %v235_v1  ;;  %747 = vmatpush.msra.mxu0 %v35_v5  ;;  %v327_v37 = vld [vmem:[%s3815_s1 + $0x948] sm:$0xff] }
  0xa0   :  { %767 = vmatpush.msra.mxu1 %v99_v6  ;;  %787 = vmatpush.msra.mxu2 %v163_v7  ;;  %v391_v38 = vld [vmem:[%s3815_s1 + $0xb48] sm:$0xff] }
  0xa1   :  { %806 = vmatpush.msra.mxu3 %v231_v8  ;;  %748 = vmatpush.msra.mxu0 %v31_v9  ;;  %v455_v39 = vld [vmem:[%s3815_s1 + $0xd48] sm:$0xff] }
  0xa2   :  { %768 = vmatpush.msra.mxu1 %v95_v10  ;;  %788 = vmatpush.msra.mxu2 %v159_v11  ;;  %v523_v40 = vld [vmem:[%s3815_s1 + $0xf68] sm:$0xff] }
  0xa3   :  { %807 = vmatpush.msra.mxu3 %v227_v12  ;;  %813 = vmatpush.msrb.mxu0 %v347_v13  ;;  %v323_v41 = vld [vmem:[%s3815_s1 + $0x928] sm:$0xff] }
  0xa4   :  { %833 = vmatpush.msrb.mxu1 %v411_v14  ;;  %853 = vmatpush.msrb.mxu2 %v475_v15  ;;  %v387_v42 = vld [vmem:[%s3815_s1 + $0xb28] sm:$0xff] }
  0xa5   :  { %808 = vmatpush.msra.mxu3 %v223_v16  ;;  %814 = vmatpush.msrb.mxu0 %v343_v18  ;;  %v451_v43 = vld [vmem:[%s3815_s1 + $0xd28] sm:$0xff] }
  0xa6   :  { %834 = vmatpush.msrb.mxu1 %v407_v19  ;;  %854 = vmatpush.msrb.mxu2 %v471_v20  ;;  %v519_v44 = vld [vmem:[%s3815_s1 + $0xf48] sm:$0xff] }
  0xa7   :  { %873 = vmatpush.msrb.mxu3 %v539_v21  ;;  %815 = vmatpush.msrb.mxu0 %v339_v24  ;;  %v319_v45 = vld [vmem:[%s3815_s1 + $0x908] sm:$0xff]  ;;  %v92_v24 = vld [vmem:[%s3815_s1 + $0x1f0] sm:$0xff] }
  0xa8   :  { %835 = vmatpush.msrb.mxu1 %v403_v25  ;;  %855 = vmatpush.msrb.mxu2 %v467_v26  ;;  %v383_v46 = vld [vmem:[%s3815_s1 + $0xb08] sm:$0xff]  ;;  %v156_v25 = vld [vmem:[%s3815_s1 + $0x3f0] sm:$0xff] }
  0xa9   :  { %874 = vmatpush.msrb.mxu3 %v535_v27  ;;  %816 = vmatpush.msrb.mxu0 %v335_v29  ;;  %v447_v47 = vld [vmem:[%s3815_s1 + $0xd08] sm:$0xff]  ;;  %v220_v26 = vld [vmem:[%s3815_s1 + $0x5f0] sm:$0xff] }
  0xaa   :  { %836 = vmatpush.msrb.mxu1 %v399_v30  ;;  %856 = vmatpush.msrb.mxu2 %v463_v31  ;;  %v515_v48 = vld [vmem:[%s3815_s1 + $0xf28] sm:$0xff]  ;;  %v88_v27 = vld [vmem:[%s3815_s1 + $0x1d0] sm:$0xff] }
  0xab   :  { %875 = vmatpush.msrb.mxu3 %v531_v32  ;;  %817 = vmatpush.msrb.mxu0 %v331_v33  ;;  %v315_v49 = vld [vmem:[%s3815_s1 + $0x8e8] sm:$0xff]  ;;  %v216_v29 = vld [vmem:[%s3815_s1 + $0x5d0] sm:$0xff] }
  0xac   :  { %837 = vmatpush.msrb.mxu1 %v395_v34  ;;  %857 = vmatpush.msrb.mxu2 %v459_v35  ;;  %v379_v50 = vld [vmem:[%s3815_s1 + $0xae8] sm:$0xff]  ;;  %v148_v30 = vld [vmem:[%s3815_s1 + $0x3b0] sm:$0xff] }
  0xad   :  { %876 = vmatpush.msrb.mxu3 %v527_v36  ;;  %818 = vmatpush.msrb.mxu0 %v327_v37  ;;  %v443_v51 = vld [vmem:[%s3815_s1 + $0xce8] sm:$0xff]  ;;  %v212_v31 = vld [vmem:[%s3815_s1 + $0x5b0] sm:$0xff] }
  0xae   :  { %838 = vmatpush.msrb.mxu1 %v391_v38  ;;  %858 = vmatpush.msrb.mxu2 %v455_v39  ;;  %v511_v52 = vld [vmem:[%s3815_s1 + $0xf08] sm:$0xff]  ;;  %v280_v32 = vld [vmem:[%s3815_s1 + $0x7d0] sm:$0xff] }
  0xaf   :  { %877 = vmatpush.msrb.mxu3 %v523_v40  ;;  %819 = vmatpush.msrb.mxu0 %v323_v41  ;;  %v311_v53 = vld [vmem:[%s3815_s1 + $0x8c8] sm:$0xff]  ;;  %v80_v33 = vld [vmem:[%s3815_s1 + $0x190] sm:$0xff] }
  0xb0   :  { %839 = vmatpush.msrb.mxu1 %v387_v42  ;;  %859 = vmatpush.msrb.mxu2 %v451_v43  ;;  %v375_v54 = vld [vmem:[%s3815_s1 + $0xac8] sm:$0xff]  ;;  %v144_v34 = vld [vmem:[%s3815_s1 + $0x390] sm:$0xff] }
  0xb1   :  { %878 = vmatpush.msrb.mxu3 %v519_v44  ;;  %820 = vmatpush.msrb.mxu0 %v319_v45  ;;  %v439_v55 = vld [vmem:[%s3815_s1 + $0xcc8] sm:$0xff]  ;;  %v208_v35 = vld [vmem:[%s3815_s1 + $0x590] sm:$0xff] }
  0xb2   :  { %840 = vmatpush.msrb.mxu1 %v383_v46  ;;  %860 = vmatpush.msrb.mxu2 %v447_v47  ;;  %v507_v56 = vld [vmem:[%s3815_s1 + $0xee8] sm:$0xff]  ;;  %v276_v36 = vld [vmem:[%s3815_s1 + $0x7b0] sm:$0xff] }
  0xb3   :  { %879 = vmatpush.msrb.mxu3 %v515_v48  ;;  %821 = vmatpush.msrb.mxu0 %v315_v49  ;;  %v307_v57 = vld [vmem:[%s3815_s1 + $0x8a8] sm:$0xff]  ;;  %v76_v37 = vld [vmem:[%s3815_s1 + $0x170] sm:$0xff] }
  0xb4   :  { %841 = vmatpush.msrb.mxu1 %v379_v50  ;;  %861 = vmatpush.msrb.mxu2 %v443_v51  ;;  %v371_v58 = vld [vmem:[%s3815_s1 + $0xaa8] sm:$0xff]  ;;  %v140_v38 = vld [vmem:[%s3815_s1 + $0x370] sm:$0xff] }
  0xb5   :  { %880 = vmatpush.msrb.mxu3 %v511_v52  ;;  %822 = vmatpush.msrb.mxu0 %v311_v53  ;;  %v435_v59 = vld [vmem:[%s3815_s1 + $0xca8] sm:$0xff]  ;;  %v204_v39 = vld [vmem:[%s3815_s1 + $0x570] sm:$0xff] }
  0xb6   :  { %842 = vmatpush.msrb.mxu1 %v375_v54  ;;  %v503_v60 = vld [vmem:[%s3815_s1 + $0xec8] sm:$0xff]  ;;  %862 = vmatpush.msrb.mxu2 %v439_v55  ;;  %v72_v40 = vld [vmem:[%s3815_s1 + $0x150] sm:$0xff] }
  0xb7   :  { %881 = vmatpush.msrb.mxu3 %v507_v56  ;;  %v303_v62 = vld [vmem:[%s3815_s1 + $0x888] sm:$0xff]  ;;  %823 = vmatpush.msrb.mxu0 %v307_v57  ;;  %v136_v41 = vld [vmem:[%s3815_s1 + $0x350] sm:$0xff] }
  0xb8   :  { %v367_v63 = vld [vmem:[%s3815_s1 + $0xa88] sm:$0xff]  ;;  %843 = vmatpush.msrb.mxu1 %v371_v58  ;;  %863 = vmatpush.msrb.mxu2 %v435_v59  ;;  %v268_v42 = vld [vmem:[%s3815_s1 + $0x770] sm:$0xff] }
  0xb9   :  { %v431_v0 = vld [vmem:[%s3815_s1 + $0xc88] sm:$0xff]  ;;  %882 = vmatpush.msrb.mxu3 %v503_v60  ;;  %824 = vmatpush.msrb.mxu0 %v303_v62  ;;  %v132_v43 = vld [vmem:[%s3815_s1 + $0x330] sm:$0xff] }
  0xba   :  { %v499_v1 = vld [vmem:[%s3815_s1 + $0xea8] sm:$0xff]  ;;  %844 = vmatpush.msrb.mxu1 %v367_v63  ;;  %864 = vmatpush.msrb.mxu2 %v431_v0  ;;  %v196_v44 = vld [vmem:[%s3815_s1 + $0x530] sm:$0xff] }
  0xbb   :  { %v299_v5 = vld [vmem:[%s3815_s1 + $0x868] sm:$0xff]  ;;  %883 = vmatpush.msrb.mxu3 %v499_v1  ;;  %789 = vmatmul.f32.vlgmr.msra.gmra.mxu2 %v2054_v61  ;;  %v264_v45 = vld [vmem:[%s3815_s1 + $0x750] sm:$0xff] }
  0xbc   :  { %v363_v6 = vld [vmem:[%s3815_s1 + $0xa68] sm:$0xff]  ;;  %825 = vmatpush.msrb.mxu0 %v299_v5  ;;  %769 = vmatmul.f32.vlgmr.msra.gmra.mxu1 %v2071_v3  ;;  %v284_v3 = vld [vmem:[%s3815_s1 + $0x7f0] sm:$0xff] }
  0xbd   :  { %v427_v7 = vld [vmem:[%s3815_s1 + $0xc68] sm:$0xff]  ;;  %845 = vmatpush.msrb.mxu1 %v363_v6  ;;  %749 = vmatmul.f32.vlgmr.msra.gmra.mxu0 %v2068_v2  ;;  %v152_v2 = vld [vmem:[%s3815_s1 + $0x3d0] sm:$0xff] }
  0xbe   :  { %v495_v8 = vld [vmem:[%s3815_s1 + $0xe88] sm:$0xff]  ;;  %865 = vmatpush.msrb.mxu2 %v427_v7  ;;  %809 = vmatmul.f32.vlgmr.msra.gmra.mxu3 %v2073_v4  ;;  %v84_v4 = vld [vmem:[%s3815_s1 + $0x1b0] sm:$0xff] }
  0xbf   :  { %v295_v9 = vld [vmem:[%s3815_s1 + $0x848] sm:$0xff]  ;;  %884 = vmatpush.msrb.mxu3 %v495_v8  ;;  %v128_v46 = vld [vmem:[%s3815_s1 + $0x310] sm:$0xff] }
  0xc0   :  { %v359_v10 = vld [vmem:[%s3815_s1 + $0xa48] sm:$0xff]  ;;  %826 = vmatpush.msrb.mxu0 %v295_v9  ;;  %v192_v47 = vld [vmem:[%s3815_s1 + $0x510] sm:$0xff] }
  0xc1   :  { %v423_v11 = vld [vmem:[%s3815_s1 + $0xc48] sm:$0xff]  ;;  %846 = vmatpush.msrb.mxu1 %v359_v10  ;;  %v260_v48 = vld [vmem:[%s3815_s1 + $0x730] sm:$0xff] }
  0xc2   :  { %v491_v12 = vld [vmem:[%s3815_s1 + $0xe68] sm:$0xff]  ;;  %866 = vmatpush.msrb.mxu2 %v423_v11  ;;  %v60_v49 = vld [vmem:[%s3815_s1 + $0xf0] sm:$0xff] }
  0xc3   :  { %v291_v13 = vld [vmem:[%s3815_s1 + $0x828] sm:$0xff]  ;;  %885 = vmatpush.msrb.mxu3 %v491_v12  ;;  %v124_v50 = vld [vmem:[%s3815_s1 + $0x2f0] sm:$0xff] }
  0xc4   :  { %v355_v14 = vld [vmem:[%s3815_s1 + $0xa28] sm:$0xff]  ;;  %827 = vmatpush.msrb.mxu0 %v291_v13  ;;  %v188_v51 = vld [vmem:[%s3815_s1 + $0x4f0] sm:$0xff] }
  0xc5   :  { %v419_v15 = vld [vmem:[%s3815_s1 + $0xc28] sm:$0xff]  ;;  %847 = vmatpush.msrb.mxu1 %v355_v14  ;;  %v256_v52 = vld [vmem:[%s3815_s1 + $0x710] sm:$0xff] }
  0xc6   :  { %v487_v16 = vld [vmem:[%s3815_s1 + $0xe48] sm:$0xff]  ;;  %867 = vmatpush.msrb.mxu2 %v419_v15  ;;  %v56_v53 = vld [vmem:[%s3815_s1 + $0xd0] sm:$0xff] }
  0xc7   :  { %v287_v18 = vld [vmem:[%s3815_s1 + $0x808] sm:$0xff]  ;;  %886 = vmatpush.msrb.mxu3 %v487_v16  ;;  %v120_v54 = vld [vmem:[%s3815_s1 + $0x2d0] sm:$0xff] }
  0xc8   :  { %v351_v19 = vld [vmem:[%s3815_s1 + $0xa08] sm:$0xff]  ;;  %828 = vmatpush.msrb.mxu0 %v287_v18  ;;  %v184_v55 = vld [vmem:[%s3815_s1 + $0x4d0] sm:$0xff] }
  0xc9   :  { %v415_v20 = vld [vmem:[%s3815_s1 + $0xc08] sm:$0xff]  ;;  %848 = vmatpush.msrb.mxu1 %v351_v19  ;;  %829 = vmatmul.f32.vlgmr.msrb.gmra.mxu0 %v2128_v22  ;;  %v200_v22 = vld [vmem:[%s3815_s1 + $0x550] sm:$0xff] }
  0xca   :  { %v483_v21 = vld [vmem:[%s3815_s1 + $0xe28] sm:$0xff]  ;;  %868 = vmatpush.msrb.mxu2 %v415_v20  ;;  %893 = vmatpush.msra.mxu0 %v92_v24  ;;  %v252_v56 = vld [vmem:[%s3815_s1 + $0x6f0] sm:$0xff] }
  0xcb   :  { %887 = vmatpush.msrb.mxu3 %v483_v21  ;;  %v479_v61 = vld [vmem:[%s3815_s1 + $0xe08] sm:$0xff]  ;;  %913 = vmatpush.msra.mxu1 %v156_v25  ;;  %v52_v57 = vld [vmem:[%s3815_s1 + $0xb0] sm:$0xff] }
  0xcc   :  { %933 = vmatpush.msra.mxu2 %v220_v26  ;;  %894 = vmatpush.msra.mxu0 %v88_v27  ;;  %v116_v58 = vld [vmem:[%s3815_s1 + $0x2b0] sm:$0xff] }
  0xcd   :  { %888 = vmatpush.msrb.mxu3 %v479_v61  ;;  %914 = vmatpush.msra.mxu1 %v152_v2  ;;  %v180_v59 = vld [vmem:[%s3815_s1 + $0x4b0] sm:$0xff] }
  0xce   :  { %934 = vmatpush.msra.mxu2 %v216_v29  ;;  %895 = vmatpush.msra.mxu0 %v84_v4  ;;  %v248_v60 = vld [vmem:[%s3815_s1 + $0x6d0] sm:$0xff] }
  0xcf   :  { %953 = vmatpush.msra.mxu3 %v284_v3  ;;  %915 = vmatpush.msra.mxu1 %v148_v30  ;;  %v48_v62 = vld [vmem:[%s3815_s1 + $0x90] sm:$0xff] }
  0xd0   :  { %935 = vmatpush.msra.mxu2 %v212_v31  ;;  %896 = vmatpush.msra.mxu0 %v80_v33  ;;  %v112_v63 = vld [vmem:[%s3815_s1 + $0x290] sm:$0xff] }
  0xd1   :  { %954 = vmatpush.msra.mxu3 %v280_v32  ;;  %869 = vmatmul.f32.vlgmr.msrb.gmra.mxu2 %v2114_v17  ;;  %v272_v17 = vld [vmem:[%s3815_s1 + $0x790] sm:$0xff] }
  0xd2   :  { %916 = vmatpush.msra.mxu1 %v144_v34  ;;  %936 = vmatpush.msra.mxu2 %v208_v35  ;;  %v176_v0 = vld [vmem:[%s3815_s1 + $0x490] sm:$0xff] }
  0xd3   :  { %955 = vmatpush.msra.mxu3 %v276_v36  ;;  %897 = vmatpush.msra.mxu0 %v76_v37  ;;  %v244_v1 = vld [vmem:[%s3815_s1 + $0x6b0] sm:$0xff] }
  0xd4   :  { %889 = vmatmul.f32.vlgmr.msrb.gmra.mxu3 %v2131_v23  ;;  %917 = vmatpush.msra.mxu1 %v140_v38  ;;  %v68_v23 = vld [vmem:[%s3815_s1 + $0x130] sm:$0xff] }
  0xd5   :  { %937 = vmatpush.msra.mxu2 %v204_v39  ;;  %956 = vmatpush.msra.mxu3 %v272_v17  ;;  %v44_v5 = vld [vmem:[%s3815_s1 + $0x70] sm:$0xff] }
  0xd6   :  { %849 = vmatmul.f32.vlgmr.msrb.gmra.mxu1 %v2146_v28  ;;  %898 = vmatpush.msra.mxu0 %v72_v40  ;;  %v64_v28 = vld [vmem:[%s3815_s1 + $0x110] sm:$0xff] }
  0xd7   :  { %918 = vmatpush.msra.mxu1 %v136_v41  ;;  %938 = vmatpush.msra.mxu2 %v200_v22  ;;  %v108_v6 = vld [vmem:[%s3815_s1 + $0x270] sm:$0xff] }
  0xd8   :  { %957 = vmatpush.msra.mxu3 %v268_v42  ;;  %899 = vmatpush.msra.mxu0 %v68_v23  ;;  %v172_v7 = vld [vmem:[%s3815_s1 + $0x470] sm:$0xff] }
  0xd9   :  { %919 = vmatpush.msra.mxu1 %v132_v43  ;;  %939 = vmatpush.msra.mxu2 %v196_v44  ;;  %v240_v8 = vld [vmem:[%s3815_s1 + $0x690] sm:$0xff] }
  0xda   :  { %958 = vmatpush.msra.mxu3 %v264_v45  ;;  %900 = vmatpush.msra.mxu0 %v64_v28  ;;  %v40_v9 = vld [vmem:[%s3815_s1 + $0x50] sm:$0xff] }
  0xdb   :  { %920 = vmatpush.msra.mxu1 %v128_v46  ;;  %940 = vmatpush.msra.mxu2 %v192_v47  ;;  %v104_v10 = vld [vmem:[%s3815_s1 + $0x250] sm:$0xff] }
  0xdc   :  { %959 = vmatpush.msra.mxu3 %v260_v48  ;;  %901 = vmatpush.msra.mxu0 %v60_v49  ;;  %v168_v11 = vld [vmem:[%s3815_s1 + $0x450] sm:$0xff] }
  0xdd   :  { %921 = vmatpush.msra.mxu1 %v124_v50  ;;  %941 = vmatpush.msra.mxu2 %v188_v51  ;;  %v236_v12 = vld [vmem:[%s3815_s1 + $0x670] sm:$0xff] }
  0xde   :  { %960 = vmatpush.msra.mxu3 %v256_v52  ;;  %902 = vmatpush.msra.mxu0 %v56_v53  ;;  %v36_v13 = vld [vmem:[%s3815_s1 + $0x30] sm:$0xff] }
  0xdf   :  { %922 = vmatpush.msra.mxu1 %v120_v54  ;;  %942 = vmatpush.msra.mxu2 %v184_v55  ;;  %v100_v14 = vld [vmem:[%s3815_s1 + $0x230] sm:$0xff] }
  0xe0   :  { %961 = vmatpush.msra.mxu3 %v252_v56  ;;  %903 = vmatpush.msra.mxu0 %v52_v57  ;;  %v164_v15 = vld [vmem:[%s3815_s1 + $0x430] sm:$0xff] }
  0xe1   :  { %923 = vmatpush.msra.mxu1 %v116_v58  ;;  %943 = vmatpush.msra.mxu2 %v180_v59  ;;  %v232_v16 = vld [vmem:[%s3815_s1 + $0x650] sm:$0xff] }
  0xe2   :  { %962 = vmatpush.msra.mxu3 %v248_v60  ;;  %904 = vmatpush.msra.mxu0 %v48_v62  ;;  %v32_v18 = vld [vmem:[%s3815_s1 + $0x10] sm:$0xff] }
  0xe3   :  { %924 = vmatpush.msra.mxu1 %v112_v63  ;;  %944 = vmatpush.msra.mxu2 %v176_v0  ;;  %v96_v19 = vld [vmem:[%s3815_s1 + $0x210] sm:$0xff] }
  0xe4   :  { %963 = vmatpush.msra.mxu3 %v244_v1  ;;  %905 = vmatpush.msra.mxu0 %v44_v5  ;;  %v160_v20 = vld [vmem:[%s3815_s1 + $0x410] sm:$0xff] }
  0xe5   :  { %925 = vmatpush.msra.mxu1 %v108_v6  ;;  %945 = vmatpush.msra.mxu2 %v172_v7  ;;  %v228_v21 = vld [vmem:[%s3815_s1 + $0x630] sm:$0xff] }
  0xe6   :  { %964 = vmatpush.msra.mxu3 %v240_v8  ;;  %906 = vmatpush.msra.mxu0 %v40_v9  ;;  %v348_v24 = vld [vmem:[%s3815_s1 + $0x9f0] sm:$0xff] }
  0xe7   :  { %926 = vmatpush.msra.mxu1 %v104_v10  ;;  %946 = vmatpush.msra.mxu2 %v168_v11  ;;  %v412_v25 = vld [vmem:[%s3815_s1 + $0xbf0] sm:$0xff] }
  0xe8   :  { %965 = vmatpush.msra.mxu3 %v236_v12  ;;  %907 = vmatpush.msra.mxu0 %v36_v13  ;;  %v476_v26 = vld [vmem:[%s3815_s1 + $0xdf0] sm:$0xff]  ;;  %v2842_v13 = vld.sshfl [vmem:[#allocation1] sm:$0xff pattern:$0x73625140] }
  0xe9   :  { %927 = vmatpush.msra.mxu1 %v100_v14  ;;  %947 = vmatpush.msra.mxu2 %v164_v15  ;;  %v224_v61 = vld [vmem:[%s3815_s1 + $0x610] sm:$0xff]  ;;  %v2848_v15 = vld.sshfl [vmem:[#allocation1 + $0x18] sm:$0xff pattern:$0x73625140] }
  0xea   :  { %966 = vmatpush.msra.mxu3 %v232_v16  ;;  %908 = vmatpush.msra.mxu0 %v32_v18  ;;  %v344_v27 = vld [vmem:[%s3815_s1 + $0x9d0] sm:$0xff] }
  0xeb   :  { %928 = vmatpush.msra.mxu1 %v96_v19  ;;  %948 = vmatpush.msra.mxu2 %v160_v20  ;;  %v408_v2 = vld [vmem:[%s3815_s1 + $0xbd0] sm:$0xff] }
  0xec   :  { %967 = vmatpush.msra.mxu3 %v228_v21  ;;  %973 = vmatpush.msrb.mxu0 %v348_v24  ;;  %v472_v29 = vld [vmem:[%s3815_s1 + $0xdd0] sm:$0xff]  ;;  %v2863_v21 = vld.sshfl [vmem:[#allocation1 + $0x8] sm:$0xff pattern:$0x73625140] }
  0xed   :  { %993 = vmatpush.msrb.mxu1 %v412_v25  ;;  %v540_v3 = vld [vmem:[%s3815_s1 + $0xff0] sm:$0xff]  ;;  %1013 = vmatpush.msrb.mxu2 %v476_v26 }
  0xee   :  { %968 = vmatpush.msra.mxu3 %v224_v61  ;;  %v340_v4 = vld [vmem:[%s3815_s1 + $0x9b0] sm:$0xff]  ;;  %974 = vmatpush.msrb.mxu0 %v344_v27  ;;  %v93_v27 = vld [vmem:[%s3815_s1 + $0x1f8] sm:$0xff] }
  0xef   :  { %v404_v30 = vld [vmem:[%s3815_s1 + $0xbb0] sm:$0xff]  ;;  %994 = vmatpush.msrb.mxu1 %v408_v2  ;;  %1014 = vmatpush.msrb.mxu2 %v472_v29  ;;  %v157_v2 = vld [vmem:[%s3815_s1 + $0x3f8] sm:$0xff] }
  0xf0   :  { %v468_v31 = vld [vmem:[%s3815_s1 + $0xdb0] sm:$0xff]  ;;  %1033 = vmatpush.msrb.mxu3 %v540_v3  ;;  %975 = vmatpush.msrb.mxu0 %v340_v4  ;;  %v221_v29 = vld [vmem:[%s3815_s1 + $0x5f8] sm:$0xff] }
  0xf1   :  { %v536_v32 = vld [vmem:[%s3815_s1 + $0xfd0] sm:$0xff]  ;;  %995 = vmatpush.msrb.mxu1 %v404_v30  ;;  %1015 = vmatpush.msrb.mxu2 %v468_v31  ;;  %v89_v30 = vld [vmem:[%s3815_s1 + $0x1d8] sm:$0xff] }
  0xf2   :  { %v336_v33 = vld [vmem:[%s3815_s1 + $0x990] sm:$0xff]  ;;  %1034 = vmatpush.msrb.mxu3 %v536_v32  ;;  %909 = vmatmul.f32.vlgmr.msra.gmra.mxu0 %v2842_v13  ;;  %v153_v31 = vld [vmem:[%s3815_s1 + $0x3d8] sm:$0xff] }
  0xf3   :  { %v400_v34 = vld [vmem:[%s3815_s1 + $0xb90] sm:$0xff]  ;;  %976 = vmatpush.msrb.mxu0 %v336_v33  ;;  %969 = vmatmul.f32.vlgmr.msra.gmra.mxu3 %v2848_v15  ;;  %v217_v32 = vld [vmem:[%s3815_s1 + $0x5d8] sm:$0xff]  ;;  %v2902_v33 = vld.sshfl [vmem:[#allocation1 + $0x20] sm:$0xff pattern:$0x73625140] }
  0xf4   :  { %v464_v35 = vld [vmem:[%s3815_s1 + $0xd90] sm:$0xff]  ;;  %996 = vmatpush.msrb.mxu1 %v400_v34  ;;  %v285_v34 = vld [vmem:[%s3815_s1 + $0x7f8] sm:$0xff] }
  0xf5   :  { %v532_v36 = vld [vmem:[%s3815_s1 + $0xfb0] sm:$0xff]  ;;  %1016 = vmatpush.msrb.mxu2 %v464_v35  ;;  %929 = vmatmul.f32.vlgmr.msra.gmra.mxu1 %v2863_v21  ;;  %v2908_v35 = vld.sshfl [vmem:[#allocation1 + $0x38] sm:$0xff pattern:$0x73625140] }
  0xf6   :  { %v332_v37 = vld [vmem:[%s3815_s1 + $0x970] sm:$0xff]  ;;  %1035 = vmatpush.msrb.mxu3 %v532_v36  ;;  %v85_v36 = vld [vmem:[%s3815_s1 + $0x1b8] sm:$0xff] }
  0xf7   :  { %v396_v38 = vld [vmem:[%s3815_s1 + $0xb70] sm:$0xff]  ;;  %977 = vmatpush.msrb.mxu0 %v332_v37  ;;  %v149_v37 = vld [vmem:[%s3815_s1 + $0x3b8] sm:$0xff] }
  0xf8   :  { %v460_v39 = vld [vmem:[%s3815_s1 + $0xd70] sm:$0xff]  ;;  %997 = vmatpush.msrb.mxu1 %v396_v38  ;;  %v213_v38 = vld [vmem:[%s3815_s1 + $0x5b8] sm:$0xff] }
  0xf9   :  { %v528_v17 = vld [vmem:[%s3815_s1 + $0xf90] sm:$0xff]  ;;  %1017 = vmatpush.msrb.mxu2 %v460_v39  ;;  %v281_v39 = vld [vmem:[%s3815_s1 + $0x7d8] sm:$0xff] }
  0xfa   :  { %v328_v40 = vld [vmem:[%s3815_s1 + $0x950] sm:$0xff]  ;;  %1036 = vmatpush.msrb.mxu3 %v528_v17  ;;  %v2923_v17 = vld.sshfl [vmem:[#allocation1 + $0x28] sm:$0xff pattern:$0x73625140] }
  0xfb   :  { %v392_v41 = vld [vmem:[%s3815_s1 + $0xb50] sm:$0xff]  ;;  %978 = vmatpush.msrb.mxu0 %v328_v40  ;;  %v81_v40 = vld [vmem:[%s3815_s1 + $0x198] sm:$0xff] }
  0xfc   :  { %v456_v22 = vld [vmem:[%s3815_s1 + $0xd50] sm:$0xff]  ;;  %998 = vmatpush.msrb.mxu1 %v392_v41  ;;  %v145_v41 = vld [vmem:[%s3815_s1 + $0x398] sm:$0xff] }
  0xfd   :  { %v524_v42 = vld [vmem:[%s3815_s1 + $0xf70] sm:$0xff]  ;;  %1018 = vmatpush.msrb.mxu2 %v456_v22  ;;  %v209_v22 = vld [vmem:[%s3815_s1 + $0x598] sm:$0xff] }
  0xfe   :  { %v324_v23 = vld [vmem:[%s3815_s1 + $0x930] sm:$0xff]  ;;  %1037 = vmatpush.msrb.mxu3 %v524_v42  ;;  %v277_v42 = vld [vmem:[%s3815_s1 + $0x7b8] sm:$0xff] }
  0xff   :  { %v388_v43 = vld [vmem:[%s3815_s1 + $0xb30] sm:$0xff]  ;;  %979 = vmatpush.msrb.mxu0 %v324_v23  ;;  %v77_v23 = vld [vmem:[%s3815_s1 + $0x178] sm:$0xff] }
 0x100   :  { %v452_v44 = vld [vmem:[%s3815_s1 + $0xd30] sm:$0xff]  ;;  %999 = vmatpush.msrb.mxu1 %v388_v43  ;;  %v141_v43 = vld [vmem:[%s3815_s1 + $0x378] sm:$0xff] }
 0x101   :  { %v520_v45 = vld [vmem:[%s3815_s1 + $0xf50] sm:$0xff]  ;;  %1019 = vmatpush.msrb.mxu2 %v452_v44  ;;  %v205_v44 = vld [vmem:[%s3815_s1 + $0x578] sm:$0xff] }
 0x102   :  { %v320_v28 = vld [vmem:[%s3815_s1 + $0x910] sm:$0xff]  ;;  %1038 = vmatpush.msrb.mxu3 %v520_v45  ;;  %v273_v45 = vld [vmem:[%s3815_s1 + $0x798] sm:$0xff] }
 0x103   :  { %v384_v46 = vld [vmem:[%s3815_s1 + $0xb10] sm:$0xff]  ;;  %980 = vmatpush.msrb.mxu0 %v320_v28  ;;  %v73_v28 = vld [vmem:[%s3815_s1 + $0x158] sm:$0xff] }
 0x104   :  { %v448_v47 = vld [vmem:[%s3815_s1 + $0xd10] sm:$0xff]  ;;  %1000 = vmatpush.msrb.mxu1 %v384_v46  ;;  %v137_v46 = vld [vmem:[%s3815_s1 + $0x358] sm:$0xff] }
 0x105   :  { %v516_v48 = vld [vmem:[%s3815_s1 + $0xf30] sm:$0xff]  ;;  %1020 = vmatpush.msrb.mxu2 %v448_v47  ;;  %v201_v47 = vld [vmem:[%s3815_s1 + $0x558] sm:$0xff] }
 0x106   :  { %v316_v49 = vld [vmem:[%s3815_s1 + $0x8f0] sm:$0xff]  ;;  %1039 = vmatpush.msrb.mxu3 %v516_v48  ;;  %v269_v48 = vld [vmem:[%s3815_s1 + $0x778] sm:$0xff] }
 0x107   :  { %v380_v50 = vld [vmem:[%s3815_s1 + $0xaf0] sm:$0xff]  ;;  %981 = vmatpush.msrb.mxu0 %v316_v49  ;;  %v69_v49 = vld [vmem:[%s3815_s1 + $0x138] sm:$0xff] }
 0x108   :  { %v444_v51 = vld [vmem:[%s3815_s1 + $0xcf0] sm:$0xff]  ;;  %1001 = vmatpush.msrb.mxu1 %v380_v50  ;;  %v133_v50 = vld [vmem:[%s3815_s1 + $0x338] sm:$0xff] }
 0x109   :  { %v512_v52 = vld [vmem:[%s3815_s1 + $0xf10] sm:$0xff]  ;;  %1021 = vmatpush.msrb.mxu2 %v444_v51  ;;  %v197_v51 = vld [vmem:[%s3815_s1 + $0x538] sm:$0xff] }
 0x10a   :  { %v312_v53 = vld [vmem:[%s3815_s1 + $0x8d0] sm:$0xff]  ;;  %1040 = vmatpush.msrb.mxu3 %v512_v52  ;;  %v265_v52 = vld [vmem:[%s3815_s1 + $0x758] sm:$0xff] }
 0x10b   :  { %v376_v54 = vld [vmem:[%s3815_s1 + $0xad0] sm:$0xff]  ;;  %982 = vmatpush.msrb.mxu0 %v312_v53  ;;  %v65_v53 = vld [vmem:[%s3815_s1 + $0x118] sm:$0xff] }
 0x10c   :  { %v440_v55 = vld [vmem:[%s3815_s1 + $0xcd0] sm:$0xff]  ;;  %1002 = vmatpush.msrb.mxu1 %v376_v54  ;;  %v129_v54 = vld [vmem:[%s3815_s1 + $0x318] sm:$0xff] }
 0x10d   :  { %v508_v56 = vld [vmem:[%s3815_s1 + $0xef0] sm:$0xff]  ;;  %1022 = vmatpush.msrb.mxu2 %v440_v55  ;;  %v193_v55 = vld [vmem:[%s3815_s1 + $0x518] sm:$0xff] }
 0x10e   :  { %v308_v57 = vld [vmem:[%s3815_s1 + $0x8b0] sm:$0xff]  ;;  %1041 = vmatpush.msrb.mxu3 %v508_v56  ;;  %v261_v56 = vld [vmem:[%s3815_s1 + $0x738] sm:$0xff] }
 0x10f   :  { %v372_v58 = vld [vmem:[%s3815_s1 + $0xab0] sm:$0xff]  ;;  %983 = vmatpush.msrb.mxu0 %v308_v57  ;;  %v61_v57 = vld [vmem:[%s3815_s1 + $0xf8] sm:$0xff] }
 0x110   :  { %v436_v59 = vld [vmem:[%s3815_s1 + $0xcb0] sm:$0xff]  ;;  %1003 = vmatpush.msrb.mxu1 %v372_v58  ;;  %v125_v58 = vld [vmem:[%s3815_s1 + $0x2f8] sm:$0xff] }
 0x111   :  { %v504_v60 = vld [vmem:[%s3815_s1 + $0xed0] sm:$0xff]  ;;  %1023 = vmatpush.msrb.mxu2 %v436_v59  ;;  %v189_v59 = vld [vmem:[%s3815_s1 + $0x4f8] sm:$0xff] }
 0x112   :  { %v304_v62 = vld [vmem:[%s3815_s1 + $0x890] sm:$0xff]  ;;  %1042 = vmatpush.msrb.mxu3 %v504_v60  ;;  %v257_v60 = vld [vmem:[%s3815_s1 + $0x718] sm:$0xff] }
 0x113   :  { %v368_v63 = vld [vmem:[%s3815_s1 + $0xa90] sm:$0xff]  ;;  %984 = vmatpush.msrb.mxu0 %v304_v62  ;;  %v57_v62 = vld [vmem:[%s3815_s1 + $0xd8] sm:$0xff] }
 0x114   :  { %v432_v0 = vld [vmem:[%s3815_s1 + $0xc90] sm:$0xff]  ;;  %1004 = vmatpush.msrb.mxu1 %v368_v63  ;;  %v121_v63 = vld [vmem:[%s3815_s1 + $0x2d8] sm:$0xff] }
 0x115   :  { %v500_v1 = vld [vmem:[%s3815_s1 + $0xeb0] sm:$0xff]  ;;  %1024 = vmatpush.msrb.mxu2 %v432_v0  ;;  %v185_v0 = vld [vmem:[%s3815_s1 + $0x4d8] sm:$0xff] }
 0x116   :  { %v300_v5 = vld [vmem:[%s3815_s1 + $0x870] sm:$0xff]  ;;  %1043 = vmatpush.msrb.mxu3 %v500_v1  ;;  %v253_v1 = vld [vmem:[%s3815_s1 + $0x6f8] sm:$0xff] }
 0x117   :  { %v364_v6 = vld [vmem:[%s3815_s1 + $0xa70] sm:$0xff]  ;;  %985 = vmatpush.msrb.mxu0 %v300_v5  ;;  %v53_v5 = vld [vmem:[%s3815_s1 + $0xb8] sm:$0xff] }
 0x118   :  { %v428_v7 = vld [vmem:[%s3815_s1 + $0xc70] sm:$0xff]  ;;  %1005 = vmatpush.msrb.mxu1 %v364_v6  ;;  %v117_v6 = vld [vmem:[%s3815_s1 + $0x2b8] sm:$0xff] }
 0x119   :  { %v496_v8 = vld [vmem:[%s3815_s1 + $0xe90] sm:$0xff]  ;;  %1025 = vmatpush.msrb.mxu2 %v428_v7  ;;  %v181_v7 = vld [vmem:[%s3815_s1 + $0x4b8] sm:$0xff] }
 0x11a   :  { %v2830_v9 = vld.sshfl [vmem:[#allocation1 + $0x10] sm:$0xff pattern:$0x73625140]  ;;  %1044 = vmatpush.msrb.mxu3 %v496_v8  ;;  %v249_v8 = vld [vmem:[%s3815_s1 + $0x6d8] sm:$0xff] }
 0x11b   :  { %949 = vmatmul.f32.vlgmr.msra.gmra.mxu2 %v2830_v9  ;;  %v296_v10 = vld [vmem:[%s3815_s1 + $0x850] sm:$0xff] }
 0x11c   :  { %v360_v11 = vld [vmem:[%s3815_s1 + $0xa50] sm:$0xff]  ;;  %986 = vmatpush.msrb.mxu0 %v296_v10  ;;  %v49_v10 = vld [vmem:[%s3815_s1 + $0x98] sm:$0xff] }
 0x11d   :  { %v424_v12 = vld [vmem:[%s3815_s1 + $0xc50] sm:$0xff]  ;;  %1006 = vmatpush.msrb.mxu1 %v360_v11  ;;  %v113_v11 = vld [vmem:[%s3815_s1 + $0x298] sm:$0xff] }
 0x11e   :  { %v492_v14 = vld [vmem:[%s3815_s1 + $0xe70] sm:$0xff]  ;;  %1026 = vmatpush.msrb.mxu2 %v424_v12  ;;  %v177_v12 = vld [vmem:[%s3815_s1 + $0x498] sm:$0xff] }
 0x11f   :  { %v292_v16 = vld [vmem:[%s3815_s1 + $0x830] sm:$0xff]  ;;  %1045 = vmatpush.msrb.mxu3 %v492_v14  ;;  %v245_v14 = vld [vmem:[%s3815_s1 + $0x6b8] sm:$0xff] }
 0x120   :  { %v356_v18 = vld [vmem:[%s3815_s1 + $0xa30] sm:$0xff]  ;;  %987 = vmatpush.msrb.mxu0 %v292_v16  ;;  %v45_v16 = vld [vmem:[%s3815_s1 + $0x78] sm:$0xff] }
 0x121   :  { %v420_v19 = vld [vmem:[%s3815_s1 + $0xc30] sm:$0xff]  ;;  %1007 = vmatpush.msrb.mxu1 %v356_v18  ;;  %v109_v18 = vld [vmem:[%s3815_s1 + $0x278] sm:$0xff] }
 0x122   :  { %v488_v20 = vld [vmem:[%s3815_s1 + $0xe50] sm:$0xff]  ;;  %1027 = vmatpush.msrb.mxu2 %v420_v19  ;;  %v173_v19 = vld [vmem:[%s3815_s1 + $0x478] sm:$0xff] }
 0x123   :  { %v288_v24 = vld [vmem:[%s3815_s1 + $0x810] sm:$0xff]  ;;  %1046 = vmatpush.msrb.mxu3 %v488_v20  ;;  %v241_v20 = vld [vmem:[%s3815_s1 + $0x698] sm:$0xff] }
 0x124   :  { %v352_v25 = vld [vmem:[%s3815_s1 + $0xa10] sm:$0xff]  ;;  %988 = vmatpush.msrb.mxu0 %v288_v24  ;;  %v41_v24 = vld [vmem:[%s3815_s1 + $0x58] sm:$0xff] }
 0x125   :  { %v416_v26 = vld [vmem:[%s3815_s1 + $0xc10] sm:$0xff]  ;;  %1008 = vmatpush.msrb.mxu1 %v352_v25  ;;  %989 = vmatmul.f32.vlgmr.msrb.gmra.mxu0 %v2902_v33  ;;  %v105_v25 = vld [vmem:[%s3815_s1 + $0x258] sm:$0xff] }
 0x126   :  { %v484_v61 = vld [vmem:[%s3815_s1 + $0xe30] sm:$0xff]  ;;  %1028 = vmatpush.msrb.mxu2 %v416_v26  ;;  %1053 = vmatpush.msra.mxu0 %v93_v27  ;;  %v169_v26 = vld [vmem:[%s3815_s1 + $0x458] sm:$0xff] }
 0x127   :  { %1047 = vmatpush.msrb.mxu3 %v484_v61  ;;  %v480_v3 = vld [vmem:[%s3815_s1 + $0xe10] sm:$0xff]  ;;  %1073 = vmatpush.msra.mxu1 %v157_v2  ;;  %v237_v61 = vld [vmem:[%s3815_s1 + $0x678] sm:$0xff] }
 0x128   :  { %v2890_v4 = vld.sshfl [vmem:[#allocation1 + $0x30] sm:$0xff pattern:$0x73625140]  ;;  %1093 = vmatpush.msra.mxu2 %v221_v29  ;;  %1054 = vmatpush.msra.mxu0 %v89_v30  ;;  %v37_v27 = vld [vmem:[%s3815_s1 + $0x38] sm:$0xff] }
 0x129   :  { %1029 = vmatmul.f32.vlgmr.msrb.gmra.mxu2 %v2890_v4  ;;  %1048 = vmatpush.msrb.mxu3 %v480_v3  ;;  %v101_v2 = vld [vmem:[%s3815_s1 + $0x238] sm:$0xff] }
 0x12a   :  { %1049 = vmatmul.f32.vlgmr.msrb.gmra.mxu3 %v2908_v35  ;;  %1074 = vmatpush.msra.mxu1 %v153_v31  ;;  %v165_v29 = vld [vmem:[%s3815_s1 + $0x438] sm:$0xff] }
 0x12b   :  { %1094 = vmatpush.msra.mxu2 %v217_v32  ;;  %1113 = vmatpush.msra.mxu3 %v285_v34  ;;  %v233_v3 = vld [vmem:[%s3815_s1 + $0x658] sm:$0xff] }
 0x12c   :  { %1009 = vmatmul.f32.vlgmr.msrb.gmra.mxu1 %v2923_v17  ;;  %1055 = vmatpush.msra.mxu0 %v85_v36  ;;  %v33_v30 = vld [vmem:[%s3815_s1 + $0x18] sm:$0xff] }
 0x12d   :  { %1075 = vmatpush.msra.mxu1 %v149_v37  ;;  %1095 = vmatpush.msra.mxu2 %v213_v38  ;;  %v97_v31 = vld [vmem:[%s3815_s1 + $0x218] sm:$0xff] }
 0x12e   :  { %1114 = vmatpush.msra.mxu3 %v281_v39  ;;  %1056 = vmatpush.msra.mxu0 %v81_v40  ;;  %v161_v32 = vld [vmem:[%s3815_s1 + $0x418] sm:$0xff] }
 0x12f   :  { %1076 = vmatpush.msra.mxu1 %v145_v41  ;;  %1096 = vmatpush.msra.mxu2 %v209_v22  ;;  %v229_v34 = vld [vmem:[%s3815_s1 + $0x638] sm:$0xff] }
 0x130   :  { %1115 = vmatpush.msra.mxu3 %v277_v42  ;;  %1057 = vmatpush.msra.mxu0 %v77_v23  ;;  %v349_v36 = vld [vmem:[%s3815_s1 + $0x9f8] sm:$0xff] }
 0x131   :  { %1077 = vmatpush.msra.mxu1 %v141_v43  ;;  %1097 = vmatpush.msra.mxu2 %v205_v44  ;;  %v413_v37 = vld [vmem:[%s3815_s1 + $0xbf8] sm:$0xff] }
 0x132   :  { %1116 = vmatpush.msra.mxu3 %v273_v45  ;;  %1058 = vmatpush.msra.mxu0 %v73_v28  ;;  %v477_v38 = vld [vmem:[%s3815_s1 + $0xdf8] sm:$0xff] }
 0x133   :  { %1078 = vmatpush.msra.mxu1 %v137_v46  ;;  %1098 = vmatpush.msra.mxu2 %v201_v47  ;;  %v225_v39 = vld [vmem:[%s3815_s1 + $0x618] sm:$0xff] }
 0x134   :  { %1117 = vmatpush.msra.mxu3 %v269_v48  ;;  %1059 = vmatpush.msra.mxu0 %v69_v49  ;;  %v345_v40 = vld [vmem:[%s3815_s1 + $0x9d8] sm:$0xff] }
 0x135   :  { %1079 = vmatpush.msra.mxu1 %v133_v50  ;;  %1099 = vmatpush.msra.mxu2 %v197_v51  ;;  %v409_v41 = vld [vmem:[%s3815_s1 + $0xbd8] sm:$0xff] }
 0x136   :  { %1118 = vmatpush.msra.mxu3 %v265_v52  ;;  %1060 = vmatpush.msra.mxu0 %v65_v53  ;;  %v473_v22 = vld [vmem:[%s3815_s1 + $0xdd8] sm:$0xff] }
 0x137   :  { %1080 = vmatpush.msra.mxu1 %v129_v54  ;;  %1100 = vmatpush.msra.mxu2 %v193_v55  ;;  %v541_v42 = vld [vmem:[%s3815_s1 + $0xff8] sm:$0xff]  ;;  %v3148_v55 = vpop.f32.mrf.mxu0 }
 0x138   :  { %1119 = vmatpush.msra.mxu3 %v261_v56  ;;  %1061 = vmatpush.msra.mxu0 %v61_v57  ;;  %v341_v23 = vld [vmem:[%s3815_s1 + $0x9b8] sm:$0xff] }
 0x139   :  { %1081 = vmatpush.msra.mxu1 %v125_v58  ;;  %1101 = vmatpush.msra.mxu2 %v189_v59  ;;  %v405_v43 = vld [vmem:[%s3815_s1 + $0xbb8] sm:$0xff] }
 0x13a   :  { %1120 = vmatpush.msra.mxu3 %v257_v60  ;;  %1062 = vmatpush.msra.mxu0 %v57_v62  ;;  %v469_v44 = vld [vmem:[%s3815_s1 + $0xdb8] sm:$0xff] }
 0x13b   :  { %1082 = vmatpush.msra.mxu1 %v121_v63  ;;  %1102 = vmatpush.msra.mxu2 %v185_v0  ;;  %v537_v45 = vld [vmem:[%s3815_s1 + $0xfd8] sm:$0xff] }
 0x13c   :  { %1121 = vmatpush.msra.mxu3 %v253_v1  ;;  %1063 = vmatpush.msra.mxu0 %v53_v5  ;;  %v337_v28 = vld [vmem:[%s3815_s1 + $0x998] sm:$0xff]  ;;  %v3174_v1 = vpop.f32.mrf.mxu1 }
 0x13d   :  { %1083 = vmatpush.msra.mxu1 %v117_v6  ;;  %1103 = vmatpush.msra.mxu2 %v181_v7  ;;  %v401_v46 = vld [vmem:[%s3815_s1 + $0xb98] sm:$0xff] }
 0x13e   :  { %1122 = vmatpush.msra.mxu3 %v249_v8  ;;  %1064 = vmatpush.msra.mxu0 %v49_v10  ;;  %v465_v47 = vld [vmem:[%s3815_s1 + $0xd98] sm:$0xff] }
 0x13f   :  { %1084 = vmatpush.msra.mxu1 %v113_v11  ;;  %1104 = vmatpush.msra.mxu2 %v177_v12  ;;  %v533_v48 = vld [vmem:[%s3815_s1 + $0xfb8] sm:$0xff] }
 0x140   :  { %1123 = vmatpush.msra.mxu3 %v245_v14  ;;  %1065 = vmatpush.msra.mxu0 %v45_v16  ;;  %v333_v49 = vld [vmem:[%s3815_s1 + $0x978] sm:$0xff]  ;;  %v3200_v16 = vpop.f32.mrf.mxu2 }
 0x141   :  { %1085 = vmatpush.msra.mxu1 %v109_v18  ;;  %1105 = vmatpush.msra.mxu2 %v173_v19  ;;  %v397_v50 = vld [vmem:[%s3815_s1 + $0xb78] sm:$0xff] }
 0x142   :  { %1124 = vmatpush.msra.mxu3 %v241_v20  ;;  %1066 = vmatpush.msra.mxu0 %v41_v24  ;;  %v461_v51 = vld [vmem:[%s3815_s1 + $0xd78] sm:$0xff] }
 0x143   :  { %1086 = vmatpush.msra.mxu1 %v105_v25  ;;  %1106 = vmatpush.msra.mxu2 %v169_v26  ;;  %v529_v52 = vld [vmem:[%s3815_s1 + $0xf98] sm:$0xff]  ;;  %v3214_v25 = vpop.f32.mrf.mxu0 }
 0x144   :  { %1125 = vmatpush.msra.mxu3 %v237_v61  ;;  %1067 = vmatpush.msra.mxu0 %v37_v27  ;;  %v329_v53 = vld [vmem:[%s3815_s1 + $0x958] sm:$0xff] }
 0x145   :  { %1087 = vmatpush.msra.mxu1 %v101_v2  ;;  %1107 = vmatpush.msra.mxu2 %v165_v29  ;;  %v393_v54 = vld [vmem:[%s3815_s1 + $0xb58] sm:$0xff]  ;;  %v3228_v29 = vpop.f32.mrf.mxu3 }
 0x146   :  { %1126 = vmatpush.msra.mxu3 %v233_v3  ;;  %1068 = vmatpush.msra.mxu0 %v33_v30  ;;  %v457_v56 = vld [vmem:[%s3815_s1 + $0xd58] sm:$0xff] }
 0x147   :  { %1088 = vmatpush.msra.mxu1 %v97_v31  ;;  %1108 = vmatpush.msra.mxu2 %v161_v32  ;;  %v525_v57 = vld [vmem:[%s3815_s1 + $0xf78] sm:$0xff]  ;;  %v3242_v32 = vld [vmem:[%s3817_s2] sm:$0xf] }
 0x148   :  { %1127 = vmatpush.msra.mxu3 %v229_v34  ;;  %1133 = vmatpush.msrb.mxu0 %v349_v36  ;;  %v325_v58 = vld [vmem:[%s3815_s1 + $0x938] sm:$0xff]  ;;  %v3244_v34 = vpop.f32.mrf.mxu1 }
 0x149   :  { %1153 = vmatpush.msrb.mxu1 %v413_v37  ;;  %1173 = vmatpush.msrb.mxu2 %v477_v38  ;;  %v389_v59 = vld [vmem:[%s3815_s1 + $0xb38] sm:$0xff] }
 0x14a   :  { %1128 = vmatpush.msra.mxu3 %v225_v39  ;;  %1134 = vmatpush.msrb.mxu0 %v345_v40  ;;  %v453_v60 = vld [vmem:[%s3815_s1 + $0xd38] sm:$0xff]  ;;  %v544_v40 = vperm.slane %v3242_v32, 0 }
 0x14b   :  { %1154 = vmatpush.msrb.mxu1 %v409_v41  ;;  %1174 = vmatpush.msrb.mxu2 %v473_v22  ;;  %v521_v62 = vld [vmem:[%s3815_s1 + $0xf58] sm:$0xff] }
 0x14c   :  { %1193 = vmatpush.msrb.mxu3 %v541_v42  ;;  %1135 = vmatpush.msrb.mxu0 %v341_v23  ;;  %v321_v63 = vld [vmem:[%s3815_s1 + $0x918] sm:$0xff]  ;;  %v545_v42 = vperm.slane %v3242_v32, 1 }
 0x14d   :  { %1155 = vmatpush.msrb.mxu1 %v405_v43  ;;  %1175 = vmatpush.msrb.mxu2 %v469_v44  ;;  %v385_v0 = vld [vmem:[%s3815_s1 + $0xb18] sm:$0xff]  ;;  %v750_v43 = vpop.f32.mrf.mxu0 }
 0x14e   :  { %1194 = vmatpush.msrb.mxu3 %v537_v45  ;;  %1136 = vmatpush.msrb.mxu0 %v337_v28  ;;  %v449_v5 = vld [vmem:[%s3815_s1 + $0xd18] sm:$0xff] }
 0x14f   :  { %1156 = vmatpush.msrb.mxu1 %v401_v46  ;;  %1176 = vmatpush.msrb.mxu2 %v465_v47  ;;  %v517_v6 = vld [vmem:[%s3815_s1 + $0xf38] sm:$0xff] }
 0x150   :  { %1195 = vmatpush.msrb.mxu3 %v533_v48  ;;  %1137 = vmatpush.msrb.mxu0 %v333_v49  ;;  %v317_v7 = vld [vmem:[%s3815_s1 + $0x8f8] sm:$0xff]  ;;  %v751_v48 = vadd.f32 %v750_v43, %v545_v42  ;;  %v3294_v49 = vpop.f32.mrf.mxu3  ;;  %v1301_v43 = vld [vmem:[%s3818_s3 + $0x260] sm:$0xff] }
 0x151   :  { %1157 = vmatpush.msrb.mxu1 %v397_v50  ;;  %1177 = vmatpush.msrb.mxu2 %v461_v51  ;;  %v381_v8 = vld [vmem:[%s3815_s1 + $0xaf8] sm:$0xff]  ;;  %v770_v51 = vpop.f32.mrf.mxu1 }
 0x152   :  { %1196 = vmatpush.msrb.mxu3 %v529_v52  ;;  %1138 = vmatpush.msrb.mxu0 %v329_v53  ;;  %v445_v10 = vld [vmem:[%s3815_s1 + $0xcf8] sm:$0xff]  ;;  %v1255_v52 = vld [vmem:[%s3818_s3 + $0xf0] sm:$0xff] }
 0x153   :  { %1158 = vmatpush.msrb.mxu1 %v393_v54  ;;  %1178 = vmatpush.msrb.mxu2 %v457_v56  ;;  %v513_v11 = vld [vmem:[%s3815_s1 + $0xf18] sm:$0xff]  ;;  %v1287_v53 = vld [vmem:[%s3818_s3 + $0x1f0] sm:$0xff]  ;;  %v771_v56 = vadd.f32 %v770_v51, %v751_v48  ;;  %v1297_v48 = vld [vmem:[%s3818_s3 + $0x240] sm:$0xff] }
 0x154   :  { %1197 = vmatpush.msrb.mxu3 %v525_v57  ;;  %1139 = vmatpush.msrb.mxu0 %v325_v58  ;;  %v313_v12 = vld [vmem:[%s3815_s1 + $0x8d8] sm:$0xff]  ;;  %v1253_v57 = vld [vmem:[%s3818_s3 + $0xe0] sm:$0xff]  ;;  %v1227_v51 = vld [vmem:[%s3818_s3 + $0x10] sm:$0xff] }
 0x155   :  { %1159 = vmatpush.msrb.mxu1 %v389_v59  ;;  %1179 = vmatpush.msrb.mxu2 %v453_v60  ;;  %v377_v14 = vld [vmem:[%s3815_s1 + $0xad8] sm:$0xff]  ;;  %v1285_v58 = vld [vmem:[%s3818_s3 + $0x1e0] sm:$0xff]  ;;  %v1319_v60 = vld [vmem:[%s3818_s3 + $0x2f0] sm:$0xff] }
 0x156   :  { %1198 = vmatpush.msrb.mxu3 %v521_v62  ;;  %1140 = vmatpush.msrb.mxu0 %v321_v63  ;;  %v441_v18 = vld [vmem:[%s3815_s1 + $0xcd8] sm:$0xff]  ;;  %v1283_v62 = vld [vmem:[%s3818_s3 + $0x1d0] sm:$0xff] }
 0x157   :  { %1160 = vmatpush.msrb.mxu1 %v385_v0  ;;  %1180 = vmatpush.msrb.mxu2 %v449_v5  ;;  %v509_v19 = vld [vmem:[%s3815_s1 + $0xef8] sm:$0xff] }
 0x158   :  { %1199 = vmatpush.msrb.mxu3 %v517_v6  ;;  %1141 = vmatpush.msrb.mxu0 %v317_v7  ;;  %v309_v20 = vld [vmem:[%s3815_s1 + $0x8b8] sm:$0xff]  ;;  %v810_v5 = vpop.f32.mrf.mxu3  ;;  %v1315_v6 = vld [vmem:[%s3818_s3 + $0x2d0] sm:$0xff] }
 0x159   :  { %1161 = vmatpush.msrb.mxu1 %v381_v8  ;;  %1181 = vmatpush.msrb.mxu2 %v445_v10  ;;  %v373_v24 = vld [vmem:[%s3815_s1 + $0xab8] sm:$0xff]  ;;  %v1279_v7 = vld [vmem:[%s3818_s3 + $0x1b0] sm:$0xff] }
 0x15a   :  { %1200 = vmatpush.msrb.mxu3 %v513_v11  ;;  %1142 = vmatpush.msrb.mxu0 %v313_v12  ;;  %v437_v26 = vld [vmem:[%s3815_s1 + $0xcb8] sm:$0xff]  ;;  %v1313_v11 = vld [vmem:[%s3818_s3 + $0x2c0] sm:$0xff]  ;;  %v830_v12 = vpop.f32.mrf.mxu0 }
 0x15b   :  { %1162 = vmatpush.msrb.mxu1 %v377_v14  ;;  %v505_v61 = vld [vmem:[%s3815_s1 + $0xed8] sm:$0xff]  ;;  %1182 = vmatpush.msrb.mxu2 %v441_v18  ;;  %v1245_v14 = vld [vmem:[%s3818_s3 + $0xa0] sm:$0xff]  ;;  %v1311_v18 = vld [vmem:[%s3818_s3 + $0x2b0] sm:$0xff] }
 0x15c   :  { %1201 = vmatpush.msrb.mxu3 %v509_v19  ;;  %v305_v27 = vld [vmem:[%s3815_s1 + $0x898] sm:$0xff]  ;;  %1143 = vmatpush.msrb.mxu0 %v309_v20  ;;  %v1243_v19 = vld [vmem:[%s3818_s3 + $0x90] sm:$0xff] }
 0x15d   :  { %v369_v2 = vld [vmem:[%s3815_s1 + $0xa98] sm:$0xff]  ;;  %1163 = vmatpush.msrb.mxu1 %v373_v24  ;;  %1183 = vmatpush.msrb.mxu2 %v437_v26  ;;  %v1275_v20 = vld [vmem:[%s3818_s3 + $0x190] sm:$0xff] }
 0x15e   :  { %v433_v3 = vld [vmem:[%s3815_s1 + $0xc98] sm:$0xff]  ;;  %1202 = vmatpush.msrb.mxu3 %v505_v61  ;;  %1144 = vmatpush.msrb.mxu0 %v305_v27  ;;  %v1309_v61 = vld [vmem:[%s3818_s3 + $0x2a0] sm:$0xff]  ;;  %v850_v27 = vpop.f32.mrf.mxu1 }
 0x15f   :  { %v501_v30 = vld [vmem:[%s3815_s1 + $0xeb8] sm:$0xff]  ;;  %1164 = vmatpush.msrb.mxu1 %v369_v2  ;;  %1184 = vmatpush.msrb.mxu2 %v433_v3  ;;  %v1241_v2 = vld [vmem:[%s3818_s3 + $0x80] sm:$0xff]  ;;  %v1239_v3 = vld [vmem:[%s3818_s3 + $0x70] sm:$0xff] }
 0x160   :  { %v301_v31 = vld [vmem:[%s3815_s1 + $0x878] sm:$0xff]  ;;  %1203 = vmatpush.msrb.mxu3 %v501_v30  ;;  %1109 = vmatmul.f32.vlgmr.msra.gmra.mxu2 %v2830_v9  ;;  %v3267_v9 = vpop.f32.mrf.mxu2  ;;  %v1271_v30 = vld [vmem:[%s3818_s3 + $0x170] sm:$0xff] }
 0x161   :  { %v365_v36 = vld [vmem:[%s3815_s1 + $0xa78] sm:$0xff]  ;;  %1145 = vmatpush.msrb.mxu0 %v301_v31  ;;  %1129 = vmatmul.f32.vlgmr.msra.gmra.mxu3 %v2848_v15  ;;  %v591_v15 = vadd.f32 %v3148_v55, %v544_v40  ;;  %v1269_v40 = vld [vmem:[%s3818_s3 + $0x160] sm:$0xff] }
 0x162   :  { %v429_v37 = vld [vmem:[%s3815_s1 + $0xc78] sm:$0xff]  ;;  %1165 = vmatpush.msrb.mxu1 %v365_v36  ;;  %1069 = vmatmul.f32.vlgmr.msra.gmra.mxu0 %v2842_v13 }
 0x163   :  { %v497_v38 = vld [vmem:[%s3815_s1 + $0xe98] sm:$0xff]  ;;  %1185 = vmatpush.msrb.mxu2 %v429_v37  ;;  %1089 = vmatmul.f32.vlgmr.msra.gmra.mxu1 %v2863_v21  ;;  %v611_v55 = vadd.f32 %v3174_v1, %v591_v15  ;;  %v1317_v1 = vld [vmem:[%s3818_s3 + $0x2e0] sm:$0xff]  ;;  %v1263_v15 = vld [vmem:[%s3818_s3 + $0x130] sm:$0xff] }
 0x164   :  { %v297_v39 = vld [vmem:[%s3815_s1 + $0x858] sm:$0xff]  ;;  %1204 = vmatpush.msrb.mxu3 %v497_v38  ;;  %v1305_v37 = vld [vmem:[%s3818_s3 + $0x280] sm:$0xff] }
 0x165   :  { %v361_v41 = vld [vmem:[%s3815_s1 + $0xa58] sm:$0xff]  ;;  %1146 = vmatpush.msrb.mxu0 %v297_v39  ;;  %v631_v63 = vadd.f32 %v3200_v16, %v611_v55  ;;  %v1277_v16 = vld [vmem:[%s3818_s3 + $0x1a0] sm:$0xff] }
 0x166   :  { %v425_v22 = vld [vmem:[%s3815_s1 + $0xc58] sm:$0xff]  ;;  %1166 = vmatpush.msrb.mxu1 %v361_v41  ;;  %v1237_v39 = vld [vmem:[%s3818_s3 + $0x60] sm:$0xff]  ;;  %v1235_v41 = vld [vmem:[%s3818_s3 + $0x50] sm:$0xff] }
 0x167   :  { %v493_v23 = vld [vmem:[%s3815_s1 + $0xe78] sm:$0xff]  ;;  %1186 = vmatpush.msrb.mxu2 %v425_v22  ;;  %v651_v8 = vadd.f32 %v3228_v29, %v631_v63  ;;  %v1273_v29 = vld [vmem:[%s3818_s3 + $0x180] sm:$0xff]  ;;  %v1267_v22 = vld [vmem:[%s3818_s3 + $0x150] sm:$0xff] }
 0x168   :  { %v293_v44 = vld [vmem:[%s3815_s1 + $0x838] sm:$0xff]  ;;  %1205 = vmatpush.msrb.mxu3 %v493_v23  ;;  %v790_v59 = vpop.f32.mrf.mxu2  ;;  %v1293_v55 = vld [vmem:[%s3818_s3 + $0x220] sm:$0xff]  ;;  %v1254_v63 = vld [vmem:[%s3818_s3 + $0xe8] sm:$0xff] }
 0x169   :  { %v357_v45 = vld [vmem:[%s3815_s1 + $0xa38] sm:$0xff]  ;;  %1147 = vmatpush.msrb.mxu0 %v293_v44  ;;  %v791_v0 = vadd.f32 %v790_v59, %v771_v56  ;;  %v671_v24 = vadd.f32 %v3214_v25, %v651_v8  ;;  %v1307_v25 = vld [vmem:[%s3818_s3 + $0x290] sm:$0xff]  ;;  %v890_v44 = vpop.f32.mrf.mxu3  ;;  %v1225_v56 = vld [vmem:[%s3818_s3] sm:$0xff] }
 0x16a   :  { %v421_v13 = vld [vmem:[%s3815_s1 + $0xc38] sm:$0xff]  ;;  %1167 = vmatpush.msrb.mxu1 %v357_v45  ;;  %v1233_v45 = vld [vmem:[%s3818_s3 + $0x40] sm:$0xff] }
 0x16b   :  { %v489_v28 = vld [vmem:[%s3815_s1 + $0xe58] sm:$0xff]  ;;  %1187 = vmatpush.msrb.mxu2 %v421_v13  ;;  %v811_v10 = vadd.f32 %v810_v5, %v791_v0  ;;  %v691_v31 = vadd.f32 %v3244_v34, %v671_v24  ;;  %v1303_v34 = vld [vmem:[%s3818_s3 + $0x270] sm:$0xff]  ;;  %v1265_v13 = vld [vmem:[%s3818_s3 + $0x140] sm:$0xff] }
 0x16c   :  { %v289_v46 = vld [vmem:[%s3815_s1 + $0x818] sm:$0xff]  ;;  %1206 = vmatpush.msrb.mxu3 %v489_v28  ;;  %v1231_v28 = vld [vmem:[%s3818_s3 + $0x30] sm:$0xff]  ;;  %v1286_v0 = vld [vmem:[%s3818_s3 + $0x1e8] sm:$0xff] }
 0x16d   :  { %v353_v47 = vld [vmem:[%s3815_s1 + $0xa18] sm:$0xff]  ;;  %1148 = vmatpush.msrb.mxu0 %v289_v46  ;;  %v831_v26 = vadd.f32 %v830_v12, %v811_v10  ;;  %v711_v42 = vadd.f32 %v3267_v9, %v691_v31  ;;  %v1299_v9 = vld [vmem:[%s3818_s3 + $0x250] sm:$0xff]  ;;  %v1246_v12 = vld [vmem:[%s3818_s3 + $0xa8] sm:$0xff] }
 0x16e   :  { %v417_v50 = vld [vmem:[%s3815_s1 + $0xc18] sm:$0xff]  ;;  %1168 = vmatpush.msrb.mxu1 %v353_v47  ;;  %1149 = vmatmul.f32.vlgmr.msrb.gmra.mxu0 %v2902_v33  ;;  %v1249_v33 = vld [vmem:[%s3818_s3 + $0xc0] sm:$0xff]  ;;  %v1270_v31 = vld [vmem:[%s3818_s3 + $0x168] sm:$0xff] }
 0x16f   :  { %v485_v21 = vld [vmem:[%s3815_s1 + $0xe38] sm:$0xff]  ;;  %1188 = vmatpush.msrb.mxu2 %v417_v50  ;;  %1359 = vmatpush.msra.mxu0 %v1255_v52  ;;  %v851_v36 = vadd.f32 %v850_v27, %v831_v26  ;;  %v731_v46 = vadd.f32 %v3294_v49, %v711_v42  ;;  %v1229_v50 = vld [vmem:[%s3818_s3 + $0x20] sm:$0xff]  ;;  %v1295_v49 = vld [vmem:[%s3818_s3 + $0x230] sm:$0xff] }
 0x170   :  { %v481_v54 = vld [vmem:[%s3815_s1 + $0xe18] sm:$0xff]  ;;  %1207 = vmatpush.msrb.mxu3 %v485_v21  ;;  %1189 = vmatmul.f32.vlgmr.msrb.gmra.mxu2 %v2890_v4  ;;  %v1251_v4 = vld [vmem:[%s3818_s3 + $0xd0] sm:$0xff]  ;;  %v870_v38 = vpop.f32.mrf.mxu2  ;;  %v1261_v21 = vld [vmem:[%s3818_s3 + $0x120] sm:$0xff] }
 0x171   :  { %1379 = vmatpush.msra.mxu1 %v1287_v53  ;;  %1360 = vmatpush.msra.mxu0 %v1253_v57  ;;  %v871_v23 = vadd.f32 %v870_v38, %v851_v36  ;;  %v1259_v52 = vld [vmem:[%s3818_s3 + $0x110] sm:$0xff]  ;;  %v1217_v53 = vmul.f32 0.2, %v731_v46  ;;  %vm1213_vm0 = vcmp.ge.f32.partialorder %v731_v46, 0.0  ;;  %v1257_v57 = vld [vmem:[%s3818_s3 + $0x100] sm:$0xff]  ;;  %v1288_v59 = vld [vmem:[%s3818_s3 + $0x1f8] sm:$0xff] }
 0x172   :  { %1208 = vmatpush.msrb.mxu3 %v481_v54  ;;  %1169 = vmatmul.f32.vlgmr.msrb.gmra.mxu1 %v2923_v17  ;;  %v1247_v17 = vld [vmem:[%s3818_s3 + $0xb0] sm:$0xff]  ;;  %v1320_v5 = vld [vmem:[%s3818_s3 + $0x2f8] sm:$0xff]  ;;  %v1242_v26 = vld [vmem:[%s3818_s3 + $0x88] sm:$0xff] }
 0x173   :  { %1209 = vmatmul.f32.vlgmr.msrb.gmra.mxu3 %v2908_v35  ;;  %1380 = vmatpush.msra.mxu1 %v1285_v58  ;;  %v1281_v35 = vld [vmem:[%s3818_s3 + $0x1c0] sm:$0xff]  ;;  %v891_v47 = vadd.f32 %v890_v44, %v871_v23  ;;  %v1256_v58 = vld [vmem:[%s3818_s3 + $0xf8] sm:$0xff]  ;;  %v1310_v27 = vld [vmem:[%s3818_s3 + $0x2a8] sm:$0xff]  ;;  %v930_v44 = vpop.f32.mrf.mxu1 }
 0x174   :  { %1399 = vmatpush.msra.mxu2 %v1319_v60  ;;  %1361 = vmatpush.msra.mxu0 %v1251_v4  ;;  %v3460_v60 = vsel %vm1213_vm0, %v731_v46, %v1217_v53  ;;  %v1248_v8 = vld [vmem:[%s3818_s3 + $0xb8] sm:$0xff]  ;;  %v1349_v36 = vld [vmem:[%s3818_s3 + $0x3e0] sm:$0xff]  ;;  %v1306_v38 = vld [vmem:[%s3818_s3 + $0x288] sm:$0xff] }
 0x175   :  { %1381 = vmatpush.msra.mxu1 %v1283_v62  ;;  %v1218_v54 = vmul.f32 0.2, %v891_v47  ;;  %vm1214_vm1 = vcmp.ge.f32.partialorder %v891_v47, 0.0  ;;  %v1291_v62 = vld [vmem:[%s3818_s3 + $0x210] sm:$0xff]  ;;  %v1280_v10 = vld [vmem:[%s3818_s3 + $0x1b8] sm:$0xff]  ;;  %v1345_v42 = vld [vmem:[%s3818_s3 + $0x3c0] sm:$0xff] }
 0x176   :  { %1400 = vmatpush.msra.mxu2 %v1317_v1  ;;  %1362 = vmatpush.msra.mxu0 %v1249_v33  ;;  %v1289_v1 = vld [vmem:[%s3818_s3 + $0x200] sm:$0xff]  ;;  %v1252_v33 = vld [vmem:[%s3818_s3 + $0xd8] sm:$0xff]  ;;  %v1234_v23 = vld [vmem:[%s3818_s3 + $0x48] sm:$0xff] }
 0x177   :  { %1382 = vmatpush.msra.mxu1 %v1281_v35  ;;  %v3462_v4 = vsel %vm1214_vm1, %v891_v47, %v1218_v54  ;;  %v1284_v35 = vld [vmem:[%s3818_s3 + $0x1d8] sm:$0xff]  ;;  %v1298_v53 = vld [vmem:[%s3818_s3 + $0x248] sm:$0xff]  ;;  %v1339_v54 = vld [vmem:[%s3818_s3 + $0x390] sm:$0xff] }
 0x178   :  { %1401 = vmatpush.msra.mxu2 %v1315_v6  ;;  %1363 = vmatpush.msra.mxu0 %v1247_v17  ;;  %v1250_v6 = vld [vmem:[%s3818_s3 + $0xc8] sm:$0xff]  ;;  %v1312_v24 = vld [vmem:[%s3818_s3 + $0x2b8] sm:$0xff] }
 0x179   :  { %1383 = vmatpush.msra.mxu1 %v1279_v7  ;;  %v1282_v17 = vld [vmem:[%s3818_s3 + $0x1c8] sm:$0xff]  ;;  %v1264_v46 = vld [vmem:[%s3818_s3 + $0x138] sm:$0xff] }
 0x17a   :  { %1402 = vmatpush.msra.mxu2 %v1313_v11  ;;  %1364 = vmatpush.msra.mxu0 %v1245_v14  ;;  %v1318_v7 = vld [vmem:[%s3818_s3 + $0x2e8] sm:$0xff]  ;;  %v1316_v11 = vld [vmem:[%s3818_s3 + $0x2d8] sm:$0xff] }
 0x17b   :  { %1384 = vmatpush.msra.mxu1 %v1277_v16  ;;  %v1278_v14 = vld [vmem:[%s3818_s3 + $0x1a8] sm:$0xff] }
 0x17c   :  { %1403 = vmatpush.msra.mxu2 %v1311_v18  ;;  %1365 = vmatpush.msra.mxu0 %v1243_v19  ;;  %v1314_v16 = vld [vmem:[%s3818_s3 + $0x2c8] sm:$0xff]  ;;  %v1351_v18 = vld [vmem:[%s3818_s3 + $0x3f0] sm:$0xff]  ;;  %v1244_v19 = vld [vmem:[%s3818_s3 + $0x98] sm:$0xff] }
 0x17d   :  { %1385 = vmatpush.msra.mxu1 %v1275_v20  ;;  %v1276_v20 = vld [vmem:[%s3818_s3 + $0x198] sm:$0xff]  ;;  %1419 = vmatpush.msra.mxu3 %v1351_v18 }
 0x17e   :  { %1404 = vmatpush.msra.mxu2 %v1309_v61  ;;  %1366 = vmatpush.msra.mxu0 %v1241_v2  ;;  %v1274_v61 = vld [vmem:[%s3818_s3 + $0x188] sm:$0xff]  ;;  %v1240_v2 = vld [vmem:[%s3818_s3 + $0x78] sm:$0xff] }
 0x17f   :  { %1386 = vmatpush.msra.mxu1 %v1273_v29  ;;  %v1272_v29 = vld [vmem:[%s3818_s3 + $0x178] sm:$0xff]  ;;  %1420 = vmatpush.msra.mxu3 %v1349_v36  ;;  %v1334_v36 = vld [vmem:[%s3818_s3 + $0x368] sm:$0xff] }
 0x180   :  { %1405 = vmatpush.msra.mxu2 %v1307_v25  ;;  %1367 = vmatpush.msra.mxu0 %v1239_v3  ;;  %v546_v25 = vperm.slane %v3242_v32, 2  ;;  %v1308_v3 = vld [vmem:[%s3818_s3 + $0x298] sm:$0xff] }
 0x181   :  { %1387 = vmatpush.msra.mxu1 %v1271_v30  ;;  %v1238_v30 = vld [vmem:[%s3818_s3 + $0x68] sm:$0xff] }
 0x182   :  { %1406 = vmatpush.msra.mxu2 %v1305_v37  ;;  %1368 = vmatpush.msra.mxu0 %v1237_v39  ;;  %v910_v37 = vpop.f32.mrf.mxu0  ;;  %v1347_v39 = vld [vmem:[%s3818_s3 + $0x3d0] sm:$0xff] }
 0x183   :  { %1388 = vmatpush.msra.mxu1 %v1269_v40  ;;  %v1236_v40 = vld [vmem:[%s3818_s3 + $0x58] sm:$0xff]  ;;  %1421 = vmatpush.msra.mxu3 %v1347_v39 }
 0x184   :  { %1407 = vmatpush.msra.mxu2 %v1303_v34  ;;  %1369 = vmatpush.msra.mxu0 %v1235_v41  ;;  %v1268_v34 = vld [vmem:[%s3818_s3 + $0x158] sm:$0xff]  ;;  %v911_v41 = vadd.f32 %v910_v37, %v546_v25  ;;  %v1342_v25 = vld [vmem:[%s3818_s3 + $0x3a8] sm:$0xff] }
 0x185   :  { %1389 = vmatpush.msra.mxu1 %v1267_v22  ;;  %v1304_v22 = vld [vmem:[%s3818_s3 + $0x278] sm:$0xff]  ;;  %1422 = vmatpush.msra.mxu3 %v1345_v42 }
 0x186   :  { %1408 = vmatpush.msra.mxu2 %v1301_v43  ;;  %1370 = vmatpush.msra.mxu0 %v1233_v45  ;;  %v1266_v43 = vld [vmem:[%s3818_s3 + $0x148] sm:$0xff]  ;;  %v931_v45 = vadd.f32 %v930_v44, %v911_v41  ;;  %v1332_v37 = vld [vmem:[%s3818_s3 + $0x358] sm:$0xff] }
 0x187   :  { %1390 = vmatpush.msra.mxu1 %v1265_v13  ;;  %v1328_v39 = vld [vmem:[%s3818_s3 + $0x338] sm:$0xff]  ;;  %v1322_v41 = vld [vmem:[%s3818_s3 + $0x308] sm:$0xff] }
 0x188   :  { %1409 = vmatpush.msra.mxu2 %v1299_v9  ;;  %1371 = vmatpush.msra.mxu0 %v1231_v28  ;;  %v1302_v9 = vld [vmem:[%s3818_s3 + $0x268] sm:$0xff]  ;;  %v1343_v28 = vld [vmem:[%s3818_s3 + $0x3b0] sm:$0xff] }
 0x189   :  { %1391 = vmatpush.msra.mxu1 %v1263_v15  ;;  %v1232_v15 = vld [vmem:[%s3818_s3 + $0x38] sm:$0xff]  ;;  %1423 = vmatpush.msra.mxu3 %v1343_v28 }
 0x18a   :  { %1410 = vmatpush.msra.mxu2 %v1297_v48  ;;  %1372 = vmatpush.msra.mxu0 %v1229_v50  ;;  %v1300_v48 = vld [vmem:[%s3818_s3 + $0x258] sm:$0xff]  ;;  %v1341_v50 = vld [vmem:[%s3818_s3 + $0x3a0] sm:$0xff] }
 0x18b   :  { %1392 = vmatpush.msra.mxu1 %v1261_v21  ;;  %v1230_v21 = vld [vmem:[%s3818_s3 + $0x28] sm:$0xff]  ;;  %1424 = vmatpush.msra.mxu3 %v1341_v50 }
 0x18c   :  { %1411 = vmatpush.msra.mxu2 %v1295_v49  ;;  %1373 = vmatpush.msra.mxu0 %v1227_v51  ;;  %v1262_v49 = vld [vmem:[%s3818_s3 + $0x128] sm:$0xff]  ;;  %v970_v51 = vpop.f32.mrf.mxu3 }
 0x18d   :  { %1393 = vmatpush.msra.mxu1 %v1259_v52  ;;  %1425 = vmatpush.msra.mxu3 %v1339_v54  ;;  %v1539_v54 = vld [vmem:[%s3819_s5 + $0x70] sm:$0xff] }
 0x18e   :  { %1412 = vmatpush.msra.mxu2 %v1293_v55  ;;  %1374 = vmatpush.msra.mxu0 %v1225_v56  ;;  %v1228_v55 = vld [vmem:[%s3818_s3 + $0x18] sm:$0xff] }
 0x18f   :  { %1394 = vmatpush.msra.mxu1 %v1257_v57  ;;  %1375 = vmatmul.f32.vlgmr.msra.gmra.mxu0 %v3460_v60  ;;  %v1260_v56 = vld [vmem:[%s3818_s3 + $0x118] sm:$0xff] }
 0x190   :  { %1395 = vmatmul.f32.vlgmr.msra.gmra.mxu1 %v3462_v4  ;;  %1439 = vmatpush.msrb.mxu0 %v1256_v58  ;;  %v1296_v58 = vld [vmem:[%s3818_s3 + $0x238] sm:$0xff] }
 0x191   :  { %1459 = vmatpush.msrb.mxu1 %v1288_v59  ;;  %1413 = vmatpush.msra.mxu2 %v1291_v62  ;;  %v1337_v59 = vld [vmem:[%s3818_s3 + $0x380] sm:$0xff]  ;;  %v1226_v62 = vld [vmem:[%s3818_s3 + $0x8] sm:$0xff] }
 0x192   :  { %1440 = vmatpush.msrb.mxu0 %v1254_v63  ;;  %v1258_v63 = vld [vmem:[%s3818_s3 + $0x108] sm:$0xff]  ;;  %1426 = vmatpush.msra.mxu3 %v1337_v59  ;;  %v1537_v59 = vld [vmem:[%s3819_s5 + $0x60] sm:$0xff] }
 0x193   :  { %1460 = vmatpush.msrb.mxu1 %v1286_v0  ;;  %1414 = vmatpush.msra.mxu2 %v1289_v1 }
 0x194   :  { %1441 = vmatpush.msrb.mxu0 %v1252_v33  ;;  %v1294_v33 = vld [vmem:[%s3818_s3 + $0x228] sm:$0xff] }
 0x195   :  { %1461 = vmatpush.msrb.mxu1 %v1284_v35  ;;  %1479 = vmatpush.msrb.mxu2 %v1320_v5  ;;  %v1335_v35 = vld [vmem:[%s3818_s3 + $0x370] sm:$0xff] }
 0x196   :  { %1442 = vmatpush.msrb.mxu0 %v1250_v6  ;;  %1427 = vmatpush.msra.mxu3 %v1335_v35  ;;  %v1534_v35 = vld [vmem:[%s3819_s5 + $0x48] sm:$0xff] }
 0x197   :  { %1462 = vmatpush.msrb.mxu1 %v1282_v17  ;;  %1480 = vmatpush.msrb.mxu2 %v1318_v7  ;;  %v1292_v17 = vld [vmem:[%s3818_s3 + $0x218] sm:$0xff]  ;;  %v1333_v7 = vld [vmem:[%s3818_s3 + $0x360] sm:$0xff] }
 0x198   :  { %1443 = vmatpush.msrb.mxu0 %v1248_v8  ;;  %1428 = vmatpush.msra.mxu3 %v1333_v7  ;;  %v1532_v7 = vld [vmem:[%s3819_s5 + $0x38] sm:$0xff] }
 0x199   :  { %1463 = vmatpush.msrb.mxu1 %v1280_v10  ;;  %1481 = vmatpush.msrb.mxu2 %v1316_v11  ;;  %v1290_v11 = vld [vmem:[%s3818_s3 + $0x208] sm:$0xff] }
 0x19a   :  { %1444 = vmatpush.msrb.mxu0 %v1246_v12  ;;  %v1329_v12 = vld [vmem:[%s3818_s3 + $0x340] sm:$0xff] }
 0x19b   :  { %1464 = vmatpush.msrb.mxu1 %v1278_v14  ;;  %1482 = vmatpush.msrb.mxu2 %v1314_v16  ;;  %v1327_v16 = vld [vmem:[%s3818_s3 + $0x330] sm:$0xff] }
 0x19c   :  { %1445 = vmatpush.msrb.mxu0 %v1244_v19  ;;  %v1325_v19 = vld [vmem:[%s3818_s3 + $0x320] sm:$0xff] }
 0x19d   :  { %1465 = vmatpush.msrb.mxu1 %v1276_v20  ;;  %1483 = vmatpush.msrb.mxu2 %v1312_v24  ;;  %v1323_v20 = vld [vmem:[%s3818_s3 + $0x310] sm:$0xff]  ;;  %v1321_v24 = vld [vmem:[%s3818_s3 + $0x300] sm:$0xff] }
 0x19e   :  { %1446 = vmatpush.msrb.mxu0 %v1242_v26  ;;  %v950_v13 = vpop.f32.mrf.mxu2  ;;  %v1352_v26 = vld [vmem:[%s3818_s3 + $0x3f8] sm:$0xff] }
 0x19f   :  { %1466 = vmatpush.msrb.mxu1 %v1274_v61  ;;  %1484 = vmatpush.msrb.mxu2 %v1310_v27  ;;  %v951_v47 = vadd.f32 %v950_v13, %v931_v45  ;;  %v1350_v61 = vld [vmem:[%s3818_s3 + $0x3e8] sm:$0xff]  ;;  %v1348_v27 = vld [vmem:[%s3818_s3 + $0x3d8] sm:$0xff] }
 0x1a0   :  { %1447 = vmatpush.msrb.mxu0 %v1240_v2  ;;  %v1346_v2 = vld [vmem:[%s3818_s3 + $0x3c8] sm:$0xff] }
 0x1a1   :  { %1467 = vmatpush.msrb.mxu1 %v1272_v29  ;;  %1485 = vmatpush.msrb.mxu2 %v1308_v3  ;;  %v971_v52 = vadd.f32 %v970_v51, %v951_v47  ;;  %v1344_v29 = vld [vmem:[%s3818_s3 + $0x3b8] sm:$0xff] }
 0x1a2   :  { %1448 = vmatpush.msrb.mxu0 %v1238_v30  ;;  %v990_v57 = vpop.f32.mrf.mxu0  ;;  %v1340_v3 = vld [vmem:[%s3818_s3 + $0x398] sm:$0xff]  ;;  %v1338_v30 = vld [vmem:[%s3818_s3 + $0x388] sm:$0xff] }
 0x1a3   :  { %1468 = vmatpush.msrb.mxu1 %v1270_v31  ;;  %1486 = vmatpush.msrb.mxu2 %v1306_v38  ;;  %v991_v0 = vadd.f32 %v990_v57, %v971_v52  ;;  %v1336_v31 = vld [vmem:[%s3818_s3 + $0x378] sm:$0xff]  ;;  %v1330_v38 = vld [vmem:[%s3818_s3 + $0x348] sm:$0xff]  ;;  %v1555_v57 = vld [vmem:[%s3819_s5 + $0xf0] sm:$0xff] }
 0x1a4   :  { %1449 = vmatpush.msrb.mxu0 %v1236_v40  ;;  %v1326_v40 = vld [vmem:[%s3818_s3 + $0x328] sm:$0xff] }
 0x1a5   :  { %1469 = vmatpush.msrb.mxu1 %v1268_v34  ;;  %1487 = vmatpush.msrb.mxu2 %v1304_v22  ;;  %v1324_v34 = vld [vmem:[%s3818_s3 + $0x318] sm:$0xff]  ;;  %v547_v22 = vperm.slane %v3242_v32, 3 }
 0x1a6   :  { %1450 = vmatpush.msrb.mxu0 %v1234_v23 }
 0x1a7   :  { %1470 = vmatpush.msrb.mxu1 %v1266_v43  ;;  %1488 = vmatpush.msrb.mxu2 %v1302_v9 }
 0x1a8   :  { %1451 = vmatpush.msrb.mxu0 %v1232_v15 }
 0x1a9   :  { %1471 = vmatpush.msrb.mxu1 %v1264_v46  ;;  %1489 = vmatpush.msrb.mxu2 %v1300_v48  ;;  %v1010_v1 = vpop.f32.mrf.mxu1 }
 0x1aa   :  { %1452 = vmatpush.msrb.mxu0 %v1230_v21  ;;  %v1011_v5 = vadd.f32 %v1010_v1, %v991_v0  ;;  %v1552_v0 = vld [vmem:[%s3819_s5 + $0xd8] sm:$0xff]  ;;  %v1535_v1 = vld [vmem:[%s3819_s5 + $0x50] sm:$0xff] }
 0x1ab   :  { %1472 = vmatpush.msrb.mxu1 %v1262_v49  ;;  %1490 = vmatpush.msrb.mxu2 %v1298_v53  ;;  %v1540_v53 = vld [vmem:[%s3819_s5 + $0x78] sm:$0xff] }
 0x1ac   :  { %1453 = vmatpush.msrb.mxu0 %v1228_v55  ;;  %v1030_v6 = vpop.f32.mrf.mxu2  ;;  %v1556_v55 = vld [vmem:[%s3819_s5 + $0xf8] sm:$0xff] }
 0x1ad   :  { %1473 = vmatpush.msrb.mxu1 %v1260_v56  ;;  %1491 = vmatpush.msrb.mxu2 %v1296_v58  ;;  %v1031_v8 = vadd.f32 %v1030_v6, %v1011_v5  ;;  %v1050_v10 = vpop.f32.mrf.mxu3  ;;  %v1538_v56 = vld [vmem:[%s3819_s5 + $0x68] sm:$0xff]  ;;  %v1533_v6 = vld [vmem:[%s3819_s5 + $0x40] sm:$0xff] }
 0x1ae   :  { %1454 = vmatpush.msrb.mxu0 %v1226_v62  ;;  %v1554_v58 = vld [vmem:[%s3819_s5 + $0xe8] sm:$0xff]  ;;  %v1553_v62 = vld [vmem:[%s3819_s5 + $0xe0] sm:$0xff] }
 0x1af   :  { %1474 = vmatpush.msrb.mxu1 %v1258_v63  ;;  %1455 = vmatmul.f32.vlgmr.msrb.gmra.mxu0 %v3460_v60  ;;  %v1331_v60 = vld [vmem:[%s3818_s3 + $0x350] sm:$0xff]  ;;  %v1536_v63 = vld [vmem:[%s3819_s5 + $0x58] sm:$0xff]  ;;  %v1550_v5 = vld [vmem:[%s3819_s5 + $0xc8] sm:$0xff] }
 0x1b0   :  { %1475 = vmatmul.f32.vlgmr.msrb.gmra.mxu1 %v3462_v4  ;;  %1492 = vmatpush.msrb.mxu2 %v1294_v33  ;;  %v1051_v4 = vadd.f32 %v1050_v10, %v1031_v8  ;;  %v1551_v33 = vld [vmem:[%s3819_s5 + $0xd0] sm:$0xff]  ;;  %v1548_v8 = vld [vmem:[%s3819_s5 + $0xb8] sm:$0xff] }
 0x1b1   :  { %1429 = vmatpush.msra.mxu3 %v1331_v60  ;;  %1561 = vmatpush.msra.mxu0 %v1540_v53  ;;  %v1531_v10 = vld [vmem:[%s3819_s5 + $0x30] sm:$0xff]  ;;  %v1529_v60 = vld [vmem:[%s3819_s5 + $0x20] sm:$0xff] }
 0x1b2   :  { %1493 = vmatpush.msrb.mxu2 %v1292_v17  ;;  %vm1215_vm2 = vcmp.ge.f32.partialorder %v1051_v4, 0.0  ;;  %v1219_v14 = vmul.f32 0.2, %v1051_v4  ;;  %1581 = vmatpush.msra.mxu1 %v1556_v55  ;;  %v1549_v17 = vld [vmem:[%s3819_s5 + $0xc0] sm:$0xff] }
 0x1b3   :  { %1430 = vmatpush.msra.mxu3 %v1329_v12  ;;  %1562 = vmatpush.msra.mxu0 %v1539_v54  ;;  %v1527_v12 = vld [vmem:[%s3819_s5 + $0x10] sm:$0xff] }
 0x1b4   :  { %1494 = vmatpush.msrb.mxu2 %v1290_v11  ;;  %v1223_v18 = vsel %vm1215_vm2, %v1051_v4, %v1219_v14  ;;  %1582 = vmatpush.msra.mxu1 %v1555_v57  ;;  %v1530_v11 = vld [vmem:[%s3819_s5 + $0x28] sm:$0xff]  ;;  %v1528_v4 = vld [vmem:[%s3819_s5 + $0x18] sm:$0xff]  ;;  %v1547_v14 = vld [vmem:[%s3819_s5 + $0xb0] sm:$0xff] }
 0x1b5   :  { %1415 = vmatmul.f32.vlgmr.msra.gmra.mxu2 %v1223_v18  ;;  %1431 = vmatpush.msra.mxu3 %v1327_v16  ;;  %v1526_v16 = vld [vmem:[%s3819_s5 + $0x8] sm:$0xff] }
 0x1b6   :  { %1563 = vmatpush.msra.mxu0 %v1538_v56  ;;  %1583 = vmatpush.msra.mxu1 %v1554_v58 }
 0x1b7   :  { %1432 = vmatpush.msra.mxu3 %v1325_v19  ;;  %v1525_v19 = vld [vmem:[%s3819_s5] sm:$0xff] }
 0x1b8   :  { %1564 = vmatpush.msra.mxu0 %v1537_v59  ;;  %1584 = vmatpush.msra.mxu1 %v1553_v62 }
 0x1b9   :  { %1433 = vmatpush.msra.mxu3 %v1323_v20  ;;  %v1545_v20 = vld [vmem:[%s3819_s5 + $0xa0] sm:$0xff] }
 0x1ba   :  { %1565 = vmatpush.msra.mxu0 %v1536_v63  ;;  %1585 = vmatpush.msra.mxu1 %v1552_v0 }
 0x1bb   :  { %1434 = vmatpush.msra.mxu3 %v1321_v24  ;;  %v1544_v24 = vld [vmem:[%s3819_s5 + $0x98] sm:$0xff] }
 0x1bc   :  { %1566 = vmatpush.msra.mxu0 %v1535_v1  ;;  %1586 = vmatpush.msra.mxu1 %v1551_v33 }
 0x1bd   :  { %1495 = vmatmul.f32.vlgmr.msrb.gmra.mxu2 %v1223_v18  ;;  %1499 = vmatpush.msrb.mxu3 %v1352_v26  ;;  %v1546_v18 = vld [vmem:[%s3819_s5 + $0xa8] sm:$0xff]  ;;  %v1543_v26 = vld [vmem:[%s3819_s5 + $0x90] sm:$0xff] }
 0x1be   :  { %1567 = vmatpush.msra.mxu0 %v1534_v35  ;;  %1587 = vmatpush.msra.mxu1 %v1550_v5 }
 0x1bf   :  { %1500 = vmatpush.msrb.mxu3 %v1350_v61  ;;  %v1542_v61 = vld [vmem:[%s3819_s5 + $0x88] sm:$0xff] }
 0x1c0   :  { %1568 = vmatpush.msra.mxu0 %v1533_v6  ;;  %1588 = vmatpush.msra.mxu1 %v1549_v17 }
 0x1c1   :  { %1501 = vmatpush.msrb.mxu3 %v1348_v27  ;;  %v1541_v27 = vld [vmem:[%s3819_s5 + $0x80] sm:$0xff] }
 0x1c2   :  { %1569 = vmatpush.msra.mxu0 %v1532_v7  ;;  %1589 = vmatpush.msra.mxu1 %v1548_v8 }
 0x1c3   :  { %1502 = vmatpush.msrb.mxu3 %v1346_v2  ;;  %v12_v2 = vstv %s3820_s6 }
 0x1c4   :  { %1570 = vmatpush.msra.mxu0 %v1531_v10  ;;  %1590 = vmatpush.msra.mxu1 %v1547_v14  ;;  %13 = vst [vmem:[#allocation2] sm:$0x1] %v12_v2 }
 0x1c5   :  { %1503 = vmatpush.msrb.mxu3 %v1344_v29  ;;  %v1353_v29 = vld [vmem:[%s3821_s4] sm:$0x3] }
 0x1c6   :  { %1571 = vmatpush.msra.mxu0 %v1530_v11  ;;  %1591 = vmatpush.msra.mxu1 %v1546_v18 }
 0x1c7   :  { %1504 = vmatpush.msrb.mxu3 %v1342_v25  ;;  %v1355_v25 = vperm.slane %v1353_v29, 0 }
 0x1c8   :  { %1572 = vmatpush.msra.mxu0 %v1529_v60  ;;  %1592 = vmatpush.msra.mxu1 %v1545_v20 }
 0x1c9   :  { %1505 = vmatpush.msrb.mxu3 %v1340_v3 }
 0x1ca   :  { %1573 = vmatpush.msra.mxu0 %v1528_v4  ;;  %1593 = vmatpush.msra.mxu1 %v1544_v24 }
 0x1cb   :  { %1506 = vmatpush.msrb.mxu3 %v1338_v30 }
 0x1cc   :  { %1574 = vmatpush.msra.mxu0 %v1527_v12  ;;  %1594 = vmatpush.msra.mxu1 %v1543_v26 }
 0x1cd   :  { %1507 = vmatpush.msrb.mxu3 %v1336_v31 }
 0x1ce   :  { %1575 = vmatpush.msra.mxu0 %v1526_v16  ;;  %1595 = vmatpush.msra.mxu1 %v1542_v61 }
 0x1cf   :  { %1508 = vmatpush.msrb.mxu3 %v1334_v36 }
 0x1d0   :  { %1576 = vmatpush.msra.mxu0 %v1525_v19  ;;  %1596 = vmatpush.msra.mxu1 %v1541_v27 }
 0x1d1   :  { %1509 = vmatpush.msrb.mxu3 %v1332_v37 }
 0x1d3   :  { %1510 = vmatpush.msrb.mxu3 %v1330_v38  ;;  %v1356_v38 = vperm.slane %v1353_v29, 1 }
 0x1d5   :  { %1511 = vmatpush.msrb.mxu3 %v1328_v39 }
 0x1d7   :  { %1512 = vmatpush.msrb.mxu3 %v1326_v40 }
 0x1d9   :  { %1513 = vmatpush.msrb.mxu3 %v1324_v34 }
 0x1db   :  { %1514 = vmatpush.msrb.mxu3 %v1322_v41 }
 0x1df   :  { %v1070_v42 = vpop.f32.mrf.mxu0 }
 0x1e0   :  { %v1071_v23 = vadd.f32 %v1070_v42, %v547_v22  ;;  %v1090_v43 = vpop.f32.mrf.mxu1 }
 0x1e2   :  { %v1091_v44 = vadd.f32 %v1090_v43, %v1071_v23 }
 0x1e3   :  { %v1110_v45 = vpop.f32.mrf.mxu2 }
 0x1e4   :  { %v1111_v13 = vadd.f32 %v1110_v45, %v1091_v44  ;;  %v1130_v9 = vpop.f32.mrf.mxu3 }
 0x1e6   :  { %v1131_v28 = vadd.f32 %v1130_v9, %v1111_v13 }
 0x1eb   :  { %v1150_v15 = vpop.f32.mrf.mxu0 }
 0x1ec   :  { %v1151_v46 = vadd.f32 %v1150_v15, %v1131_v28 }
 0x1ef   :  { %v1170_v47 = vpop.f32.mrf.mxu1 }
 0x1f0   :  { %v1171_v48 = vadd.f32 %v1170_v47, %v1151_v46  ;;  %v1626_v47 = vld [vmem:[#allocation2] ss:$0 sm:$0xff] }
 0x1f3   :  { %v1190_v50 = vpop.f32.mrf.mxu2 }
 0x1f4   :  { %v1191_v21 = vadd.f32 %v1190_v50, %v1171_v48 }
 0x1f6   :  { %v1210_v49 = vpop.f32.mrf.mxu3 }
 0x1f7   :  { %v1211_v51 = vadd.f32 %v1210_v49, %v1191_v21 }
 0x1f9   :  { %vm1216_vm3 = vcmp.ge.f32.partialorder %v1211_v51, 0.0  ;;  %v1220_v32 = vmul.f32 0.2, %v1211_v51 }
 0x1fb   :  { %v1224_v52 = vsel %vm1216_vm3, %v1211_v51, %v1220_v32 }
 0x1fc   :  { %1435 = vmatmul.f32.vlgmr.msra.gmra.mxu3 %v1224_v52 }
 0x204   :  { %1515 = vmatmul.f32.vlgmr.msrb.gmra.mxu3 %v1224_v52 }
 0x20c   :  { %v1376_v3 = vpop.f32.mrf.mxu0 }
 0x20d   :  { %v1377_v30 = vadd.f32 %v1376_v3, %v1355_v25  ;;  %v1396_v36 = vpop.f32.mrf.mxu1 }
 0x20f   :  { %v1397_v37 = vadd.f32 %v1396_v36, %v1377_v30 }
 0x22c   :  { %v1456_v39 = vpop.f32.mrf.mxu0 }
 0x22d   :  { %v1457_v41 = vadd.f32 %v1456_v39, %v1356_v38  ;;  %v1476_v23 = vpop.f32.mrf.mxu1 }
 0x22f   :  { %v1477_v44 = vadd.f32 %v1476_v23, %v1457_v41 }
 0x238   :  { %v1416_v31 = vpop.f32.mrf.mxu2 }
 0x239   :  { %v1417_v40 = vadd.f32 %v1416_v31, %v1397_v37 }
 0x240   :  { %v1496_v43 = vpop.f32.mrf.mxu2 }
 0x241   :  { %v1497_v13 = vadd.f32 %v1496_v43, %v1477_v44 }
 0x27f   :  { %v1436_v34 = vpop.f32.mrf.mxu3 }
 0x280   :  { %v1437_v22 = vadd.f32 %v1436_v34, %v1417_v40 }
 0x282   :  { %vm1519_vm4 = vcmp.ge.f32.partialorder %v1437_v22, 0.0  ;;  %v1521_v42 = vmul.f32 0.2, %v1437_v22 }
 0x284   :  { %v1523_v45 = vsel %vm1519_vm4, %v1437_v22, %v1521_v42 }
 0x285   :  { %1577 = vmatmul.f32.vlgmr.msra.gmra.mxu0 %v1523_v45 }
 0x287   :  { %v1516_v9 = vpop.f32.mrf.mxu3 }
 0x288   :  { %v1517_v28 = vadd.f32 %v1516_v9, %v1497_v13 }
 0x28a   :  { %vm1520_vm5 = vcmp.ge.f32.partialorder %v1517_v28, 0.0  ;;  %v1522_v15 = vmul.f32 0.2, %v1517_v28 }
 0x28c   :  { %v1524_v46 = vsel %vm1520_vm5, %v1517_v28, %v1522_v15 }
 0x28d   :  { %1597 = vmatmul.f32.vlgmr.msra.gmra.mxu1 %v1524_v46 }
 0x302   :  { %v1578_v48 = vpop.f32.mrf.mxu0 }
 0x303   :  { %v1579_v50 = vadd.f32 %v1626_v47, %v1578_v48 }
 0x30a   :  { %v1598_v21 = vpop.f32.mrf.mxu1 }
 0x30b   :  { %v1599_v49 = vadd.f32 %v1598_v21, %v1579_v50 }
 0x30d   :  { %v1601_v51 = vsub.f32 0.0, %v1599_v49 }
 0x30f   :  { %v1602_v32 = vmul.f32 1.442695, %v1601_v51 }
 0x311   :  { %1627 = vpow2.f32 %v1602_v32 }
 0x317   :  { %v1628_v52 = vpop.eup %1627 }
 0x318   :  { %v1604_v53 = vadd.f32 1.0, %v1628_v52 }
 0x31a   :  { %1629 = vrcp.f32 %v1604_v53  ;;  %v1616_v57 = vand.u32 2147483648, %v1604_v53  ;;  %v1614_v59 = vand.u32 2147483647, %v1604_v53  ;;  %vm1610_vm7 = vweird.f32 %v1604_v53 }
 0x31c   :  { %v1617_v63 = vor.u32 1.1754944e-38, %v1616_v57  ;;  %vm1615_vm10 = vcmp.eq.f32.partialorder %v1614_v59, 8.507059e+37 }
 0x320   :  { %v1630_v54 = vpop.eup %1629 }
 0x321   :  { %v1606_v55 = vmul.f32 %v1630_v54, %v1604_v53  ;;  %vm1611_vm6 = vweird.f32 %v1630_v54 }
 0x322   :  { %vm1612_vm8 = vmor %vm1610_vm7, %vm1611_vm6 }
 0x323   :  { %v1607_v56 = vsub.f32 1.0, %v1606_v55 }
 0x325   :  { %v1608_v58 = vmul.f32 %v1630_v54, %v1607_v56 }
 0x327   :  { %v1609_v62 = vadd.f32 %v1630_v54, %v1608_v58 }
 0x329   :  { %v1613_v0 = vsel %vm1612_vm8, %v1630_v54, %v1609_v62 }
 0x32a   :  { %v1618_v1 = vsel %vm1615_vm10, %v1617_v63, %v1613_v0 }
 0x32b   :  { %1621 = vst.msk [vmem:[%s3822_s7] sm:$0x3] %vm1620_vm9, %v1618_v1 }

// kernel: stylegan_discriminator.2
= control target key start
LH: loop header
LB: loop body
LE: loop exit
PB: predicated region body
PF: predicated region fallthrough
CT: control target
= control target key end

     0   :  { %8 = vsyncpa [#allocation3], 0  ;;  %s6525_s0 = inlined_call_operand.vmem [shape: f32[2,1536], index: 0, kind: input, shape index: {}]   ;;  %s6526_s1 = inlined_call_operand.hbm [shape: bf16[1536,1024], index: 1, kind: input, shape index: {}]   ;;  %s6527_s2 = inlined_call_operand.hbm [shape: f32[1,1024], index: 2, kind: input, shape index: {}]   ;;  %s6528_s3 = inlined_call_operand.vmem [shape: f32[2,1024], index: 3, kind: output, shape index: {}]  }
   0x1   :  { %10 = vsyncpa [#allocation3 + $0x1], 0 }
   0x2   :  { %11 = vsyncpa [#allocation5], 0 }
   0x3   :  { %13 = vsyncpa [#allocation5 + $0x1], 0  ;;  %s5551_s12 = smov 0   ;;  %s5553_s13 = smov 0  }
   0x4   :  { %s5555_s14 = smov 0   ;;  %s5557_s15 = smov 0  }
   0x5   :  { %s5559_s16 = smov 0   ;;  %s5561_s17 = smov 0  }
   0x6 LB: > { %s3410_s18 = sadd.s32 4294967295, %s5526_s17   ;;  %s31_s19 = sadd.s32 1, %s5522_s16  ;;  %s5526_s17 = sphi %s5561_s17, %s19_s17   ;;  %s5522_s16 = sphi %s5559_s16, %s6535_s16   ;;  %s5518_s15 = sphi %s5557_s15, %s6534_s15   ;;  %s5514_s14 = sphi %s5555_s14, %s6533_s14   ;;  %s5510_s13 = sphi %s5553_s13, %s6532_s13   ;;  %s5506_s12 = sphi %s5551_s12, %s6531_s12  }
   0x7   : > { %p33_p0 = scmp.ge.s32.totalorder %s31_s19, 2  ;;  %s66_s20 = sadd.s32 1, %s5514_s14 }
   0x8   : > { %p73_p1 = scmp.ne.s32.totalorder %s5514_s14, %s5510_s13  ;;  %p74_p2 = scmp.eq.s32.totalorder %s5526_s17, 0 }
   0x9   : > { %s6537_s19 = smov (%p33_p0, %s31_s19), 0  ;;  %p79_p4 = scmp.ne.s32.totalorder %s5510_s13, %s5506_s12 }
   0xa   : > { %p75_p3 = por %p74_p2, %p73_p1  ;;  %s62_s21 = ssub.s32 %s5522_s16, %s6537_s19 }
   0xb   : > { %p80_p5 = scmp.eq.s32.totalorder %s3410_s18, 0  ;;  %p64_p6 = scmp.eq.s32.totalorder %s62_s21, 0 }
   0xc   : > { %p5359_p8 = scmp.lt.s32.totalorder %s5526_s17, 2  ;;  %s5599_s24 = sand.u32 1, %s5514_s14  }
   0xd   : > { %p5590_p7 = por %p80_p5, %p79_p4  ;;  %s4961_s25 = sshll.u32 %s5522_s16, 4 }
   0xe   : > { %s5596_s23 = scalar_select %p64_p6, %s5514_s14, %s66_s20  }
   0xf   : > { %s5346_s26 = smul.u32 3072, %s5599_s24  ;;  %s176_s29 = scalar_lea.hbm %s6526_s1, %s4961_s25 }
  0x10   : > { %p5606_p9 = pnand %p5359_p8, %p75_p3  ;;  %s177_s4 = sshll.u32 %s176_s29, 4  ;;  %s178_s4 = int_to_ptr.hbm [resolvable:$true] %s177_s4 }
  0x11   : > { %s168_s5 = scalar_lea.vmem [#allocation2], %s5346_s26  ;;  %p3419_p10 = scmp.ge.s32.totalorder %s5526_s17, 1 }
  0x12   : > { %s179_s6 = sshll.u32 %s168_s5, 4  ;;  %s165_s7 = scalar_lea.sflag [#allocation3], %s5599_s24  ;;  %s180_s6 = int_to_ptr.vmem [resolvable:$true] %s179_s6 }
  0x13   : > { %s5528_s8 = smov 512   ;;  %s5529_s9 = smov 256  }
  0x14   : > { %s5530_s10 = smov 16   ;;  %p206_p11 = scmp.lt.s32.totalorder %s5526_s17, 3 }
  0x15   : > { %5355 = dma.hbm_to_vmem [thread:$0]  (!%p5606_p9), %s178_s4, 49152, %s180_s6, %s165_s7, %s5528_s8, %s5529_s9, %s5530_s10  }
  0x16   : > { %s3417_s11 = sshll.u32 %s5599_s24, 2  ;;  %s3418_s12 = sshll.u32 %s5522_s16, 2 }
  0x17   : > { %p207_p12 = pnand %p3419_p10, %p206_p11  ;;  %s197_s21 = scalar_lea.hbm %s6527_s2, %s3418_s12 }
  0x18   : > { %s193_s25 = scalar_lea.vmem [#allocation4], %s3417_s11  ;;  %s199_s27 = sshll.u32 %s197_s21, 4  ;;  %s200_s27 = int_to_ptr.hbm [resolvable:$true] %s199_s27 }
  0x19   : > { %s201_s26 = sshll.u32 %s193_s25, 4  ;;  %s190_s28 = scalar_lea.sflag [#allocation5], %s5599_s24  ;;  %s202_s26 = int_to_ptr.vmem [resolvable:$true] %s201_s26 }
  0x1a   : > { %5358 = dma.hbm_to_vmem [thread:$0]  (!%p5606_p9), %s200_s27, 64, %s202_s26, %s190_s28  }
  0x1b   : > { %210 = sbr.rel (%p207_p12) target bundleno = 575 (0x23f), region = 32  ;;  %s212_s29 = sand.u32 (!%p207_p12), 1, %s5510_s13  }
  0x1c   : > { %s5347_s4 = smul.u32 (!%p207_p12), 3072, %s212_s29  ;;  %s213_s5 = scalar_lea.sflag (!%p207_p12), [#allocation3], %s212_s29 }
  0x1e   : > { %s5624_s6 = scalar_lea.vmem (!%p207_p12), [#allocation2], %s5347_s4 }
  0x20   : > { %5497 = dma.done.wait (%p5590_p7), %s213_s5, 49152  }
  0x21   : > { %5499 = vsyncadd (%p5590_p7), %s213_s5, 4294918144  ;;  %s3420_s7 = sshll.u32 %s212_s29, 2  ;;  %s223_s8 = scalar_lea.sflag [#allocation5], %s212_s29 }
  0x22   : > { %s5630_s9 = scalar_lea.vmem [#allocation4], %s3420_s7 }
  0x23   : > { %5501 = dma.done.wait (%p5590_p7), %s223_s8, 64  }
  0x24   : > { %5503 = vsyncadd (%p5590_p7), %s223_s8, 4294967232  ;;  %v3537_v0 = vld [vmem:[%s5624_s6 + $0xe0] sm:$0xf]  ;;  %v4992_v1 = vld [vmem:[%s5624_s6 + $0xec] sm:$0xf0]  ;;  %vm3262_vm0 = vcmask 1041408  }
  0x25   : > { %v3665_v2 = vld [vmem:[%s5624_s6 + $0x1e0] sm:$0xf]  ;;  %v3538_v3 = vor.u32 %v4992_v1, %v3537_v0  ;;  %v5024_v4 = vld [vmem:[%s5624_s6 + $0x1ec] sm:$0xf0]  ;;  %s3421_s18 = sshll.u32 %s5518_s15, 2  ;;  %vm3264_vm1 = vcmask 1045508  }
  0x26   : > { %v3793_v5 = vld [vmem:[%s5624_s6 + $0x2e0] sm:$0xf]  ;;  %v5056_v6 = vld [vmem:[%s5624_s6 + $0x2ec] sm:$0xf0]  ;;  %v3666_v7 = vor.u32 %v5024_v4, %v3665_v2  ;;  %p270_p13 = scmp.lt.s32.totalorder %s3421_s18, 7  ;;  %vm3266_vm2 = vcmask 1043456  }
  0x27   : > { %v3794_v8 = vor.u32 %v5056_v6, %v3793_v5  ;;  %v3921_v9 = vld [vmem:[%s5624_s6 + $0x3e0] sm:$0xf]  ;;  %v5088_v10 = vld [vmem:[%s5624_s6 + $0x3ec] sm:$0xf0]  ;;  %2631 = vmatpush.bf16.msra.mxu0 %v3538_v3 }
  0x28   : > { %v3521_v11 = vld [vmem:[%s5624_s6 + $0xc0] sm:$0xf]  ;;  %v3922_v12 = vor.u32 %v5088_v10, %v3921_v9  ;;  %v4988_v13 = vld [vmem:[%s5624_s6 + $0xcc] sm:$0xf0]  ;;  %2644 = vmatpush.bf16.msra.mxu1 %v3666_v7  ;;  %s6539_s18 = smov (!%p270_p13, %s3421_s18), 7 }
  0x29   : > { %v3649_v14 = vld [vmem:[%s5624_s6 + $0x1c0] sm:$0xf]  ;;  %v5020_v15 = vld [vmem:[%s5624_s6 + $0x1cc] sm:$0xf0]  ;;  %2657 = vmatpush.bf16.msra.mxu2 %v3794_v8  ;;  %v3522_v16 = vor.u32 %v4988_v13, %v3521_v11  ;;  %s3422_s15 = sshll.u32 %s6539_s18, 1 }
  0x2a   : > { %v3650_v17 = vor.u32 %v5020_v15, %v3649_v14  ;;  %v3777_v18 = vld [vmem:[%s5624_s6 + $0x2c0] sm:$0xf]  ;;  %v5052_v19 = vld [vmem:[%s5624_s6 + $0x2cc] sm:$0xf0]  ;;  %2670 = vmatpush.bf16.msra.mxu3 %v3922_v12  ;;  %s273_s25 = scalar_lea.vmem %s6528_s3, %s3422_s15 }
  0x2b   : > { %v3905_v20 = vld [vmem:[%s5624_s6 + $0x3c0] sm:$0xf]  ;;  %v3778_v21 = vor.u32 %v5052_v19, %v3777_v18  ;;  %v5084_v22 = vld [vmem:[%s5624_s6 + $0x3cc] sm:$0xf0]  ;;  %2632 = vmatpush.bf16.msra.mxu0 %v3522_v16 }
  0x2c   : > { %v3505_v23 = vld [vmem:[%s5624_s6 + $0xa0] sm:$0xf]  ;;  %v4984_v24 = vld [vmem:[%s5624_s6 + $0xac] sm:$0xf0]  ;;  %v3906_v25 = vor.u32 %v5084_v22, %v3905_v20  ;;  %2645 = vmatpush.bf16.msra.mxu1 %v3650_v17 }
  0x2d   : > { %v3633_v26 = vld [vmem:[%s5624_s6 + $0x1a0] sm:$0xf]  ;;  %v5016_v27 = vld [vmem:[%s5624_s6 + $0x1ac] sm:$0xf0]  ;;  %v3506_v29 = vor.u32 %v4984_v24, %v3505_v23  ;;  %2658 = vmatpush.bf16.msra.mxu2 %v3778_v21 }
  0x2e   : > { %v3761_v28 = vld [vmem:[%s5624_s6 + $0x2a0] sm:$0xf]  ;;  %v5048_v30 = vld [vmem:[%s5624_s6 + $0x2ac] sm:$0xf0]  ;;  %v3634_v33 = vor.u32 %v5016_v27, %v3633_v26  ;;  %2671 = vmatpush.bf16.msra.mxu3 %v3906_v25 }
  0x2f   : > { %v3889_v31 = vld [vmem:[%s5624_s6 + $0x3a0] sm:$0xf]  ;;  %v5080_v32 = vld [vmem:[%s5624_s6 + $0x3ac] sm:$0xf0]  ;;  %v3762_v34 = vor.u32 %v5048_v30, %v3761_v28  ;;  %2633 = vmatpush.bf16.msra.mxu0 %v3506_v29 }
  0x30   : > { %v3489_v35 = vld [vmem:[%s5624_s6 + $0x80] sm:$0xf]  ;;  %v4980_v36 = vld [vmem:[%s5624_s6 + $0x8c] sm:$0xf0]  ;;  %v3890_v38 = vor.u32 %v5080_v32, %v3889_v31  ;;  %2646 = vmatpush.bf16.msra.mxu1 %v3634_v33 }
  0x31   : > { %v3617_v37 = vld [vmem:[%s5624_s6 + $0x180] sm:$0xf]  ;;  %v5012_v39 = vld [vmem:[%s5624_s6 + $0x18c] sm:$0xf0]  ;;  %v3490_v44 = vor.u32 %v4980_v36, %v3489_v35  ;;  %2659 = vmatpush.bf16.msra.mxu2 %v3762_v34 }
  0x32   : > { %v3745_v40 = vld [vmem:[%s5624_s6 + $0x280] sm:$0xf]  ;;  %v5044_v41 = vld [vmem:[%s5624_s6 + $0x28c] sm:$0xf0]  ;;  %v3618_v45 = vor.u32 %v5012_v39, %v3617_v37  ;;  %2672 = vmatpush.bf16.msra.mxu3 %v3890_v38 }
  0x33   : > { %v3873_v42 = vld [vmem:[%s5624_s6 + $0x380] sm:$0xf]  ;;  %v5076_v43 = vld [vmem:[%s5624_s6 + $0x38c] sm:$0xf0]  ;;  %v3746_v46 = vor.u32 %v5044_v41, %v3745_v40  ;;  %2634 = vmatpush.bf16.msra.mxu0 %v3490_v44 }
  0x34   : > { %v3473_v47 = vld [vmem:[%s5624_s6 + $0x60] sm:$0xf]  ;;  %v4976_v48 = vld [vmem:[%s5624_s6 + $0x6c] sm:$0xf0]  ;;  %v3874_v50 = vor.u32 %v5076_v43, %v3873_v42  ;;  %2647 = vmatpush.bf16.msra.mxu1 %v3618_v45 }
  0x35   : > { %v3601_v49 = vld [vmem:[%s5624_s6 + $0x160] sm:$0xf]  ;;  %v5008_v51 = vld [vmem:[%s5624_s6 + $0x16c] sm:$0xf0]  ;;  %v3474_v56 = vor.u32 %v4976_v48, %v3473_v47  ;;  %2660 = vmatpush.bf16.msra.mxu2 %v3746_v46 }
  0x36   : > { %v3729_v52 = vld [vmem:[%s5624_s6 + $0x260] sm:$0xf]  ;;  %v5040_v53 = vld [vmem:[%s5624_s6 + $0x26c] sm:$0xf0]  ;;  %v3602_v57 = vor.u32 %v5008_v51, %v3601_v49  ;;  %2673 = vmatpush.bf16.msra.mxu3 %v3874_v50 }
  0x37   : > { %v3857_v54 = vld [vmem:[%s5624_s6 + $0x360] sm:$0xf]  ;;  %v5072_v55 = vld [vmem:[%s5624_s6 + $0x36c] sm:$0xf0]  ;;  %v3730_v58 = vor.u32 %v5040_v53, %v3729_v52  ;;  %2635 = vmatpush.bf16.msra.mxu0 %v3474_v56 }
  0x38   : > { %v3457_v59 = vld [vmem:[%s5624_s6 + $0x40] sm:$0xf]  ;;  %v4972_v60 = vld [vmem:[%s5624_s6 + $0x4c] sm:$0xf0]  ;;  %v3858_v62 = vor.u32 %v5072_v55, %v3857_v54  ;;  %2648 = vmatpush.bf16.msra.mxu1 %v3602_v57 }
  0x39   : > { %v3585_v61 = vld [vmem:[%s5624_s6 + $0x140] sm:$0xf]  ;;  %v5004_v63 = vld [vmem:[%s5624_s6 + $0x14c] sm:$0xf0]  ;;  %v3458_v4 = vor.u32 %v4972_v60, %v3457_v59  ;;  %2661 = vmatpush.bf16.msra.mxu2 %v3730_v58  ;;  %v281_v59 = vld [vmem:[%s6525_s0] sm:$0xff] }
  0x3a   : > { %v3713_v0 = vld [vmem:[%s5624_s6 + $0x240] sm:$0xf]  ;;  %v5036_v1 = vld [vmem:[%s5624_s6 + $0x24c] sm:$0xf0]  ;;  %v3586_v5 = vor.u32 %v5004_v63, %v3585_v61  ;;  %2674 = vmatpush.bf16.msra.mxu3 %v3858_v62  ;;  %287 = vst [vmem:[#allocation1] ss:$4 sm:$0xff] %v281_v59 }
  0x3b   : > { %v3841_v2 = vld [vmem:[%s5624_s6 + $0x340] sm:$0xf]  ;;  %v5068_v3 = vld [vmem:[%s5624_s6 + $0x34c] sm:$0xf0]  ;;  %v3714_v6 = vor.u32 %v5036_v1, %v3713_v0  ;;  %2636 = vmatpush.bf16.msra.mxu0 %v3458_v4 }
  0x3c   : > { %v3441_v7 = vld [vmem:[%s5624_s6 + $0x20] sm:$0xf]  ;;  %v4968_v8 = vld [vmem:[%s5624_s6 + $0x2c] sm:$0xf0]  ;;  %v3842_v10 = vor.u32 %v5068_v3, %v3841_v2  ;;  %2649 = vmatpush.bf16.msra.mxu1 %v3586_v5 }
  0x3d   : > { %v3569_v9 = vld [vmem:[%s5624_s6 + $0x120] sm:$0xf]  ;;  %v5000_v11 = vld [vmem:[%s5624_s6 + $0x12c] sm:$0xf0]  ;;  %v3442_v16 = vor.u32 %v4968_v8, %v3441_v7  ;;  %2662 = vmatpush.bf16.msra.mxu2 %v3714_v6 }
  0x3e   : > { %v3697_v12 = vld [vmem:[%s5624_s6 + $0x220] sm:$0xf]  ;;  %v5032_v13 = vld [vmem:[%s5624_s6 + $0x22c] sm:$0xf0]  ;;  %v3570_v19 = vor.u32 %v5000_v11, %v3569_v9  ;;  %2675 = vmatpush.bf16.msra.mxu3 %v3842_v10 }
  0x3f   : > { %v3825_v14 = vld [vmem:[%s5624_s6 + $0x320] sm:$0xf]  ;;  %v5064_v15 = vld [vmem:[%s5624_s6 + $0x32c] sm:$0xf0]  ;;  %v3698_v20 = vor.u32 %v5032_v13, %v3697_v12  ;;  %2637 = vmatpush.bf16.msra.mxu0 %v3442_v16 }
  0x40   : > { %v3425_v17 = vld [vmem:[%s5624_s6] sm:$0xf]  ;;  %v4964_v18 = vld [vmem:[%s5624_s6 + $0xc] sm:$0xf0]  ;;  %v3826_v24 = vor.u32 %v5064_v15, %v3825_v14  ;;  %2650 = vmatpush.bf16.msra.mxu1 %v3570_v19 }
  0x41   : > { %v3553_v21 = vld [vmem:[%s5624_s6 + $0x100] sm:$0xf]  ;;  %v4996_v22 = vld [vmem:[%s5624_s6 + $0x10c] sm:$0xf0]  ;;  %v3426_v31 = vor.u32 %v4964_v18, %v3425_v17  ;;  %2663 = vmatpush.bf16.msra.mxu2 %v3698_v20  ;;  %v283_v20 = vld [vmem:[%s6525_s0 + $0x10] sm:$0xff] }
  0x42   : > { %v3681_v23 = vld [vmem:[%s5624_s6 + $0x200] sm:$0xf]  ;;  %v5028_v25 = vld [vmem:[%s5624_s6 + $0x20c] sm:$0xf0]  ;;  %v3554_v35 = vor.u32 %v4996_v22, %v3553_v21  ;;  %2676 = vmatpush.bf16.msra.mxu3 %v3826_v24 }
  0x43   : > { %v3809_v26 = vld [vmem:[%s5624_s6 + $0x300] sm:$0xf]  ;;  %v5060_v27 = vld [vmem:[%s5624_s6 + $0x30c] sm:$0xf0]  ;;  %v3682_v36 = vor.u32 %v5028_v25, %v3681_v23  ;;  %2638 = vmatpush.bf16.msra.mxu0 %v3426_v31 }
  0x44   : > { %v4049_v28 = vld [vmem:[%s5624_s6 + $0x4e0] sm:$0xf]  ;;  %v5120_v29 = vld [vmem:[%s5624_s6 + $0x4ec] sm:$0xf0]  ;;  %v3810_v39 = vor.u32 %v5060_v27, %v3809_v26  ;;  %2651 = vmatpush.bf16.msra.mxu1 %v3554_v35 }
  0x45   : > { %v4177_v30 = vld [vmem:[%s5624_s6 + $0x5e0] sm:$0xf]  ;;  %v5152_v32 = vld [vmem:[%s5624_s6 + $0x5ec] sm:$0xf0]  ;;  %v4050_v40 = vor.u32 %v5120_v29, %v4049_v28  ;;  %2664 = vmatpush.bf16.msra.mxu2 %v3682_v36 }
  0x46   : > { %v4305_v33 = vld [vmem:[%s5624_s6 + $0x6e0] sm:$0xf]  ;;  %v5184_v34 = vld [vmem:[%s5624_s6 + $0x6ec] sm:$0xf0]  ;;  %v4178_v41 = vor.u32 %v5152_v32, %v4177_v30  ;;  %2677 = vmatpush.bf16.msra.mxu3 %v3810_v39 }
  0x47   : > { %v4433_v37 = vld [vmem:[%s5624_s6 + $0x7e0] sm:$0xf]  ;;  %v5216_v38 = vld [vmem:[%s5624_s6 + $0x7ec] sm:$0xf0]  ;;  %v4306_v42 = vor.u32 %v5184_v34, %v4305_v33  ;;  %2683 = vmatpush.bf16.msrb.mxu0 %v4050_v40 }
  0x48   : > { %v4033_v43 = vld [vmem:[%s5624_s6 + $0x4c0] sm:$0xf]  ;;  %v5116_v44 = vld [vmem:[%s5624_s6 + $0x4cc] sm:$0xf0]  ;;  %v4434_v46 = vor.u32 %v5216_v38, %v4433_v37  ;;  %2696 = vmatpush.bf16.msrb.mxu1 %v4178_v41 }
  0x49   : > { %v4161_v45 = vld [vmem:[%s5624_s6 + $0x5c0] sm:$0xf]  ;;  %v5148_v47 = vld [vmem:[%s5624_s6 + $0x5cc] sm:$0xf0]  ;;  %v4034_v52 = vor.u32 %v5116_v44, %v4033_v43  ;;  %2709 = vmatpush.bf16.msrb.mxu2 %v4306_v42 }
  0x4a   : > { %v4289_v48 = vld [vmem:[%s5624_s6 + $0x6c0] sm:$0xf]  ;;  %v5180_v49 = vld [vmem:[%s5624_s6 + $0x6cc] sm:$0xf0]  ;;  %v4162_v55 = vor.u32 %v5148_v47, %v4161_v45  ;;  %2722 = vmatpush.bf16.msrb.mxu3 %v4434_v46 }
  0x4b   : > { %v4417_v50 = vld [vmem:[%s5624_s6 + $0x7c0] sm:$0xf]  ;;  %v5212_v51 = vld [vmem:[%s5624_s6 + $0x7cc] sm:$0xf0]  ;;  %v4290_v56 = vor.u32 %v5180_v49, %v4289_v48  ;;  %2684 = vmatpush.bf16.msrb.mxu0 %v4034_v52 }
  0x4c   : > { %v4017_v53 = vld [vmem:[%s5624_s6 + $0x4a0] sm:$0xf]  ;;  %v5112_v54 = vld [vmem:[%s5624_s6 + $0x4ac] sm:$0xf0]  ;;  %v4418_v60 = vor.u32 %v5212_v51, %v4417_v50  ;;  %2697 = vmatpush.bf16.msrb.mxu1 %v4162_v55 }
  0x4d   : > { %v4145_v57 = vld [vmem:[%s5624_s6 + $0x5a0] sm:$0xf]  ;;  %v5144_v58 = vld [vmem:[%s5624_s6 + $0x5ac] sm:$0xf0]  ;;  %v4018_v1 = vor.u32 %v5112_v54, %v4017_v53  ;;  %2710 = vmatpush.bf16.msrb.mxu2 %v4290_v56 }
  0x4e   : > { %v4273_v61 = vld [vmem:[%s5624_s6 + $0x6a0] sm:$0xf]  ;;  %v5176_v62 = vld [vmem:[%s5624_s6 + $0x6ac] sm:$0xf0]  ;;  %v4146_v3 = vor.u32 %v5144_v58, %v4145_v57  ;;  %2723 = vmatpush.bf16.msrb.mxu3 %v4418_v60 }
  0x4f   : > { %v4401_v63 = vld [vmem:[%s5624_s6 + $0x7a0] sm:$0xf]  ;;  %v5208_v0 = vld [vmem:[%s5624_s6 + $0x7ac] sm:$0xf0]  ;;  %v4274_v4 = vor.u32 %v5176_v62, %v4273_v61  ;;  %2685 = vmatpush.bf16.msrb.mxu0 %v4018_v1 }
  0x50   : > { %v4001_v2 = vld [vmem:[%s5624_s6 + $0x480] sm:$0xf]  ;;  %v5108_v5 = vld [vmem:[%s5624_s6 + $0x48c] sm:$0xf0]  ;;  %v4402_v8 = vor.u32 %v5208_v0, %v4401_v63  ;;  %2698 = vmatpush.bf16.msrb.mxu1 %v4146_v3 }
  0x51   : > { %v4129_v6 = vld [vmem:[%s5624_s6 + $0x580] sm:$0xf]  ;;  %v5140_v7 = vld [vmem:[%s5624_s6 + $0x58c] sm:$0xf0]  ;;  %v4002_v15 = vor.u32 %v5108_v5, %v4001_v2  ;;  %2711 = vmatpush.bf16.msrb.mxu2 %v4274_v4 }
  0x52   : > { %v4257_v9 = vld [vmem:[%s5624_s6 + $0x680] sm:$0xf]  ;;  %v5172_v10 = vld [vmem:[%s5624_s6 + $0x68c] sm:$0xf0]  ;;  %v4130_v21 = vor.u32 %v5140_v7, %v4129_v6  ;;  %2724 = vmatpush.bf16.msrb.mxu3 %v4402_v8 }
  0x53   : > { %v4385_v11 = vld [vmem:[%s5624_s6 + $0x780] sm:$0xf]  ;;  %v5204_v12 = vld [vmem:[%s5624_s6 + $0x78c] sm:$0xf0]  ;;  %v4258_v22 = vor.u32 %v5172_v10, %v4257_v9  ;;  %2686 = vmatpush.bf16.msrb.mxu0 %v4002_v15 }
  0x54   : > { %v3985_v13 = vld [vmem:[%s5624_s6 + $0x460] sm:$0xf]  ;;  %v5104_v14 = vld [vmem:[%s5624_s6 + $0x46c] sm:$0xf0]  ;;  %v4386_v25 = vor.u32 %v5204_v12, %v4385_v11  ;;  %2699 = vmatpush.bf16.msrb.mxu1 %v4130_v21 }
  0x55   : > { %v4113_v16 = vld [vmem:[%s5624_s6 + $0x560] sm:$0xf]  ;;  %v5136_v17 = vld [vmem:[%s5624_s6 + $0x56c] sm:$0xf0]  ;;  %v3986_v34 = vor.u32 %v5104_v14, %v3985_v13  ;;  %2712 = vmatpush.bf16.msrb.mxu2 %v4258_v22 }
  0x56   : > { %v4241_v18 = vld [vmem:[%s5624_s6 + $0x660] sm:$0xf]  ;;  %v5168_v19 = vld [vmem:[%s5624_s6 + $0x66c] sm:$0xf0]  ;;  %v4114_v35 = vor.u32 %v5136_v17, %v4113_v16  ;;  %2725 = vmatpush.bf16.msrb.mxu3 %v4386_v25 }
  0x57   : > { %v292_v23 = vld.sshfl [vmem:[#allocation1 + $0x10] sm:$0xff pattern:$0x73625140]  ;;  %v290_v24 = vld.sshfl [vmem:[#allocation1] sm:$0xff pattern:$0x73625140]  ;;  %v4242_v36 = vor.u32 %v5168_v19, %v4241_v18  ;;  %2687 = vmatpush.bf16.msrb.mxu0 %v3986_v34 }
  0x58   : > { %v5744_v26 = vpack.c.bf16 %v292_v23, %v292_v23  ;;  %v5746_v27 = vpack.c.bf16 %v290_v24, %v290_v24  ;;  %v293_v28 = vld.sshfl [vmem:[#allocation1 + $0x18] sm:$0xff pattern:$0x73625140]  ;;  %v291_v29 = vld.sshfl [vmem:[#allocation1 + $0x8] sm:$0xff pattern:$0x73625140]  ;;  %2700 = vmatpush.bf16.msrb.mxu1 %v4114_v35 }
  0x59   : > { %v4369_v30 = vld [vmem:[%s5624_s6 + $0x760] sm:$0xf]  ;;  %v5200_v31 = vld [vmem:[%s5624_s6 + $0x76c] sm:$0xf0]  ;;  %v5750_v32 = vpack.c.bf16 %v293_v28, %v293_v28  ;;  %298 = vst [vmem:[#allocation1] ss:$4 sm:$0xff] %v283_v20  ;;  %v5752_v33 = vpack.c.bf16 %v291_v29, %v291_v29  ;;  %2713 = vmatpush.bf16.msrb.mxu2 %v4242_v36 }
  0x5a   : > { %2665 = vmatmul.bf16.vlgmr.msra.gmra.mxu2 %v5744_v26  ;;  %v3969_v37 = vld [vmem:[%s5624_s6 + $0x440] sm:$0xf]  ;;  %v5100_v38 = vld [vmem:[%s5624_s6 + $0x44c] sm:$0xf0]  ;;  %v4370_v40 = vor.u32 %v5200_v31, %v4369_v30  ;;  %2639 = vmatmul.bf16.vlgmr.msra.gmra.mxu0 %v5746_v27 }
  0x5b   : > { %v4097_v39 = vld [vmem:[%s5624_s6 + $0x540] sm:$0xf]  ;;  %v5132_v41 = vld [vmem:[%s5624_s6 + $0x54c] sm:$0xf0]  ;;  %2678 = vmatmul.bf16.vlgmr.msra.gmra.mxu3 %v5750_v32  ;;  %2652 = vmatmul.bf16.vlgmr.msra.gmra.mxu1 %v5752_v33  ;;  %v3970_v46 = vor.u32 %v5100_v38, %v3969_v37 }
  0x5c   : > { %v4225_v42 = vld [vmem:[%s5624_s6 + $0x640] sm:$0xf]  ;;  %v5164_v43 = vld [vmem:[%s5624_s6 + $0x64c] sm:$0xf0]  ;;  %v4098_v48 = vor.u32 %v5132_v41, %v4097_v39  ;;  %2726 = vmatpush.bf16.msrb.mxu3 %v4370_v40 }
  0x5d   : > { %v4353_v44 = vld [vmem:[%s5624_s6 + $0x740] sm:$0xf]  ;;  %v5196_v45 = vld [vmem:[%s5624_s6 + $0x74c] sm:$0xf0]  ;;  %v4226_v49 = vor.u32 %v5164_v43, %v4225_v42  ;;  %2688 = vmatpush.bf16.msrb.mxu0 %v3970_v46 }
  0x5e   : > { %v3953_v47 = vld [vmem:[%s5624_s6 + $0x420] sm:$0xf]  ;;  %v5096_v50 = vld [vmem:[%s5624_s6 + $0x42c] sm:$0xf0]  ;;  %v4354_v53 = vor.u32 %v5196_v45, %v4353_v44  ;;  %2701 = vmatpush.bf16.msrb.mxu1 %v4098_v48 }
  0x5f   : > { %v4081_v51 = vld [vmem:[%s5624_s6 + $0x520] sm:$0xf]  ;;  %v5128_v52 = vld [vmem:[%s5624_s6 + $0x52c] sm:$0xf0]  ;;  %v3954_v59 = vor.u32 %v5096_v50, %v3953_v47  ;;  %2714 = vmatpush.bf16.msrb.mxu2 %v4226_v49 }
  0x60   : > { %v4209_v54 = vld [vmem:[%s5624_s6 + $0x620] sm:$0xf]  ;;  %v5160_v55 = vld [vmem:[%s5624_s6 + $0x62c] sm:$0xf0]  ;;  %v4082_v63 = vor.u32 %v5128_v52, %v4081_v51  ;;  %2727 = vmatpush.bf16.msrb.mxu3 %v4354_v53 }
  0x61   : > { %v282_v56 = vld [vmem:[%s6525_s0 + $0x8] sm:$0xff]  ;;  %v5192_v58 = vld [vmem:[%s5624_s6 + $0x72c] sm:$0xf0]  ;;  %v4210_v0 = vor.u32 %v5160_v55, %v4209_v54  ;;  %2689 = vmatpush.bf16.msrb.mxu0 %v3954_v59 }
  0x62   : > { %v4337_v57 = vld [vmem:[%s5624_s6 + $0x720] sm:$0xf]  ;;  %289 = vst [vmem:[#allocation1 + $0x20] ss:$4 sm:$0xff] %v282_v56  ;;  %v5092_v61 = vld [vmem:[%s5624_s6 + $0x40c] sm:$0xf0]  ;;  %2702 = vmatpush.bf16.msrb.mxu1 %v4082_v63 }
  0x63   : > { %v3937_v60 = vld [vmem:[%s5624_s6 + $0x400] sm:$0xf]  ;;  %v5124_v1 = vld [vmem:[%s5624_s6 + $0x50c] sm:$0xf0]  ;;  %v4338_v4 = vor.u32 %v5192_v58, %v4337_v57  ;;  %2715 = vmatpush.bf16.msrb.mxu2 %v4210_v0 }
  0x64   : > { %v4065_v62 = vld [vmem:[%s5624_s6 + $0x500] sm:$0xf]  ;;  %v5156_v3 = vld [vmem:[%s5624_s6 + $0x60c] sm:$0xf0]  ;;  %v3938_v11 = vor.u32 %v5092_v61, %v3937_v60 }
  0x65   : > { %v4193_v2 = vld [vmem:[%s5624_s6 + $0x600] sm:$0xf]  ;;  %v5188_v6 = vld [vmem:[%s5624_s6 + $0x70c] sm:$0xf0]  ;;  %v4066_v15 = vor.u32 %v5124_v1, %v4065_v62  ;;  %2728 = vmatpush.bf16.msrb.mxu3 %v4338_v4 }
  0x66   : > { %v4321_v5 = vld [vmem:[%s5624_s6 + $0x700] sm:$0xf]  ;;  %v5248_v8 = vld [vmem:[%s5624_s6 + $0x8ec] sm:$0xf0]  ;;  %v4194_v16 = vor.u32 %v5156_v3, %v4193_v2  ;;  %2690 = vmatpush.bf16.msrb.mxu0 %v3938_v11 }
  0x67   : > { %v4561_v7 = vld [vmem:[%s5624_s6 + $0x8e0] sm:$0xf]  ;;  %v5280_v10 = vld [vmem:[%s5624_s6 + $0x9ec] sm:$0xf0]  ;;  %v4322_v20 = vor.u32 %v5188_v6, %v4321_v5  ;;  %2703 = vmatpush.bf16.msrb.mxu1 %v4066_v15 }
  0x68   : > { %v4689_v9 = vld [vmem:[%s5624_s6 + $0x9e0] sm:$0xf]  ;;  %v5312_v13 = vld [vmem:[%s5624_s6 + $0xaec] sm:$0xf0]  ;;  %v4562_v21 = vor.u32 %v5248_v8, %v4561_v7  ;;  %2716 = vmatpush.bf16.msrb.mxu2 %v4194_v16 }
  0x69   : > { %v4817_v12 = vld [vmem:[%s5624_s6 + $0xae0] sm:$0xf]  ;;  %v5344_v17 = vld [vmem:[%s5624_s6 + $0xbec] sm:$0xf0]  ;;  %v4690_v25 = vor.u32 %v5280_v10, %v4689_v9  ;;  %2729 = vmatpush.bf16.msrb.mxu3 %v4322_v20 }
  0x6a   : > { %v4945_v14 = vld [vmem:[%s5624_s6 + $0xbe0] sm:$0xf]  ;;  %v5244_v19 = vld [vmem:[%s5624_s6 + $0x8cc] sm:$0xf0]  ;;  %v4818_v28 = vor.u32 %v5312_v13, %v4817_v12  ;;  %2735 = vmatpush.bf16.msra.mxu0 %v4562_v21 }
  0x6b   : > { %v4545_v18 = vld [vmem:[%s5624_s6 + $0x8c0] sm:$0xf]  ;;  %v296_v23 = vld.sshfl [vmem:[#allocation1 + $0x30] sm:$0xff pattern:$0x73625140]  ;;  %v4946_v31 = vor.u32 %v5344_v17, %v4945_v14  ;;  %2748 = vmatpush.bf16.msra.mxu1 %v4690_v25 }
  0x6c   : > { %v4673_v22 = vld [vmem:[%s5624_s6 + $0x9c0] sm:$0xf]  ;;  %v294_v24 = vld.sshfl [vmem:[#allocation1 + $0x20] sm:$0xff pattern:$0x73625140]  ;;  %v5799_v37 = vpack.c.bf16 %v296_v23, %v296_v23  ;;  %v4546_v42 = vor.u32 %v5244_v19, %v4545_v18  ;;  %2761 = vmatpush.bf16.msra.mxu2 %v4818_v28 }
  0x6d   : > { %v297_v29 = vld.sshfl [vmem:[#allocation1 + $0x38] sm:$0xff pattern:$0x73625140]  ;;  %v295_v30 = vld.sshfl [vmem:[#allocation1 + $0x28] sm:$0xff pattern:$0x73625140]  ;;  %v5803_v40 = vpack.c.bf16 %v294_v24, %v294_v24  ;;  %2774 = vmatpush.bf16.msra.mxu3 %v4946_v31 }
  0x6e   : > { %v5276_v34 = vld [vmem:[%s5624_s6 + $0x9cc] sm:$0xf0]  ;;  %v4801_v35 = vld [vmem:[%s5624_s6 + $0xac0] sm:$0xf]  ;;  %v5805_v41 = vpack.c.bf16 %v297_v29, %v297_v29  ;;  %v5807_v43 = vpack.c.bf16 %v295_v30, %v295_v30  ;;  %2717 = vmatmul.bf16.vlgmr.msrb.gmra.mxu2 %v5799_v37  ;;  %2736 = vmatpush.bf16.msra.mxu0 %v4546_v42 }
  0x6f   : > { %v5308_v36 = vld [vmem:[%s5624_s6 + $0xacc] sm:$0xf0]  ;;  %v4929_v38 = vld [vmem:[%s5624_s6 + $0xbc0] sm:$0xf]  ;;  %v4674_v44 = vor.u32 %v5276_v34, %v4673_v22  ;;  %2691 = vmatmul.bf16.vlgmr.msrb.gmra.mxu0 %v5803_v40 }
  0x70   : > { %v5340_v39 = vld [vmem:[%s5624_s6 + $0xbcc] sm:$0xf0]  ;;  %v4802_v45 = vor.u32 %v5308_v36, %v4801_v35  ;;  %v4529_v46 = vld [vmem:[%s5624_s6 + $0x8a0] sm:$0xf]  ;;  %2730 = vmatmul.bf16.vlgmr.msrb.gmra.mxu3 %v5805_v41  ;;  %2704 = vmatmul.bf16.vlgmr.msrb.gmra.mxu1 %v5807_v43 }
  0x71   : > { %v5240_v47 = vld [vmem:[%s5624_s6 + $0x8ac] sm:$0xf0]  ;;  %v4657_v48 = vld [vmem:[%s5624_s6 + $0x9a0] sm:$0xf]  ;;  %v4930_v49 = vor.u32 %v5340_v39, %v4929_v38  ;;  %2749 = vmatpush.bf16.msra.mxu1 %v4674_v44 }
  0x72   : > { %v5272_v50 = vld [vmem:[%s5624_s6 + $0x9ac] sm:$0xf0]  ;;  %v4785_v51 = vld [vmem:[%s5624_s6 + $0xaa0] sm:$0xf]  ;;  %v4530_v55 = vor.u32 %v5240_v47, %v4529_v46  ;;  %2762 = vmatpush.bf16.msra.mxu2 %v4802_v45 }
  0x73   : > { %v5304_v52 = vld [vmem:[%s5624_s6 + $0xaac] sm:$0xf0]  ;;  %v4913_v53 = vld [vmem:[%s5624_s6 + $0xba0] sm:$0xf]  ;;  %v4658_v56 = vor.u32 %v5272_v50, %v4657_v48  ;;  %2775 = vmatpush.bf16.msra.mxu3 %v4930_v49 }
  0x74   : > { %v5336_v54 = vld [vmem:[%s5624_s6 + $0xbac] sm:$0xf0]  ;;  %v4786_v57 = vor.u32 %v5304_v52, %v4785_v51  ;;  %v4513_v58 = vld [vmem:[%s5624_s6 + $0x880] sm:$0xf]  ;;  %2737 = vmatpush.bf16.msra.mxu0 %v4530_v55 }
  0x75   : > { %v5236_v59 = vld [vmem:[%s5624_s6 + $0x88c] sm:$0xf0]  ;;  %v4641_v60 = vld [vmem:[%s5624_s6 + $0x980] sm:$0xf]  ;;  %v4914_v61 = vor.u32 %v5336_v54, %v4913_v53  ;;  %2750 = vmatpush.bf16.msra.mxu1 %v4658_v56 }
  0x76   : > { %v5268_v62 = vld [vmem:[%s5624_s6 + $0x98c] sm:$0xf0]  ;;  %v4769_v63 = vld [vmem:[%s5624_s6 + $0xa80] sm:$0xf]  ;;  %v4514_v3 = vor.u32 %v5236_v59, %v4513_v58  ;;  %2763 = vmatpush.bf16.msra.mxu2 %v4786_v57  ;;  %v4990_v59 = vld [vmem:[%s5624_s6 + $0xe4] sm:$0xf] }
  0x77   : > { %v5300_v0 = vld [vmem:[%s5624_s6 + $0xa8c] sm:$0xf0]  ;;  %v4897_v1 = vld [vmem:[%s5624_s6 + $0xb80] sm:$0xf]  ;;  %v4642_v4 = vor.u32 %v5268_v62, %v4641_v60  ;;  %2776 = vmatpush.bf16.msra.mxu3 %v4914_v61  ;;  %v3539_v60 = vld [vmem:[%s5624_s6 + $0xf0] sm:$0xf0] }
  0x78   : > { %v5332_v2 = vld [vmem:[%s5624_s6 + $0xb8c] sm:$0xf0]  ;;  %v4770_v5 = vor.u32 %v5300_v0, %v4769_v63  ;;  %v4497_v6 = vld [vmem:[%s5624_s6 + $0x860] sm:$0xf]  ;;  %2738 = vmatpush.bf16.msra.mxu0 %v4514_v3  ;;  %v5022_v61 = vld [vmem:[%s5624_s6 + $0x1e4] sm:$0xf] }
  0x79   : > { %v5232_v7 = vld [vmem:[%s5624_s6 + $0x86c] sm:$0xf0]  ;;  %v4625_v8 = vld [vmem:[%s5624_s6 + $0x960] sm:$0xf]  ;;  %v4898_v9 = vor.u32 %v5332_v2, %v4897_v1  ;;  %2751 = vmatpush.bf16.msra.mxu1 %v4642_v4  ;;  %v3667_v62 = vld [vmem:[%s5624_s6 + $0x1f0] sm:$0xf0] }
  0x7a   : > { %v5264_v10 = vld [vmem:[%s5624_s6 + $0x96c] sm:$0xf0]  ;;  %v4753_v11 = vld [vmem:[%s5624_s6 + $0xa60] sm:$0xf]  ;;  %v4498_v15 = vor.u32 %v5232_v7, %v4497_v6  ;;  %2764 = vmatpush.bf16.msra.mxu2 %v4770_v5  ;;  %v5054_v63 = vld [vmem:[%s5624_s6 + $0x2e4] sm:$0xf] }
  0x7b   : > { %v5296_v12 = vld [vmem:[%s5624_s6 + $0xa6c] sm:$0xf0]  ;;  %v4881_v13 = vld [vmem:[%s5624_s6 + $0xb60] sm:$0xf]  ;;  %v4626_v16 = vor.u32 %v5264_v10, %v4625_v8  ;;  %2777 = vmatpush.bf16.msra.mxu3 %v4898_v9  ;;  %v3795_v1 = vld [vmem:[%s5624_s6 + $0x2f0] sm:$0xf0]  ;;  %v3542_v9 = vor.u32 %v4990_v59, %v3539_v60 }
  0x7c   : > { %v5328_v14 = vld [vmem:[%s5624_s6 + $0xb6c] sm:$0xf0]  ;;  %v4754_v17 = vor.u32 %v5296_v12, %v4753_v11  ;;  %v4481_v18 = vld [vmem:[%s5624_s6 + $0x840] sm:$0xf]  ;;  %2739 = vmatpush.bf16.msra.mxu0 %v4498_v15  ;;  %v5086_v2 = vld [vmem:[%s5624_s6 + $0x3e4] sm:$0xf]  ;;  %v3670_v12 = vor.u32 %v5022_v61, %v3667_v62 }
  0x7d   : > { %v5228_v19 = vld [vmem:[%s5624_s6 + $0x84c] sm:$0xf0]  ;;  %v4609_v20 = vld [vmem:[%s5624_s6 + $0x940] sm:$0xf]  ;;  %v4882_v21 = vor.u32 %v5328_v14, %v4881_v13  ;;  %2752 = vmatpush.bf16.msra.mxu1 %v4626_v16  ;;  %v3923_v3 = vld [vmem:[%s5624_s6 + $0x3f0] sm:$0xf0]  ;;  %v3798_v13 = vor.u32 %v5054_v63, %v3795_v1 }
  0x7e   : > { %v5260_v22 = vld [vmem:[%s5624_s6 + $0x94c] sm:$0xf0]  ;;  %v4737_v23 = vld [vmem:[%s5624_s6 + $0xa40] sm:$0xf]  ;;  %v4482_v29 = vor.u32 %v5228_v19, %v4481_v18  ;;  %2765 = vmatpush.bf16.msra.mxu2 %v4754_v17  ;;  %v4986_v14 = vld [vmem:[%s5624_s6 + $0xc4] sm:$0xf]  ;;  %v3926_v17 = vor.u32 %v5086_v2, %v3923_v3 }
  0x7f   : > { %v5292_v24 = vld [vmem:[%s5624_s6 + $0xa4c] sm:$0xf0]  ;;  %v4865_v25 = vld [vmem:[%s5624_s6 + $0xb40] sm:$0xf]  ;;  %v4610_v30 = vor.u32 %v5260_v22, %v4609_v20  ;;  %2778 = vmatpush.bf16.msra.mxu3 %v4882_v21  ;;  %v3523_v15 = vld [vmem:[%s5624_s6 + $0xd0] sm:$0xf0] }
  0x80   : > { %v5324_v28 = vld [vmem:[%s5624_s6 + $0xb4c] sm:$0xf0]  ;;  %v4738_v31 = vor.u32 %v5292_v24, %v4737_v23  ;;  %v4465_v34 = vld [vmem:[%s5624_s6 + $0x820] sm:$0xf]  ;;  %2740 = vmatpush.bf16.msra.mxu0 %v4482_v29  ;;  %v5018_v16 = vld [vmem:[%s5624_s6 + $0x1c4] sm:$0xf]  ;;  %v3526_v29 = vor.u32 %v4986_v14, %v3523_v15 }
  0x81   : > { %v5224_v35 = vld [vmem:[%s5624_s6 + $0x82c] sm:$0xf0]  ;;  %v4593_v36 = vld [vmem:[%s5624_s6 + $0x920] sm:$0xf]  ;;  %v4866_v38 = vor.u32 %v5324_v28, %v4865_v25  ;;  %2753 = vmatpush.bf16.msra.mxu1 %v4610_v30  ;;  %v3651_v19 = vld [vmem:[%s5624_s6 + $0x1d0] sm:$0xf0] }
  0x82   : > { %v5256_v39 = vld [vmem:[%s5624_s6 + $0x92c] sm:$0xf0]  ;;  %v4721_v42 = vld [vmem:[%s5624_s6 + $0xa20] sm:$0xf]  ;;  %v4466_v48 = vor.u32 %v5224_v35, %v4465_v34  ;;  %2766 = vmatpush.bf16.msra.mxu2 %v4738_v31  ;;  %v5050_v20 = vld [vmem:[%s5624_s6 + $0x2c4] sm:$0xf]  ;;  %v3654_v30 = vor.u32 %v5018_v16, %v3651_v19 }
  0x83   : > { %v5288_v44 = vld [vmem:[%s5624_s6 + $0xa2c] sm:$0xf0]  ;;  %v4849_v45 = vld [vmem:[%s5624_s6 + $0xb20] sm:$0xf]  ;;  %v4594_v52 = vor.u32 %v5256_v39, %v4593_v36  ;;  %2779 = vmatpush.bf16.msra.mxu3 %v4866_v38  ;;  %v3779_v21 = vld [vmem:[%s5624_s6 + $0x2d0] sm:$0xf0] }
  0x84   : > { %v5320_v46 = vld [vmem:[%s5624_s6 + $0xb2c] sm:$0xf0]  ;;  %v4449_v47 = vld [vmem:[%s5624_s6 + $0x800] sm:$0xf]  ;;  %v4722_v53 = vor.u32 %v5288_v44, %v4721_v42  ;;  %2741 = vmatpush.bf16.msra.mxu0 %v4466_v48  ;;  %v5082_v24 = vld [vmem:[%s5624_s6 + $0x3c4] sm:$0xf]  ;;  %v3782_v31 = vor.u32 %v5050_v20, %v3779_v21 }
  0x85   : > { %v5220_v49 = vld [vmem:[%s5624_s6 + $0x80c] sm:$0xf0]  ;;  %v4577_v50 = vld [vmem:[%s5624_s6 + $0x900] sm:$0xf]  ;;  %v4850_v57 = vor.u32 %v5320_v46, %v4849_v45  ;;  %2754 = vmatpush.bf16.msra.mxu1 %v4594_v52  ;;  %v3907_v25 = vld [vmem:[%s5624_s6 + $0x3d0] sm:$0xf0] }
  0x86   : > { %v5252_v51 = vld [vmem:[%s5624_s6 + $0x90c] sm:$0xf0]  ;;  %v4705_v54 = vld [vmem:[%s5624_s6 + $0xa00] sm:$0xf]  ;;  %v4450_v0 = vor.u32 %v5220_v49, %v4449_v47  ;;  %2767 = vmatpush.bf16.msra.mxu2 %v4722_v53  ;;  %v4982_v34 = vld [vmem:[%s5624_s6 + $0xa4] sm:$0xf]  ;;  %v3910_v38 = vor.u32 %v5082_v24, %v3907_v25 }
  0x87   : > { %v5284_v55 = vld [vmem:[%s5624_s6 + $0xa0c] sm:$0xf0]  ;;  %v4833_v56 = vld [vmem:[%s5624_s6 + $0xb00] sm:$0xf]  ;;  %v4578_v4 = vor.u32 %v5252_v51, %v4577_v50  ;;  %2780 = vmatpush.bf16.msra.mxu3 %v4850_v57  ;;  %v3507_v35 = vld [vmem:[%s5624_s6 + $0xb0] sm:$0xf0] }
  0x88   : > { %v5316_v58 = vld [vmem:[%s5624_s6 + $0xb0c] sm:$0xf0]  ;;  %v4706_v5 = vor.u32 %v5284_v55, %v4705_v54  ;;  %v299_v6 = vld.sshfl [vmem:[#allocation1] sm:$0xff pattern:$0x73625140]  ;;  %2742 = vmatpush.bf16.msra.mxu0 %v4450_v0  ;;  %v3510_v47 = vor.u32 %v4982_v34, %v3507_v35 }
  0x89   : > { %v301_v7 = vld.sshfl [vmem:[#allocation1 + $0x10] sm:$0xff pattern:$0x73625140]  ;;  %v4834_v8 = vor.u32 %v5316_v58, %v4833_v56  ;;  %v300_v10 = vld.sshfl [vmem:[#allocation1 + $0x8] sm:$0xff pattern:$0x73625140]  ;;  %v5872_v18 = vpack.c.bf16 %v299_v6, %v299_v6  ;;  %2755 = vmatpush.bf16.msra.mxu1 %v4578_v4 }
  0x8a   : > { %v302_v11 = vld.sshfl [vmem:[#allocation1 + $0x18] sm:$0xff pattern:$0x73625140]  ;;  %2768 = vmatpush.bf16.msra.mxu2 %v4706_v5  ;;  %v5877_v22 = vpack.c.bf16 %v301_v7, %v301_v7  ;;  %v5879_v23 = vpack.c.bf16 %v300_v10, %v300_v10  ;;  %v5014_v36 = vld [vmem:[%s5624_s6 + $0x1a4] sm:$0xf] }
  0x8b   : > { %2781 = vmatpush.bf16.msra.mxu3 %v4834_v8  ;;  %v5883_v28 = vpack.c.bf16 %v302_v11, %v302_v11  ;;  %2743 = vmatmul.bf16.vlgmr.msra.gmra.mxu0 %v5872_v18  ;;  %v3635_v39 = vld [vmem:[%s5624_s6 + $0x1b0] sm:$0xf0]  ;;  %v5046_v42 = vld [vmem:[%s5624_s6 + $0x2a4] sm:$0xf] }
  0x8c   : > { %2787 = vmatpush.bf16.msrb.mxu0 %v3542_v9  ;;  %v3763_v44 = vld [vmem:[%s5624_s6 + $0x2b0] sm:$0xf0]  ;;  %2756 = vmatmul.bf16.vlgmr.msra.gmra.mxu1 %v5879_v23  ;;  %v5078_v45 = vld [vmem:[%s5624_s6 + $0x3a4] sm:$0xf]  ;;  %v3638_v48 = vor.u32 %v5014_v36, %v3635_v39 }
  0x8d   : > { %2800 = vmatpush.bf16.msrb.mxu1 %v3670_v12  ;;  %2769 = vmatmul.bf16.vlgmr.msra.gmra.mxu2 %v5877_v22  ;;  %v3891_v46 = vld [vmem:[%s5624_s6 + $0x3b0] sm:$0xf0]  ;;  %v3766_v49 = vor.u32 %v5046_v42, %v3763_v44  ;;  %v4978_v50 = vld [vmem:[%s5624_s6 + $0x84] sm:$0xf] }
  0x8e   : > { %2813 = vmatpush.bf16.msrb.mxu2 %v3798_v13  ;;  %2782 = vmatmul.bf16.vlgmr.msra.gmra.mxu3 %v5883_v28  ;;  %v3491_v51 = vld [vmem:[%s5624_s6 + $0x90] sm:$0xf0]  ;;  %v5010_v52 = vld [vmem:[%s5624_s6 + $0x184] sm:$0xf]  ;;  %v3894_v53 = vor.u32 %v5078_v45, %v3891_v46 }
  0x8f   : > { %2826 = vmatpush.bf16.msrb.mxu3 %v3926_v17  ;;  %v3619_v54 = vld [vmem:[%s5624_s6 + $0x190] sm:$0xf0]  ;;  %v5042_v55 = vld [vmem:[%s5624_s6 + $0x284] sm:$0xf]  ;;  %v3494_v59 = vor.u32 %v4978_v50, %v3491_v51 }
  0x90   : > { %2788 = vmatpush.bf16.msrb.mxu0 %v3526_v29  ;;  %v3747_v56 = vld [vmem:[%s5624_s6 + $0x290] sm:$0xf0]  ;;  %v5074_v57 = vld [vmem:[%s5624_s6 + $0x384] sm:$0xf]  ;;  %v3622_v60 = vor.u32 %v5010_v52, %v3619_v54 }
  0x91   : > { %2801 = vmatpush.bf16.msrb.mxu1 %v3654_v30  ;;  %v3875_v58 = vld [vmem:[%s5624_s6 + $0x390] sm:$0xf0]  ;;  %v3750_v61 = vor.u32 %v5042_v55, %v3747_v56  ;;  %v4974_v62 = vld [vmem:[%s5624_s6 + $0x64] sm:$0xf] }
  0x92   : > { %2814 = vmatpush.bf16.msrb.mxu2 %v3782_v31  ;;  %v3475_v63 = vld [vmem:[%s5624_s6 + $0x70] sm:$0xf0]  ;;  %v5006_v0 = vld [vmem:[%s5624_s6 + $0x164] sm:$0xf]  ;;  %v3878_v1 = vor.u32 %v5074_v57, %v3875_v58 }
  0x93   : > { %2827 = vmatpush.bf16.msrb.mxu3 %v3910_v38  ;;  %v3603_v2 = vld [vmem:[%s5624_s6 + $0x170] sm:$0xf0]  ;;  %v5038_v3 = vld [vmem:[%s5624_s6 + $0x264] sm:$0xf]  ;;  %v3478_v7 = vor.u32 %v4974_v62, %v3475_v63 }
  0x94   : > { %2789 = vmatpush.bf16.msrb.mxu0 %v3510_v47  ;;  %v3731_v4 = vld [vmem:[%s5624_s6 + $0x270] sm:$0xf0]  ;;  %v5070_v5 = vld [vmem:[%s5624_s6 + $0x364] sm:$0xf]  ;;  %v3606_v8 = vor.u32 %v5006_v0, %v3603_v2 }
  0x95   : > { %2802 = vmatpush.bf16.msrb.mxu1 %v3638_v48  ;;  %v3859_v6 = vld [vmem:[%s5624_s6 + $0x370] sm:$0xf0]  ;;  %v3734_v9 = vor.u32 %v5038_v3, %v3731_v4  ;;  %v4970_v10 = vld [vmem:[%s5624_s6 + $0x44] sm:$0xf] }
  0x96   : > { %2815 = vmatpush.bf16.msrb.mxu2 %v3766_v49  ;;  %v3459_v11 = vld [vmem:[%s5624_s6 + $0x50] sm:$0xf0]  ;;  %v5002_v12 = vld [vmem:[%s5624_s6 + $0x144] sm:$0xf]  ;;  %v3862_v13 = vor.u32 %v5070_v5, %v3859_v6 }
  0x97   : > { %2828 = vmatpush.bf16.msrb.mxu3 %v3894_v53  ;;  %v3587_v14 = vld [vmem:[%s5624_s6 + $0x150] sm:$0xf0]  ;;  %v5034_v15 = vld [vmem:[%s5624_s6 + $0x244] sm:$0xf]  ;;  %v3462_v20 = vor.u32 %v4970_v10, %v3459_v11 }
  0x98   : > { %2790 = vmatpush.bf16.msrb.mxu0 %v3494_v59  ;;  %v3715_v16 = vld [vmem:[%s5624_s6 + $0x250] sm:$0xf0]  ;;  %v5066_v17 = vld [vmem:[%s5624_s6 + $0x344] sm:$0xf]  ;;  %v3590_v21 = vor.u32 %v5002_v12, %v3587_v14 }
  0x99   : > { %2803 = vmatpush.bf16.msrb.mxu1 %v3622_v60  ;;  %v3843_v19 = vld [vmem:[%s5624_s6 + $0x350] sm:$0xf0]  ;;  %v3718_v24 = vor.u32 %v5034_v15, %v3715_v16  ;;  %v4966_v25 = vld [vmem:[%s5624_s6 + $0x24] sm:$0xf] }
  0x9a   : > { %2816 = vmatpush.bf16.msrb.mxu2 %v3750_v61  ;;  %v3443_v29 = vld [vmem:[%s5624_s6 + $0x30] sm:$0xf0]  ;;  %v4998_v30 = vld [vmem:[%s5624_s6 + $0x124] sm:$0xf]  ;;  %v3846_v31 = vor.u32 %v5066_v17, %v3843_v19 }
  0x9b   : > { %2829 = vmatpush.bf16.msrb.mxu3 %v3878_v1  ;;  %v3571_v34 = vld [vmem:[%s5624_s6 + $0x130] sm:$0xf0]  ;;  %v5030_v35 = vld [vmem:[%s5624_s6 + $0x224] sm:$0xf]  ;;  %v3446_v42 = vor.u32 %v4966_v25, %v3443_v29 }
  0x9c   : > { %2791 = vmatpush.bf16.msrb.mxu0 %v3478_v7  ;;  %v3699_v36 = vld [vmem:[%s5624_s6 + $0x230] sm:$0xf0]  ;;  %v5062_v38 = vld [vmem:[%s5624_s6 + $0x324] sm:$0xf]  ;;  %v3574_v46 = vor.u32 %v4998_v30, %v3571_v34 }
  0x9d   : > { %2804 = vmatpush.bf16.msrb.mxu1 %v3606_v8  ;;  %v3827_v39 = vld [vmem:[%s5624_s6 + $0x330] sm:$0xf0]  ;;  %v4962_v44 = vld [vmem:[%s5624_s6 + $0x4] sm:$0xf]  ;;  %v3702_v47 = vor.u32 %v5030_v35, %v3699_v36 }
  0x9e   : > { %2817 = vmatpush.bf16.msrb.mxu2 %v3734_v9  ;;  %v3427_v45 = vld [vmem:[%s5624_s6 + $0x10] sm:$0xf0]  ;;  %v4994_v48 = vld [vmem:[%s5624_s6 + $0x104] sm:$0xf]  ;;  %v3830_v51 = vor.u32 %v5062_v38, %v3827_v39 }
  0x9f   : > { %2830 = vmatpush.bf16.msrb.mxu3 %v3862_v13  ;;  %v3555_v49 = vld [vmem:[%s5624_s6 + $0x110] sm:$0xf0]  ;;  %v5026_v50 = vld [vmem:[%s5624_s6 + $0x204] sm:$0xf]  ;;  %v3430_v58 = vor.u32 %v4962_v44, %v3427_v45 }
  0xa0   : > { %2792 = vmatpush.bf16.msrb.mxu0 %v3462_v20  ;;  %v3683_v52 = vld [vmem:[%s5624_s6 + $0x210] sm:$0xf0]  ;;  %v5058_v53 = vld [vmem:[%s5624_s6 + $0x304] sm:$0xf]  ;;  %v3558_v62 = vor.u32 %v4994_v48, %v3555_v49 }
  0xa1   : > { %2805 = vmatpush.bf16.msrb.mxu1 %v3590_v21  ;;  %v3811_v54 = vld [vmem:[%s5624_s6 + $0x310] sm:$0xf0]  ;;  %v5118_v55 = vld [vmem:[%s5624_s6 + $0x4e4] sm:$0xf]  ;;  %v3686_v63 = vor.u32 %v5026_v50, %v3683_v52 }
  0xa2   : > { %2818 = vmatpush.bf16.msrb.mxu2 %v3718_v24  ;;  %v4051_v56 = vld [vmem:[%s5624_s6 + $0x4f0] sm:$0xf0]  ;;  %v5150_v57 = vld [vmem:[%s5624_s6 + $0x5e4] sm:$0xf]  ;;  %v3814_v2 = vor.u32 %v5058_v53, %v3811_v54 }
  0xa3   : > { %2831 = vmatpush.bf16.msrb.mxu3 %v3846_v31  ;;  %v4179_v59 = vld [vmem:[%s5624_s6 + $0x5f0] sm:$0xf0]  ;;  %v5182_v60 = vld [vmem:[%s5624_s6 + $0x6e4] sm:$0xf]  ;;  %v4054_v3 = vor.u32 %v5118_v55, %v4051_v56 }
  0xa4   : > { %2793 = vmatpush.bf16.msrb.mxu0 %v3446_v42  ;;  %v4307_v61 = vld [vmem:[%s5624_s6 + $0x6f0] sm:$0xf0]  ;;  %v5214_v0 = vld [vmem:[%s5624_s6 + $0x7e4] sm:$0xf]  ;;  %v4182_v4 = vor.u32 %v5150_v57, %v4179_v59 }
  0xa5   : > { %2806 = vmatpush.bf16.msrb.mxu1 %v3574_v46  ;;  %v4435_v1 = vld [vmem:[%s5624_s6 + $0x7f0] sm:$0xf0]  ;;  %v4310_v5 = vor.u32 %v5182_v60, %v4307_v61  ;;  %v5114_v6 = vld [vmem:[%s5624_s6 + $0x4c4] sm:$0xf] }
  0xa6   : > { %2819 = vmatpush.bf16.msrb.mxu2 %v3702_v47  ;;  %v4035_v7 = vld [vmem:[%s5624_s6 + $0x4d0] sm:$0xf0]  ;;  %v5146_v8 = vld [vmem:[%s5624_s6 + $0x5c4] sm:$0xf]  ;;  %v4438_v9 = vor.u32 %v5214_v0, %v4435_v1 }
  0xa7   : > { %2832 = vmatpush.bf16.msrb.mxu3 %v3830_v51  ;;  %v4163_v10 = vld [vmem:[%s5624_s6 + $0x5d0] sm:$0xf0]  ;;  %v5178_v11 = vld [vmem:[%s5624_s6 + $0x6c4] sm:$0xf]  ;;  %v4038_v15 = vor.u32 %v5114_v6, %v4035_v7 }
  0xa8   : > { %2794 = vmatpush.bf16.msrb.mxu0 %v3430_v58  ;;  %v4291_v12 = vld [vmem:[%s5624_s6 + $0x6d0] sm:$0xf0]  ;;  %v5210_v13 = vld [vmem:[%s5624_s6 + $0x7c4] sm:$0xf]  ;;  %v4166_v16 = vor.u32 %v5146_v8, %v4163_v10 }
  0xa9   : > { %2807 = vmatpush.bf16.msrb.mxu1 %v3558_v62  ;;  %v4419_v14 = vld [vmem:[%s5624_s6 + $0x7d0] sm:$0xf0]  ;;  %v4294_v17 = vor.u32 %v5178_v11, %v4291_v12  ;;  %v5110_v19 = vld [vmem:[%s5624_s6 + $0x4a4] sm:$0xf] }
  0xaa   : > { %2820 = vmatpush.bf16.msrb.mxu2 %v3686_v63  ;;  %v4019_v20 = vld [vmem:[%s5624_s6 + $0x4b0] sm:$0xf0]  ;;  %v5142_v21 = vld [vmem:[%s5624_s6 + $0x5a4] sm:$0xf]  ;;  %v4422_v24 = vor.u32 %v5210_v13, %v4419_v14 }
  0xab   : > { %2833 = vmatpush.bf16.msrb.mxu3 %v3814_v2  ;;  %v4147_v25 = vld [vmem:[%s5624_s6 + $0x5b0] sm:$0xf0]  ;;  %v5174_v29 = vld [vmem:[%s5624_s6 + $0x6a4] sm:$0xf]  ;;  %2795 = vmatmul.bf16.vlgmr.msrb.gmra.mxu0 %v5746_v27  ;;  %v4022_v35 = vor.u32 %v5110_v19, %v4019_v20 }
  0xac   : > { %2839 = vmatpush.bf16.msra.mxu0 %v4054_v3  ;;  %v4275_v30 = vld [vmem:[%s5624_s6 + $0x6b0] sm:$0xf0]  ;;  %v5206_v31 = vld [vmem:[%s5624_s6 + $0x7a4] sm:$0xf]  ;;  %2808 = vmatmul.bf16.vlgmr.msrb.gmra.mxu1 %v5752_v33  ;;  %v4150_v36 = vor.u32 %v5142_v21, %v4147_v25 }
  0xad   : > { %2852 = vmatpush.bf16.msra.mxu1 %v4182_v4  ;;  %2821 = vmatmul.bf16.vlgmr.msrb.gmra.mxu2 %v5744_v26  ;;  %v4403_v34 = vld [vmem:[%s5624_s6 + $0x7b0] sm:$0xf0]  ;;  %v4278_v38 = vor.u32 %v5174_v29, %v4275_v30  ;;  %v5106_v39 = vld [vmem:[%s5624_s6 + $0x484] sm:$0xf] }
  0xae   : > { %2865 = vmatpush.bf16.msra.mxu2 %v4310_v5  ;;  %2834 = vmatmul.bf16.vlgmr.msrb.gmra.mxu3 %v5750_v32  ;;  %v4003_v42 = vld [vmem:[%s5624_s6 + $0x490] sm:$0xf0]  ;;  %v5138_v44 = vld [vmem:[%s5624_s6 + $0x584] sm:$0xf]  ;;  %v4406_v45 = vor.u32 %v5206_v31, %v4403_v34 }
  0xaf   : > { %2878 = vmatpush.bf16.msra.mxu3 %v4438_v9  ;;  %v4131_v46 = vld [vmem:[%s5624_s6 + $0x590] sm:$0xf0]  ;;  %v5170_v47 = vld [vmem:[%s5624_s6 + $0x684] sm:$0xf]  ;;  %v4006_v51 = vor.u32 %v5106_v39, %v4003_v42 }
  0xb0   : > { %2840 = vmatpush.bf16.msra.mxu0 %v4038_v15  ;;  %v4259_v48 = vld [vmem:[%s5624_s6 + $0x690] sm:$0xf0]  ;;  %v5202_v49 = vld [vmem:[%s5624_s6 + $0x784] sm:$0xf]  ;;  %v4134_v52 = vor.u32 %v5138_v44, %v4131_v46 }
  0xb1   : > { %2853 = vmatpush.bf16.msra.mxu1 %v4166_v16  ;;  %v4387_v50 = vld [vmem:[%s5624_s6 + $0x790] sm:$0xf0]  ;;  %v4262_v53 = vor.u32 %v5170_v47, %v4259_v48  ;;  %v5102_v54 = vld [vmem:[%s5624_s6 + $0x464] sm:$0xf] }
  0xb2   : > { %2866 = vmatpush.bf16.msra.mxu2 %v4294_v17  ;;  %v3987_v55 = vld [vmem:[%s5624_s6 + $0x470] sm:$0xf0]  ;;  %v5134_v56 = vld [vmem:[%s5624_s6 + $0x564] sm:$0xf]  ;;  %v4390_v57 = vor.u32 %v5202_v49, %v4387_v50 }
  0xb3   : > { %2879 = vmatpush.bf16.msra.mxu3 %v4422_v24  ;;  %v4115_v58 = vld [vmem:[%s5624_s6 + $0x570] sm:$0xf0]  ;;  %v5166_v59 = vld [vmem:[%s5624_s6 + $0x664] sm:$0xf]  ;;  %v3990_v63 = vor.u32 %v5102_v54, %v3987_v55 }
  0xb4   : > { %2841 = vmatpush.bf16.msra.mxu0 %v4022_v35  ;;  %v4243_v60 = vld [vmem:[%s5624_s6 + $0x670] sm:$0xf0]  ;;  %v5198_v61 = vld [vmem:[%s5624_s6 + $0x764] sm:$0xf]  ;;  %v4118_v0 = vor.u32 %v5134_v56, %v4115_v58 }
  0xb5   : > { %2854 = vmatpush.bf16.msra.mxu1 %v4150_v36  ;;  %v4371_v62 = vld [vmem:[%s5624_s6 + $0x770] sm:$0xf0]  ;;  %v4246_v1 = vor.u32 %v5166_v59, %v4243_v60  ;;  %v5098_v2 = vld [vmem:[%s5624_s6 + $0x444] sm:$0xf] }
  0xb6   : > { %2867 = vmatpush.bf16.msra.mxu2 %v4278_v38  ;;  %v3971_v3 = vld [vmem:[%s5624_s6 + $0x450] sm:$0xf0]  ;;  %v5130_v4 = vld [vmem:[%s5624_s6 + $0x544] sm:$0xf]  ;;  %v4374_v5 = vor.u32 %v5198_v61, %v4371_v62 }
  0xb7   : > { %2880 = vmatpush.bf16.msra.mxu3 %v4406_v45  ;;  %v4099_v6 = vld [vmem:[%s5624_s6 + $0x550] sm:$0xf0]  ;;  %v5162_v7 = vld [vmem:[%s5624_s6 + $0x644] sm:$0xf]  ;;  %v3974_v11 = vor.u32 %v5098_v2, %v3971_v3 }
  0xb8   : > { %2842 = vmatpush.bf16.msra.mxu0 %v4006_v51  ;;  %v4227_v8 = vld [vmem:[%s5624_s6 + $0x650] sm:$0xf0]  ;;  %v5194_v9 = vld [vmem:[%s5624_s6 + $0x744] sm:$0xf]  ;;  %v4102_v12 = vor.u32 %v5130_v4, %v4099_v6 }
  0xb9   : > { %2855 = vmatpush.bf16.msra.mxu1 %v4134_v52  ;;  %v4355_v10 = vld [vmem:[%s5624_s6 + $0x750] sm:$0xf0]  ;;  %v4230_v13 = vor.u32 %v5162_v7, %v4227_v8  ;;  %v5094_v14 = vld [vmem:[%s5624_s6 + $0x424] sm:$0xf] }
  0xba   : > { %2868 = vmatpush.bf16.msra.mxu2 %v4262_v53  ;;  %v3955_v15 = vld [vmem:[%s5624_s6 + $0x430] sm:$0xf0]  ;;  %v5126_v16 = vld [vmem:[%s5624_s6 + $0x524] sm:$0xf]  ;;  %v4358_v17 = vor.u32 %v5194_v9, %v4355_v10 }
  0xbb   : > { %2881 = vmatpush.bf16.msra.mxu3 %v4390_v57  ;;  %v4083_v19 = vld [vmem:[%s5624_s6 + $0x530] sm:$0xf0]  ;;  %v5158_v20 = vld [vmem:[%s5624_s6 + $0x624] sm:$0xf]  ;;  %v3958_v29 = vor.u32 %v5094_v14, %v3955_v15 }
  0xbc   : > { %2843 = vmatpush.bf16.msra.mxu0 %v3990_v63  ;;  %v4211_v21 = vld [vmem:[%s5624_s6 + $0x630] sm:$0xf0]  ;;  %v5190_v24 = vld [vmem:[%s5624_s6 + $0x724] sm:$0xf]  ;;  %v4086_v34 = vor.u32 %v5126_v16, %v4083_v19 }
  0xbd   : > { %2856 = vmatpush.bf16.msra.mxu1 %v4118_v0  ;;  %v4339_v25 = vld [vmem:[%s5624_s6 + $0x730] sm:$0xf0]  ;;  %v5090_v30 = vld [vmem:[%s5624_s6 + $0x404] sm:$0xf]  ;;  %v4214_v35 = vor.u32 %v5158_v20, %v4211_v21 }
  0xbe   : > { %2869 = vmatpush.bf16.msra.mxu2 %v4246_v1  ;;  %v3939_v31 = vld [vmem:[%s5624_s6 + $0x410] sm:$0xf0]  ;;  %v5122_v36 = vld [vmem:[%s5624_s6 + $0x504] sm:$0xf]  ;;  %v4342_v42 = vor.u32 %v5190_v24, %v4339_v25 }
  0xbf   : > { %2882 = vmatpush.bf16.msra.mxu3 %v4374_v5  ;;  %v4067_v38 = vld [vmem:[%s5624_s6 + $0x510] sm:$0xf0]  ;;  %v5154_v39 = vld [vmem:[%s5624_s6 + $0x604] sm:$0xf]  ;;  %v3942_v50 = vor.u32 %v5090_v30, %v3939_v31 }
  0xc0   : > { %2844 = vmatpush.bf16.msra.mxu0 %v3974_v11  ;;  %v4195_v44 = vld [vmem:[%s5624_s6 + $0x610] sm:$0xf0]  ;;  %v5186_v45 = vld [vmem:[%s5624_s6 + $0x704] sm:$0xf]  ;;  %v4070_v54 = vor.u32 %v5122_v36, %v4067_v38 }
  0xc1   : > { %2857 = vmatpush.bf16.msra.mxu1 %v4102_v12  ;;  %v4323_v46 = vld [vmem:[%s5624_s6 + $0x710] sm:$0xf0]  ;;  %v5246_v47 = vld [vmem:[%s5624_s6 + $0x8e4] sm:$0xf]  ;;  %v4198_v55 = vor.u32 %v5154_v39, %v4195_v44 }
  0xc2   : > { %2870 = vmatpush.bf16.msra.mxu2 %v4230_v13  ;;  %v4563_v48 = vld [vmem:[%s5624_s6 + $0x8f0] sm:$0xf0]  ;;  %v5278_v49 = vld [vmem:[%s5624_s6 + $0x9e4] sm:$0xf]  ;;  %v4326_v58 = vor.u32 %v5186_v45, %v4323_v46 }
  0xc3   : > { %2883 = vmatpush.bf16.msra.mxu3 %v4358_v17  ;;  %v4691_v51 = vld [vmem:[%s5624_s6 + $0x9f0] sm:$0xf0]  ;;  %v5310_v52 = vld [vmem:[%s5624_s6 + $0xae4] sm:$0xf]  ;;  %v4566_v59 = vor.u32 %v5246_v47, %v4563_v48 }
  0xc4   : > { %2845 = vmatpush.bf16.msra.mxu0 %v3958_v29  ;;  %v4819_v53 = vld [vmem:[%s5624_s6 + $0xaf0] sm:$0xf0]  ;;  %v5342_v56 = vld [vmem:[%s5624_s6 + $0xbe4] sm:$0xf]  ;;  %v4694_v60 = vor.u32 %v5278_v49, %v4691_v51 }
  0xc5   : > { %2858 = vmatpush.bf16.msra.mxu1 %v4086_v34  ;;  %v4947_v57 = vld [vmem:[%s5624_s6 + $0xbf0] sm:$0xf0]  ;;  %v4822_v61 = vor.u32 %v5310_v52, %v4819_v53  ;;  %v5242_v62 = vld [vmem:[%s5624_s6 + $0x8c4] sm:$0xf] }
  0xc6   : > { %2871 = vmatpush.bf16.msra.mxu2 %v4214_v35  ;;  %v4547_v63 = vld [vmem:[%s5624_s6 + $0x8d0] sm:$0xf0]  ;;  %v5274_v0 = vld [vmem:[%s5624_s6 + $0x9c4] sm:$0xf]  ;;  %v4950_v1 = vor.u32 %v5342_v56, %v4947_v57 }
  0xc7   : > { %2884 = vmatpush.bf16.msra.mxu3 %v4342_v42  ;;  %v4675_v2 = vld [vmem:[%s5624_s6 + $0x9d0] sm:$0xf0]  ;;  %v5306_v3 = vld [vmem:[%s5624_s6 + $0xac4] sm:$0xf]  ;;  %v4550_v7 = vor.u32 %v5242_v62, %v4547_v63 }
  0xc8   : > { %2846 = vmatpush.bf16.msra.mxu0 %v3942_v50  ;;  %v4803_v4 = vld [vmem:[%s5624_s6 + $0xad0] sm:$0xf0]  ;;  %v5338_v5 = vld [vmem:[%s5624_s6 + $0xbc4] sm:$0xf]  ;;  %v4678_v8 = vor.u32 %v5274_v0, %v4675_v2 }
  0xc9   : > { %2859 = vmatpush.bf16.msra.mxu1 %v4070_v54  ;;  %v4931_v6 = vld [vmem:[%s5624_s6 + $0xbd0] sm:$0xf0]  ;;  %v4806_v9 = vor.u32 %v5306_v3, %v4803_v4  ;;  %v5238_v10 = vld [vmem:[%s5624_s6 + $0x8a4] sm:$0xf] }
  0xca   : > { %2872 = vmatpush.bf16.msra.mxu2 %v4198_v55  ;;  %v4531_v11 = vld [vmem:[%s5624_s6 + $0x8b0] sm:$0xf0]  ;;  %v5270_v12 = vld [vmem:[%s5624_s6 + $0x9a4] sm:$0xf]  ;;  %v4934_v13 = vor.u32 %v5338_v5, %v4931_v6 }
  0xcb   : > { %2885 = vmatpush.bf16.msra.mxu3 %v4326_v58  ;;  %v4659_v14 = vld [vmem:[%s5624_s6 + $0x9b0] sm:$0xf0]  ;;  %v5302_v15 = vld [vmem:[%s5624_s6 + $0xaa4] sm:$0xf]  ;;  %2847 = vmatmul.bf16.vlgmr.msra.gmra.mxu0 %v5803_v40  ;;  %v4534_v20 = vor.u32 %v5238_v10, %v4531_v11 }
  0xcc   : > { %2891 = vmatpush.bf16.msrb.mxu0 %v4566_v59  ;;  %v4787_v16 = vld [vmem:[%s5624_s6 + $0xab0] sm:$0xf0]  ;;  %v5334_v17 = vld [vmem:[%s5624_s6 + $0xba4] sm:$0xf]  ;;  %2860 = vmatmul.bf16.vlgmr.msra.gmra.mxu1 %v5807_v43  ;;  %v4662_v21 = vor.u32 %v5270_v12, %v4659_v14 }
  0xcd   : > { %2904 = vmatpush.bf16.msrb.mxu1 %v4694_v60  ;;  %2873 = vmatmul.bf16.vlgmr.msra.gmra.mxu2 %v5799_v37  ;;  %v4915_v19 = vld [vmem:[%s5624_s6 + $0xbb0] sm:$0xf0]  ;;  %v4790_v24 = vor.u32 %v5302_v15, %v4787_v16  ;;  %v5234_v25 = vld [vmem:[%s5624_s6 + $0x884] sm:$0xf] }
  0xce   : > { %2917 = vmatpush.bf16.msrb.mxu2 %v4822_v61  ;;  %2886 = vmatmul.bf16.vlgmr.msra.gmra.mxu3 %v5805_v41  ;;  %v4515_v29 = vld [vmem:[%s5624_s6 + $0x890] sm:$0xf0]  ;;  %v5266_v30 = vld [vmem:[%s5624_s6 + $0x984] sm:$0xf]  ;;  %v4918_v31 = vor.u32 %v5334_v17, %v4915_v19 }
  0xcf   : > { %2930 = vmatpush.bf16.msrb.mxu3 %v4950_v1  ;;  %v4643_v34 = vld [vmem:[%s5624_s6 + $0x990] sm:$0xf0]  ;;  %v5298_v35 = vld [vmem:[%s5624_s6 + $0xa84] sm:$0xf]  ;;  %v4518_v42 = vor.u32 %v5234_v25, %v4515_v29 }
  0xd0   : > { %2892 = vmatpush.bf16.msrb.mxu0 %v4550_v7  ;;  %v4771_v36 = vld [vmem:[%s5624_s6 + $0xa90] sm:$0xf0]  ;;  %v5330_v38 = vld [vmem:[%s5624_s6 + $0xb84] sm:$0xf]  ;;  %v4646_v44 = vor.u32 %v5266_v30, %v4643_v34 }
  0xd1   : > { %2905 = vmatpush.bf16.msrb.mxu1 %v4678_v8  ;;  %v4899_v39 = vld [vmem:[%s5624_s6 + $0xb90] sm:$0xf0]  ;;  %v4774_v45 = vor.u32 %v5298_v35, %v4771_v36  ;;  %v5230_v46 = vld [vmem:[%s5624_s6 + $0x864] sm:$0xf] }
  0xd2   : > { %2918 = vmatpush.bf16.msrb.mxu2 %v4806_v9  ;;  %v4499_v47 = vld [vmem:[%s5624_s6 + $0x870] sm:$0xf0]  ;;  %v5262_v48 = vld [vmem:[%s5624_s6 + $0x964] sm:$0xf]  ;;  %v4902_v49 = vor.u32 %v5330_v38, %v4899_v39  ;;  %v3545_v39 = vld [vmem:[%s5624_s6 + $0xe8] sm:$0xf] }
  0xd3   : > { %2931 = vmatpush.bf16.msrb.mxu3 %v4934_v13  ;;  %v4627_v50 = vld [vmem:[%s5624_s6 + $0x970] sm:$0xf0]  ;;  %v5294_v51 = vld [vmem:[%s5624_s6 + $0xa64] sm:$0xf]  ;;  %v4502_v55 = vor.u32 %v5230_v46, %v4499_v47  ;;  %v5025_v47 = vld [vmem:[%s5624_s6 + $0x1f4] sm:$0xf0] }
  0xd4   : > { %2893 = vmatpush.bf16.msrb.mxu0 %v4534_v20  ;;  %v4755_v52 = vld [vmem:[%s5624_s6 + $0xa70] sm:$0xf0]  ;;  %v5326_v53 = vld [vmem:[%s5624_s6 + $0xb64] sm:$0xf]  ;;  %v4630_v56 = vor.u32 %v5262_v48, %v4627_v50  ;;  %v3801_v48 = vld [vmem:[%s5624_s6 + $0x2e8] sm:$0xf] }
  0xd5   : > { %2906 = vmatpush.bf16.msrb.mxu1 %v4662_v21  ;;  %v4883_v54 = vld [vmem:[%s5624_s6 + $0xb70] sm:$0xf0]  ;;  %v4758_v57 = vor.u32 %v5294_v51, %v4755_v52  ;;  %v5226_v58 = vld [vmem:[%s5624_s6 + $0x844] sm:$0xf] }
  0xd6   : > { %2919 = vmatpush.bf16.msrb.mxu2 %v4790_v24  ;;  %v4483_v59 = vld [vmem:[%s5624_s6 + $0x850] sm:$0xf0]  ;;  %v5258_v60 = vld [vmem:[%s5624_s6 + $0x944] sm:$0xf]  ;;  %v4886_v61 = vor.u32 %v5326_v53, %v4883_v54  ;;  %v3929_v53 = vld [vmem:[%s5624_s6 + $0x3e8] sm:$0xf] }
  0xd7   : > { %2932 = vmatpush.bf16.msrb.mxu3 %v4918_v31  ;;  %v4611_v62 = vld [vmem:[%s5624_s6 + $0x950] sm:$0xf0]  ;;  %v5290_v63 = vld [vmem:[%s5624_s6 + $0xa44] sm:$0xf]  ;;  %v4486_v3 = vor.u32 %v5226_v58, %v4483_v59  ;;  %v2640_v15 = vpop.f32.mrf.mxu0  ;;  %v5089_v54 = vld [vmem:[%s5624_s6 + $0x3f4] sm:$0xf0] }
  0xd8   : > { %2894 = vmatpush.bf16.msrb.mxu0 %v4518_v42  ;;  %v4739_v0 = vld [vmem:[%s5624_s6 + $0xa50] sm:$0xf0]  ;;  %v5322_v1 = vld [vmem:[%s5624_s6 + $0xb44] sm:$0xf]  ;;  %v4614_v4 = vor.u32 %v5258_v60, %v4611_v62  ;;  %v2653_v20 = vpop.f32.mrf.mxu1  ;;  %v4993_v42 = vld [vmem:[%s5624_s6 + $0xf4] sm:$0xf0] }
  0xd9   : > { %2907 = vmatpush.bf16.msrb.mxu1 %v4646_v44  ;;  %v4867_v2 = vld [vmem:[%s5624_s6 + $0xb50] sm:$0xf0]  ;;  %v4742_v5 = vor.u32 %v5290_v63, %v4739_v0  ;;  %v5222_v6 = vld [vmem:[%s5624_s6 + $0x824] sm:$0xf]  ;;  %v2654_v31 = vadd.f32 %v2653_v20, %v2640_v15  ;;  %v3673_v44 = vld [vmem:[%s5624_s6 + $0x1e8] sm:$0xf] }
  0xda   : > { %2920 = vmatpush.bf16.msrb.mxu2 %v4774_v45  ;;  %v4467_v7 = vld [vmem:[%s5624_s6 + $0x830] sm:$0xf0]  ;;  %v5254_v8 = vld [vmem:[%s5624_s6 + $0x924] sm:$0xf]  ;;  %v4870_v9 = vor.u32 %v5322_v1, %v4867_v2  ;;  %v3674_v58 = vor.u32 %v5025_v47, %v3673_v44  ;;  %v3529_v60 = vld [vmem:[%s5624_s6 + $0xc8] sm:$0xf]  ;;  %v3930_v1 = vor.u32 %v5089_v54, %v3929_v53 }
  0xdb   : > { %2933 = vmatpush.bf16.msrb.mxu3 %v4902_v49  ;;  %v4595_v10 = vld [vmem:[%s5624_s6 + $0x930] sm:$0xf0]  ;;  %v5286_v11 = vld [vmem:[%s5624_s6 + $0xa24] sm:$0xf]  ;;  %v4470_v16 = vor.u32 %v5222_v6, %v4467_v7  ;;  %v5057_v49 = vld [vmem:[%s5624_s6 + $0x2f4] sm:$0xf0] }
  0xdc   : > { %2895 = vmatpush.bf16.msrb.mxu0 %v4502_v55  ;;  %v4723_v12 = vld [vmem:[%s5624_s6 + $0xa30] sm:$0xf0]  ;;  %v5318_v13 = vld [vmem:[%s5624_s6 + $0xb24] sm:$0xf]  ;;  %v4598_v21 = vor.u32 %v5254_v8, %v4595_v10  ;;  %v3802_v59 = vor.u32 %v5057_v49, %v3801_v48  ;;  %v3657_v62 = vld [vmem:[%s5624_s6 + $0x1c8] sm:$0xf] }
  0xdd   : > { %2908 = vmatpush.bf16.msrb.mxu1 %v4630_v56  ;;  %v4851_v14 = vld [vmem:[%s5624_s6 + $0xb30] sm:$0xf0]  ;;  %v5218_v17 = vld [vmem:[%s5624_s6 + $0x804] sm:$0xf]  ;;  %v4726_v24 = vor.u32 %v5286_v11, %v4723_v12  ;;  %v2666_v45 = vpop.f32.mrf.mxu2  ;;  %v3546_v56 = vor.u32 %v4993_v42, %v3545_v39  ;;  %v5021_v2 = vld [vmem:[%s5624_s6 + $0x1d4] sm:$0xf0] }
  0xde   : > { %2921 = vmatpush.bf16.msrb.mxu2 %v4758_v57  ;;  %v4451_v19 = vld [vmem:[%s5624_s6 + $0x810] sm:$0xf0]  ;;  %v5250_v25 = vld [vmem:[%s5624_s6 + $0x904] sm:$0xf]  ;;  %v4854_v34 = vor.u32 %v5318_v13, %v4851_v14  ;;  %v2667_v50 = vadd.f32 %v2666_v45, %v2654_v31  ;;  %v2679_v57 = vpop.f32.mrf.mxu3  ;;  %v3913_v6 = vld [vmem:[%s5624_s6 + $0x3c8] sm:$0xf] }
  0xdf   : > { %2934 = vmatpush.bf16.msrb.mxu3 %v4886_v61  ;;  %v4579_v29 = vld [vmem:[%s5624_s6 + $0x910] sm:$0xf0]  ;;  %v5282_v30 = vld [vmem:[%s5624_s6 + $0xa04] sm:$0xf]  ;;  %v4454_v46 = vor.u32 %v5218_v17, %v4451_v19  ;;  %v4989_v61 = vld [vmem:[%s5624_s6 + $0xd4] sm:$0xf0]  ;;  %v2642_v0 = vpop.f32.mrf.mxu0 }
  0xe0   : > { %2896 = vmatpush.bf16.msrb.mxu0 %v4486_v3  ;;  %v4707_v35 = vld [vmem:[%s5624_s6 + $0xa10] sm:$0xf0]  ;;  %v5314_v36 = vld [vmem:[%s5624_s6 + $0xb04] sm:$0xf]  ;;  %v4582_v51 = vor.u32 %v5250_v25, %v4579_v29  ;;  %v2680_v63 = vadd.f32 %v2679_v57, %v2667_v50  ;;  %v3785_v3 = vld [vmem:[%s5624_s6 + $0x2c8] sm:$0xf]  ;;  %v3530_v8 = vor.u32 %v4989_v61, %v3529_v60 }
  0xe1   : > { %2909 = vmatpush.bf16.msrb.mxu1 %v4614_v4  ;;  %v4835_v38 = vld [vmem:[%s5624_s6 + $0xb10] sm:$0xf0]  ;;  %v4710_v52 = vor.u32 %v5282_v30, %v4707_v35  ;;  %v5053_v4 = vld [vmem:[%s5624_s6 + $0x2d4] sm:$0xf0]  ;;  %v3513_v11 = vld [vmem:[%s5624_s6 + $0xa8] sm:$0xf] }
  0xe2   : > { %2922 = vmatpush.bf16.msrb.mxu2 %v4742_v5  ;;  %v4838_v55 = vor.u32 %v5314_v36, %v4835_v38  ;;  %v2655_v5 = vpop.f32.mrf.mxu1  ;;  %v5085_v7 = vld [vmem:[%s5624_s6 + $0x3d4] sm:$0xf0]  ;;  %v3786_v10 = vor.u32 %v5053_v4, %v3785_v3  ;;  %v3641_v13 = vld [vmem:[%s5624_s6 + $0x1a8] sm:$0xf] }
  0xe3   : > { %2935 = vmatpush.bf16.msrb.mxu3 %v4870_v9  ;;  %v3658_v9 = vor.u32 %v5021_v2, %v3657_v62  ;;  %v4985_v12 = vld [vmem:[%s5624_s6 + $0xb4] sm:$0xf0]  ;;  %v3914_v15 = vor.u32 %v5085_v7, %v3913_v6  ;;  %v3769_v17 = vld [vmem:[%s5624_s6 + $0x2a8] sm:$0xf] }
  0xe4   : > { %2897 = vmatpush.bf16.msrb.mxu0 %v4470_v16  ;;  %v5017_v16 = vld [vmem:[%s5624_s6 + $0x1b4] sm:$0xf0]  ;;  %v3897_v20 = vld [vmem:[%s5624_s6 + $0x3a8] sm:$0xf] }
  0xe5   : > { %2910 = vmatpush.bf16.msrb.mxu1 %v4598_v21  ;;  %v2668_v14 = vpop.f32.mrf.mxu2  ;;  %v5049_v19 = vld [vmem:[%s5624_s6 + $0x2b4] sm:$0xf0]  ;;  %v3642_v29 = vor.u32 %v5017_v16, %v3641_v13  ;;  %v3497_v31 = vld [vmem:[%s5624_s6 + $0x88] sm:$0xf] }
  0xe6   : > { %2923 = vmatpush.bf16.msrb.mxu2 %v4726_v24  ;;  %v5081_v21 = vld [vmem:[%s5624_s6 + $0x3b4] sm:$0xf0]  ;;  %v3514_v24 = vor.u32 %v4985_v12, %v3513_v11  ;;  %v2681_v25 = vpop.f32.mrf.mxu3  ;;  %v3770_v30 = vor.u32 %v5049_v19, %v3769_v17  ;;  %v3625_v35 = vld [vmem:[%s5624_s6 + $0x188] sm:$0xf] }
  0xe7   : > { %2936 = vmatpush.bf16.msrb.mxu3 %v4854_v34  ;;  %v4981_v34 = vld [vmem:[%s5624_s6 + $0x94] sm:$0xf0]  ;;  %v3898_v36 = vor.u32 %v5081_v21, %v3897_v20  ;;  %v3753_v39 = vld [vmem:[%s5624_s6 + $0x288] sm:$0xf] }
  0xe8   : > { %2898 = vmatpush.bf16.msrb.mxu0 %v4454_v46  ;;  %v5013_v38 = vld [vmem:[%s5624_s6 + $0x194] sm:$0xf0]  ;;  %v3881_v44 = vld [vmem:[%s5624_s6 + $0x388] sm:$0xf]  ;;  %v3498_v46 = vor.u32 %v4981_v34, %v3497_v31 }
  0xe9   : > { %2911 = vmatpush.bf16.msrb.mxu1 %v4582_v51  ;;  %v5045_v42 = vld [vmem:[%s5624_s6 + $0x294] sm:$0xf0]  ;;  %v3626_v48 = vor.u32 %v5013_v38, %v3625_v35  ;;  %v3481_v50 = vld [vmem:[%s5624_s6 + $0x68] sm:$0xf] }
  0xea   : > { %2924 = vmatpush.bf16.msrb.mxu2 %v4710_v52  ;;  %v5077_v45 = vld [vmem:[%s5624_s6 + $0x394] sm:$0xf0]  ;;  %v3754_v49 = vor.u32 %v5045_v42, %v3753_v39  ;;  %v3609_v52 = vld [vmem:[%s5624_s6 + $0x168] sm:$0xf] }
  0xeb   : > { %2937 = vmatpush.bf16.msrb.mxu3 %v4838_v55  ;;  %2899 = vmatmul.bf16.vlgmr.msrb.gmra.mxu0 %v5872_v18  ;;  %v4977_v51 = vld [vmem:[%s5624_s6 + $0x74] sm:$0xf0]  ;;  %v3882_v55 = vor.u32 %v5077_v45, %v3881_v44  ;;  %v3737_v57 = vld [vmem:[%s5624_s6 + $0x268] sm:$0xf] }
  0xec   : > { %2943 = vmatpush.bf16.msra.mxu0 %v3546_v56  ;;  %2912 = vmatmul.bf16.vlgmr.msrb.gmra.mxu1 %v5879_v23  ;;  %v2692_v47 = vpop.f32.mrf.mxu0  ;;  %v5009_v56 = vld [vmem:[%s5624_s6 + $0x174] sm:$0xf0]  ;;  %v3482_v62 = vor.u32 %v4977_v51, %v3481_v50  ;;  %v3593_v3 = vld [vmem:[%s5624_s6 + $0x148] sm:$0xf] }
  0xed   : > { %2956 = vmatpush.bf16.msra.mxu1 %v3674_v58  ;;  %2925 = vmatmul.bf16.vlgmr.msrb.gmra.mxu2 %v5877_v22  ;;  %v2693_v53 = vadd.f32 %v2692_v47, %v2680_v63  ;;  %v2705_v54 = vpop.f32.mrf.mxu1  ;;  %v5041_v58 = vld [vmem:[%s5624_s6 + $0x274] sm:$0xf0]  ;;  %v3610_v63 = vor.u32 %v5009_v56, %v3609_v52  ;;  %v3721_v7 = vld [vmem:[%s5624_s6 + $0x248] sm:$0xf] }
  0xee   : > { %2969 = vmatpush.bf16.msra.mxu2 %v3802_v59  ;;  %2938 = vmatmul.bf16.vlgmr.msrb.gmra.mxu3 %v5883_v28  ;;  %v3865_v59 = vld [vmem:[%s5624_s6 + $0x368] sm:$0xf]  ;;  %v5073_v60 = vld [vmem:[%s5624_s6 + $0x374] sm:$0xf0]  ;;  %v3738_v0 = vor.u32 %v5041_v58, %v3737_v57 }
  0xef   : > { %2982 = vmatpush.bf16.msra.mxu3 %v3930_v1  ;;  %v2706_v61 = vadd.f32 %v2705_v54, %v2693_v53  ;;  %v3465_v1 = vld [vmem:[%s5624_s6 + $0x48] sm:$0xf]  ;;  %v4973_v2 = vld [vmem:[%s5624_s6 + $0x54] sm:$0xf0]  ;;  %v3866_v5 = vor.u32 %v5073_v60, %v3865_v59 }
  0xf0   : > { %2944 = vmatpush.bf16.msra.mxu0 %v3530_v8  ;;  %v5005_v6 = vld [vmem:[%s5624_s6 + $0x154] sm:$0xf0]  ;;  %v3849_v11 = vld [vmem:[%s5624_s6 + $0x348] sm:$0xf]  ;;  %v3466_v13 = vor.u32 %v4973_v2, %v3465_v1 }
  0xf1   : > { %2957 = vmatpush.bf16.msra.mxu1 %v3658_v9  ;;  %v2718_v4 = vpop.f32.mrf.mxu2  ;;  %v5037_v8 = vld [vmem:[%s5624_s6 + $0x254] sm:$0xf0]  ;;  %v3594_v16 = vor.u32 %v5005_v6, %v3593_v3  ;;  %v3449_v19 = vld [vmem:[%s5624_s6 + $0x28] sm:$0xf] }
  0xf2   : > { %2970 = vmatpush.bf16.msra.mxu2 %v3786_v10  ;;  %v2719_v9 = vadd.f32 %v2718_v4, %v2706_v61  ;;  %v5069_v12 = vld [vmem:[%s5624_s6 + $0x354] sm:$0xf0]  ;;  %v3722_v17 = vor.u32 %v5037_v8, %v3721_v7  ;;  %v3577_v21 = vld [vmem:[%s5624_s6 + $0x128] sm:$0xf] }
  0xf3   : > { %2983 = vmatpush.bf16.msra.mxu3 %v3914_v15  ;;  %v2731_v10 = vpop.f32.mrf.mxu3  ;;  %v4969_v20 = vld [vmem:[%s5624_s6 + $0x34] sm:$0xf0]  ;;  %v3850_v25 = vor.u32 %v5069_v12, %v3849_v11  ;;  %v3833_v34 = vld [vmem:[%s5624_s6 + $0x328] sm:$0xf] }
  0xf4   : > { %2945 = vmatpush.bf16.msra.mxu0 %v3514_v24  ;;  %v6125_v14 = vadd.f32 %v2731_v10, %v2719_v9  ;;  %v2694_v15 = vpop.f32.mrf.mxu0  ;;  %v5033_v31 = vld [vmem:[%s5624_s6 + $0x234] sm:$0xf0]  ;;  %v3433_v38 = vld [vmem:[%s5624_s6 + $0x8] sm:$0xf] }
  0xf5   : > { %2958 = vmatpush.bf16.msra.mxu1 %v3642_v29  ;;  %v2707_v24 = vpop.f32.mrf.mxu1  ;;  %v5001_v29 = vld [vmem:[%s5624_s6 + $0x134] sm:$0xf0]  ;;  %v3561_v45 = vld [vmem:[%s5624_s6 + $0x108] sm:$0xf] }
  0xf6   : > { %2971 = vmatpush.bf16.msra.mxu2 %v3770_v30  ;;  %v3705_v30 = vld [vmem:[%s5624_s6 + $0x228] sm:$0xf]  ;;  %v5065_v35 = vld [vmem:[%s5624_s6 + $0x334] sm:$0xf0]  ;;  %v3578_v42 = vor.u32 %v5001_v29, %v3577_v21 }
  0xf7   : > { %2984 = vmatpush.bf16.msra.mxu3 %v3898_v36  ;;  %v3450_v36 = vor.u32 %v4969_v20, %v3449_v19  ;;  %v4965_v39 = vld [vmem:[%s5624_s6 + $0x14] sm:$0xf0]  ;;  %v3706_v44 = vor.u32 %v5033_v31, %v3705_v30  ;;  %v3689_v47 = vld [vmem:[%s5624_s6 + $0x208] sm:$0xf] }
  0xf8   : > { %2946 = vmatpush.bf16.msra.mxu0 %v3498_v46  ;;  %v4997_v46 = vld [vmem:[%s5624_s6 + $0x114] sm:$0xf0]  ;;  %v3817_v51 = vld [vmem:[%s5624_s6 + $0x308] sm:$0xf]  ;;  %v3434_v57 = vor.u32 %v4965_v39, %v3433_v38 }
  0xf9   : > { %2959 = vmatpush.bf16.msra.mxu1 %v3626_v48  ;;  %v2720_v48 = vpop.f32.mrf.mxu2  ;;  %v5029_v50 = vld [vmem:[%s5624_s6 + $0x214] sm:$0xf0]  ;;  %v4057_v54 = vld [vmem:[%s5624_s6 + $0x4e8] sm:$0xf]  ;;  %v3562_v61 = vor.u32 %v4997_v46, %v3561_v45 }
  0xfa   : > { %2972 = vmatpush.bf16.msra.mxu2 %v3754_v49  ;;  %v3834_v49 = vor.u32 %v5065_v35, %v3833_v34  ;;  %v5061_v52 = vld [vmem:[%s5624_s6 + $0x314] sm:$0xf0]  ;;  %v4185_v56 = vld [vmem:[%s5624_s6 + $0x5e8] sm:$0xf] }
  0xfb   : > { %2985 = vmatpush.bf16.msra.mxu3 %v3882_v55  ;;  %v2733_v53 = vpop.f32.mrf.mxu3  ;;  %v5121_v55 = vld [vmem:[%s5624_s6 + $0x4f4] sm:$0xf0]  ;;  %v4313_v59 = vld [vmem:[%s5624_s6 + $0x6e8] sm:$0xf]  ;;  %v3818_v1 = vor.u32 %v5061_v52, %v3817_v51 }
  0xfc   : > { %2947 = vmatpush.bf16.msra.mxu0 %v3482_v62  ;;  %v5153_v58 = vld [vmem:[%s5624_s6 + $0x5f4] sm:$0xf0]  ;;  %v3690_v62 = vor.u32 %v5029_v50, %v3689_v47  ;;  %v4058_v2 = vor.u32 %v5121_v55, %v4057_v54  ;;  %v4169_v7 = vld [vmem:[%s5624_s6 + $0x5c8] sm:$0xf] }
  0xfd   : > { %2960 = vmatpush.bf16.msra.mxu1 %v3610_v63  ;;  %v5185_v60 = vld [vmem:[%s5624_s6 + $0x6f4] sm:$0xf0]  ;;  %v4441_v63 = vld [vmem:[%s5624_s6 + $0x7e8] sm:$0xf]  ;;  %v4186_v3 = vor.u32 %v5153_v58, %v4185_v56 }
  0xfe   : > { %2973 = vmatpush.bf16.msra.mxu2 %v3738_v0  ;;  %v5217_v0 = vld [vmem:[%s5624_s6 + $0x7f4] sm:$0xf0]  ;;  %v4314_v4 = vor.u32 %v5185_v60, %v4313_v59  ;;  %v4297_v10 = vld [vmem:[%s5624_s6 + $0x6c8] sm:$0xf] }
  0xff   : > { %2986 = vmatpush.bf16.msra.mxu3 %v3866_v5  ;;  %v4041_v5 = vld [vmem:[%s5624_s6 + $0x4c8] sm:$0xf]  ;;  %v5117_v6 = vld [vmem:[%s5624_s6 + $0x4d4] sm:$0xf0]  ;;  %v4442_v8 = vor.u32 %v5217_v0, %v4441_v63 }
 0x100   : > { %2948 = vmatpush.bf16.msra.mxu0 %v3466_v13  ;;  %v5149_v9 = vld [vmem:[%s5624_s6 + $0x5d4] sm:$0xf0]  ;;  %v4425_v12 = vld [vmem:[%s5624_s6 + $0x7c8] sm:$0xf]  ;;  %v4042_v15 = vor.u32 %v5117_v6, %v4041_v5 }
 0x101   : > { %2961 = vmatpush.bf16.msra.mxu1 %v3594_v16  ;;  %v5181_v11 = vld [vmem:[%s5624_s6 + $0x6d4] sm:$0xf0]  ;;  %v4170_v16 = vor.u32 %v5149_v9, %v4169_v7  ;;  %v4025_v19 = vld [vmem:[%s5624_s6 + $0x4a8] sm:$0xf] }
 0x102   : > { %2974 = vmatpush.bf16.msra.mxu2 %v3722_v17  ;;  %v5213_v13 = vld [vmem:[%s5624_s6 + $0x7d4] sm:$0xf0]  ;;  %v4298_v17 = vor.u32 %v5181_v11, %v4297_v10  ;;  %v4153_v21 = vld [vmem:[%s5624_s6 + $0x5a8] sm:$0xf] }
 0x103   : > { %2987 = vmatpush.bf16.msra.mxu3 %v3850_v25  ;;  %v5113_v20 = vld [vmem:[%s5624_s6 + $0x4b4] sm:$0xf0]  ;;  %v4426_v24 = vor.u32 %v5213_v13, %v4425_v12  ;;  %v4281_v29 = vld [vmem:[%s5624_s6 + $0x6a8] sm:$0xf] }
 0x104   : > { %2949 = vmatpush.bf16.msra.mxu0 %v3450_v36  ;;  %v5145_v25 = vld [vmem:[%s5624_s6 + $0x5b4] sm:$0xf0]  ;;  %v4409_v31 = vld [vmem:[%s5624_s6 + $0x7a8] sm:$0xf]  ;;  %v4026_v35 = vor.u32 %v5113_v20, %v4025_v19 }
 0x105   : > { %2962 = vmatpush.bf16.msra.mxu1 %v3578_v42  ;;  %v5177_v30 = vld [vmem:[%s5624_s6 + $0x6b4] sm:$0xf0]  ;;  %v4154_v36 = vor.u32 %v5145_v25, %v4153_v21  ;;  %v4009_v39 = vld [vmem:[%s5624_s6 + $0x488] sm:$0xf] }
 0x106   : > { %2975 = vmatpush.bf16.msra.mxu2 %v3706_v44  ;;  %v5209_v34 = vld [vmem:[%s5624_s6 + $0x7b4] sm:$0xf0]  ;;  %v4282_v38 = vor.u32 %v5177_v30, %v4281_v29  ;;  %v4137_v44 = vld [vmem:[%s5624_s6 + $0x588] sm:$0xf] }
 0x107   : > { %2988 = vmatpush.bf16.msra.mxu3 %v3834_v49  ;;  %v5109_v42 = vld [vmem:[%s5624_s6 + $0x494] sm:$0xf0]  ;;  %v4410_v45 = vor.u32 %v5209_v34, %v4409_v31  ;;  %v4265_v47 = vld [vmem:[%s5624_s6 + $0x688] sm:$0xf] }
 0x108   : > { %2950 = vmatpush.bf16.msra.mxu0 %v3434_v57  ;;  %v5141_v46 = vld [vmem:[%s5624_s6 + $0x594] sm:$0xf0]  ;;  %v2744_v49 = vpop.f32.mrf.mxu0  ;;  %v4393_v50 = vld [vmem:[%s5624_s6 + $0x788] sm:$0xf]  ;;  %v4010_v53 = vor.u32 %v5109_v42, %v4009_v39 }
 0x109   : > { %2963 = vmatpush.bf16.msra.mxu1 %v3562_v61  ;;  %v5173_v48 = vld [vmem:[%s5624_s6 + $0x694] sm:$0xf0]  ;;  %v2745_v52 = vadd.f32 %v2744_v49, %v6125_v14  ;;  %v2757_v54 = vpop.f32.mrf.mxu1  ;;  %v4138_v55 = vor.u32 %v5141_v46, %v4137_v44  ;;  %v3993_v57 = vld [vmem:[%s5624_s6 + $0x468] sm:$0xf] }
 0x10a   : > { %2976 = vmatpush.bf16.msra.mxu2 %v3690_v62  ;;  %v5205_v51 = vld [vmem:[%s5624_s6 + $0x794] sm:$0xf0]  ;;  %v4266_v56 = vor.u32 %v5173_v48, %v4265_v47  ;;  %v4121_v59 = vld [vmem:[%s5624_s6 + $0x568] sm:$0xf] }
 0x10b   : > { %2989 = vmatpush.bf16.msra.mxu3 %v3818_v1  ;;  %2951 = vmatmul.bf16.vlgmr.msra.gmra.mxu0 %v5746_v27  ;;  %v5105_v58 = vld [vmem:[%s5624_s6 + $0x474] sm:$0xf0]  ;;  %v4394_v60 = vor.u32 %v5205_v51, %v4393_v50  ;;  %v2758_v61 = vadd.f32 %v2757_v54, %v2745_v52  ;;  %v4249_v63 = vld [vmem:[%s5624_s6 + $0x668] sm:$0xf] }
 0x10c   : > { %2995 = vmatpush.bf16.msrb.mxu0 %v4058_v2  ;;  %2964 = vmatmul.bf16.vlgmr.msra.gmra.mxu1 %v5752_v33  ;;  %v5137_v62 = vld [vmem:[%s5624_s6 + $0x574] sm:$0xf0]  ;;  %v4377_v0 = vld [vmem:[%s5624_s6 + $0x768] sm:$0xf]  ;;  %v3994_v2 = vor.u32 %v5105_v58, %v3993_v57 }
 0x10d   : > { %3008 = vmatpush.bf16.msrb.mxu1 %v4186_v3  ;;  %2977 = vmatmul.bf16.vlgmr.msra.gmra.mxu2 %v5744_v26  ;;  %v5169_v14 = vld [vmem:[%s5624_s6 + $0x674] sm:$0xf0]  ;;  %v4122_v3 = vor.u32 %v5137_v62, %v4121_v59  ;;  %v3977_v5 = vld [vmem:[%s5624_s6 + $0x448] sm:$0xf] }
 0x10e   : > { %3021 = vmatpush.bf16.msrb.mxu2 %v4314_v4  ;;  %2990 = vmatmul.bf16.vlgmr.msra.gmra.mxu3 %v5750_v32  ;;  %v5201_v1 = vld [vmem:[%s5624_s6 + $0x774] sm:$0xf0]  ;;  %v4250_v4 = vor.u32 %v5169_v14, %v4249_v63  ;;  %v4105_v7 = vld [vmem:[%s5624_s6 + $0x548] sm:$0xf] }
 0x10f   : > { %3034 = vmatpush.bf16.msrb.mxu3 %v4442_v8  ;;  %v5101_v6 = vld [vmem:[%s5624_s6 + $0x454] sm:$0xf0]  ;;  %v4378_v8 = vor.u32 %v5201_v1, %v4377_v0  ;;  %v4233_v11 = vld [vmem:[%s5624_s6 + $0x648] sm:$0xf] }
 0x110   : > { %2996 = vmatpush.bf16.msrb.mxu0 %v4042_v15  ;;  %v2770_v9 = vpop.f32.mrf.mxu2  ;;  %v5133_v10 = vld [vmem:[%s5624_s6 + $0x554] sm:$0xf0]  ;;  %v2746_v19 = vpop.f32.mrf.mxu0  ;;  %v3978_v20 = vor.u32 %v5101_v6, %v3977_v5  ;;  %v3961_v30 = vld [vmem:[%s5624_s6 + $0x428] sm:$0xf] }
 0x111   : > { %3009 = vmatpush.bf16.msrb.mxu1 %v4170_v16  ;;  %v5165_v12 = vld [vmem:[%s5624_s6 + $0x654] sm:$0xf0]  ;;  %v2771_v13 = vadd.f32 %v2770_v9, %v2758_v61  ;;  %v2783_v15 = vpop.f32.mrf.mxu3  ;;  %v4361_v16 = vld [vmem:[%s5624_s6 + $0x748] sm:$0xf]  ;;  %v2759_v21 = vpop.f32.mrf.mxu1  ;;  %v4106_v25 = vor.u32 %v5133_v10, %v4105_v7 }
 0x112   : > { %3022 = vmatpush.bf16.msrb.mxu2 %v4298_v17  ;;  %v5197_v17 = vld [vmem:[%s5624_s6 + $0x754] sm:$0xf0]  ;;  %v4234_v29 = vor.u32 %v5165_v12, %v4233_v11  ;;  %v4089_v34 = vld [vmem:[%s5624_s6 + $0x528] sm:$0xf] }
 0x113   : > { %3035 = vmatpush.bf16.msrb.mxu3 %v4426_v24  ;;  %v6196_v24 = vadd.f32 %v2783_v15, %v2771_v13  ;;  %v5097_v31 = vld [vmem:[%s5624_s6 + $0x434] sm:$0xf0]  ;;  %v4345_v42 = vld [vmem:[%s5624_s6 + $0x728] sm:$0xf] }
 0x114   : > { %2997 = vmatpush.bf16.msrb.mxu0 %v4026_v35  ;;  %v4362_v35 = vor.u32 %v5197_v17, %v4361_v16  ;;  %v5161_v39 = vld [vmem:[%s5624_s6 + $0x634] sm:$0xf0]  ;;  %v3945_v46 = vld [vmem:[%s5624_s6 + $0x408] sm:$0xf] }
 0x115   : > { %3010 = vmatpush.bf16.msrb.mxu1 %v4154_v36  ;;  %v5129_v36 = vld [vmem:[%s5624_s6 + $0x534] sm:$0xf0]  ;;  %v4073_v50 = vld [vmem:[%s5624_s6 + $0x508] sm:$0xf] }
 0x116   : > { %3023 = vmatpush.bf16.msrb.mxu2 %v4282_v38  ;;  %v4217_v38 = vld [vmem:[%s5624_s6 + $0x628] sm:$0xf]  ;;  %v5193_v44 = vld [vmem:[%s5624_s6 + $0x734] sm:$0xf0]  ;;  %v4090_v48 = vor.u32 %v5129_v36, %v4089_v34 }
 0x117   : > { %3036 = vmatpush.bf16.msrb.mxu3 %v4410_v45  ;;  %v3962_v45 = vor.u32 %v5097_v31, %v3961_v30  ;;  %v5093_v47 = vld [vmem:[%s5624_s6 + $0x414] sm:$0xf0]  ;;  %v4218_v49 = vor.u32 %v5161_v39, %v4217_v38  ;;  %v4201_v52 = vld [vmem:[%s5624_s6 + $0x608] sm:$0xf] }
 0x118   : > { %2998 = vmatpush.bf16.msrb.mxu0 %v4010_v53  ;;  %v5125_v51 = vld [vmem:[%s5624_s6 + $0x514] sm:$0xf0]  ;;  %v4346_v53 = vor.u32 %v5193_v44, %v4345_v42  ;;  %v2772_v57 = vpop.f32.mrf.mxu2  ;;  %v4569_v58 = vld [vmem:[%s5624_s6 + $0x8e8] sm:$0xf]  ;;  %v3946_v62 = vor.u32 %v5093_v47, %v3945_v46 }
 0x119   : > { %3011 = vmatpush.bf16.msrb.mxu1 %v4138_v55  ;;  %v5157_v54 = vld [vmem:[%s5624_s6 + $0x614] sm:$0xf0]  ;;  %v4329_v55 = vld [vmem:[%s5624_s6 + $0x708] sm:$0xf]  ;;  %v2785_v61 = vpop.f32.mrf.mxu3  ;;  %v4074_v1 = vor.u32 %v5125_v51, %v4073_v50 }
 0x11a   : > { %3024 = vmatpush.bf16.msrb.mxu2 %v4266_v56  ;;  %v5189_v56 = vld [vmem:[%s5624_s6 + $0x714] sm:$0xf0]  ;;  %v4825_v14 = vld [vmem:[%s5624_s6 + $0xae8] sm:$0xf] }
 0x11b   : > { %3037 = vmatpush.bf16.msrb.mxu3 %v4394_v60  ;;  %v5249_v59 = vld [vmem:[%s5624_s6 + $0x8f4] sm:$0xf0]  ;;  %v4697_v60 = vld [vmem:[%s5624_s6 + $0x9e8] sm:$0xf]  ;;  %v4330_v5 = vor.u32 %v5189_v56, %v4329_v55 }
 0x11c   : > { %2999 = vmatpush.bf16.msrb.mxu0 %v3994_v2  ;;  %v5281_v63 = vld [vmem:[%s5624_s6 + $0x9f4] sm:$0xf0]  ;;  %v4202_v2 = vor.u32 %v5157_v54, %v4201_v52  ;;  %v4570_v6 = vor.u32 %v5249_v59, %v4569_v58  ;;  %v4553_v9 = vld [vmem:[%s5624_s6 + $0x8c8] sm:$0xf] }
 0x11d   : > { %3012 = vmatpush.bf16.msrb.mxu1 %v4122_v3  ;;  %v5313_v0 = vld [vmem:[%s5624_s6 + $0xaf4] sm:$0xf0]  ;;  %v4953_v3 = vld [vmem:[%s5624_s6 + $0xbe8] sm:$0xf]  ;;  %v4698_v7 = vor.u32 %v5281_v63, %v4697_v60 }
 0x11e   : > { %3025 = vmatpush.bf16.msrb.mxu2 %v4250_v4  ;;  %v5345_v4 = vld [vmem:[%s5624_s6 + $0xbf4] sm:$0xf0]  ;;  %v4681_v11 = vld [vmem:[%s5624_s6 + $0x9c8] sm:$0xf] }
 0x11f   : > { %3038 = vmatpush.bf16.msrb.mxu3 %v4378_v8  ;;  %v4826_v8 = vor.u32 %v5313_v0, %v4825_v14  ;;  %v5245_v10 = vld [vmem:[%s5624_s6 + $0x8d4] sm:$0xf0]  ;;  %v4954_v12 = vor.u32 %v5345_v4, %v4953_v3  ;;  %v4809_v15 = vld [vmem:[%s5624_s6 + $0xac8] sm:$0xf] }
 0x120   : > { %3000 = vmatpush.bf16.msrb.mxu0 %v3978_v20  ;;  %v5277_v13 = vld [vmem:[%s5624_s6 + $0x9d4] sm:$0xf0]  ;;  %v4937_v17 = vld [vmem:[%s5624_s6 + $0xbc8] sm:$0xf]  ;;  %v4554_v20 = vor.u32 %v5245_v10, %v4553_v9 }
 0x121   : > { %3013 = vmatpush.bf16.msrb.mxu1 %v4106_v25  ;;  %v5309_v16 = vld [vmem:[%s5624_s6 + $0xad4] sm:$0xf0]  ;;  %v4682_v21 = vor.u32 %v5277_v13, %v4681_v11  ;;  %v4665_v31 = vld [vmem:[%s5624_s6 + $0x9a8] sm:$0xf] }
 0x122   : > { %3026 = vmatpush.bf16.msrb.mxu2 %v4234_v29  ;;  %v5341_v19 = vld [vmem:[%s5624_s6 + $0xbd4] sm:$0xf0]  ;;  %v4810_v25 = vor.u32 %v5309_v16, %v4809_v15  ;;  %v4537_v29 = vld [vmem:[%s5624_s6 + $0x8a8] sm:$0xf] }
 0x123   : > { %3039 = vmatpush.bf16.msrb.mxu3 %v4362_v35  ;;  %v5241_v30 = vld [vmem:[%s5624_s6 + $0x8b4] sm:$0xf0]  ;;  %v4938_v34 = vor.u32 %v5341_v19, %v4937_v17  ;;  %v4793_v36 = vld [vmem:[%s5624_s6 + $0xaa8] sm:$0xf] }
 0x124   : > { %3001 = vmatpush.bf16.msrb.mxu0 %v3962_v45  ;;  %v5273_v35 = vld [vmem:[%s5624_s6 + $0x9b4] sm:$0xf0]  ;;  %v4921_v39 = vld [vmem:[%s5624_s6 + $0xba8] sm:$0xf]  ;;  %v4538_v44 = vor.u32 %v5241_v30, %v4537_v29 }
 0x125   : > { %3014 = vmatpush.bf16.msrb.mxu1 %v4090_v48  ;;  %v5305_v38 = vld [vmem:[%s5624_s6 + $0xab4] sm:$0xf0]  ;;  %v4666_v45 = vor.u32 %v5273_v35, %v4665_v31  ;;  %v4521_v47 = vld [vmem:[%s5624_s6 + $0x888] sm:$0xf] }
 0x126   : > { %3027 = vmatpush.bf16.msrb.mxu2 %v4218_v49  ;;  %v5337_v42 = vld [vmem:[%s5624_s6 + $0xbb4] sm:$0xf0]  ;;  %v4794_v46 = vor.u32 %v5305_v38, %v4793_v36  ;;  %v4649_v49 = vld [vmem:[%s5624_s6 + $0x988] sm:$0xf] }
 0x127   : > { %3040 = vmatpush.bf16.msrb.mxu3 %v4346_v53  ;;  %v5237_v48 = vld [vmem:[%s5624_s6 + $0x894] sm:$0xf0]  ;;  %v4922_v50 = vor.u32 %v5337_v42, %v4921_v39  ;;  %v4777_v52 = vld [vmem:[%s5624_s6 + $0xa88] sm:$0xf] }
 0x128   : > { %3002 = vmatpush.bf16.msrb.mxu0 %v3946_v62  ;;  %v5269_v51 = vld [vmem:[%s5624_s6 + $0x994] sm:$0xf0]  ;;  %v4905_v54 = vld [vmem:[%s5624_s6 + $0xb88] sm:$0xf]  ;;  %v4522_v56 = vor.u32 %v5237_v48, %v4521_v47  ;;  %v2796_v57 = vpop.f32.mrf.mxu0 }
 0x129   : > { %3015 = vmatpush.bf16.msrb.mxu1 %v4074_v1  ;;  %v5301_v53 = vld [vmem:[%s5624_s6 + $0xa94] sm:$0xf0]  ;;  %v4650_v58 = vor.u32 %v5269_v51, %v4649_v49  ;;  %v4505_v60 = vld [vmem:[%s5624_s6 + $0x868] sm:$0xf]  ;;  %v2809_v63 = vpop.f32.mrf.mxu1 }
 0x12a   : > { %3028 = vmatpush.bf16.msrb.mxu2 %v4202_v2  ;;  %v5333_v55 = vld [vmem:[%s5624_s6 + $0xb94] sm:$0xf0]  ;;  %v4778_v59 = vor.u32 %v5301_v53, %v4777_v52  ;;  %v4633_v62 = vld [vmem:[%s5624_s6 + $0x968] sm:$0xf]  ;;  %v2810_v3 = vadd.f32 %v2809_v63, %v2796_v57 }
 0x12b   : > { %3041 = vmatpush.bf16.msrb.mxu3 %v4330_v5  ;;  %3003 = vmatmul.bf16.vlgmr.msrb.gmra.mxu0 %v5803_v40  ;;  %v5233_v61 = vld [vmem:[%s5624_s6 + $0x874] sm:$0xf0]  ;;  %v4906_v14 = vor.u32 %v5333_v55, %v4905_v54  ;;  %v4761_v1 = vld [vmem:[%s5624_s6 + $0xa68] sm:$0xf] }
 0x12c   : > { %3047 = vmatpush.bf16.msra.mxu0 %v4570_v6  ;;  %3016 = vmatmul.bf16.vlgmr.msrb.gmra.mxu1 %v5807_v43  ;;  %v5265_v0 = vld [vmem:[%s5624_s6 + $0x974] sm:$0xf0]  ;;  %v4889_v4 = vld [vmem:[%s5624_s6 + $0xb68] sm:$0xf]  ;;  %v4506_v6 = vor.u32 %v5233_v61, %v4505_v60 }
 0x12d   : > { %3060 = vmatpush.bf16.msra.mxu1 %v4698_v7  ;;  %3029 = vmatmul.bf16.vlgmr.msrb.gmra.mxu2 %v5799_v37  ;;  %v5297_v2 = vld [vmem:[%s5624_s6 + $0xa74] sm:$0xf0]  ;;  %v4634_v7 = vor.u32 %v5265_v0, %v4633_v62  ;;  %v4489_v9 = vld [vmem:[%s5624_s6 + $0x848] sm:$0xf]  ;;  %v3547_v0 = vld [vmem:[%s5624_s6 + $0xf8] sm:$0xf0] }
 0x12e   : > { %3073 = vmatpush.bf16.msra.mxu2 %v4826_v8  ;;  %3042 = vmatmul.bf16.vlgmr.msrb.gmra.mxu3 %v5805_v41  ;;  %v5329_v5 = vld [vmem:[%s5624_s6 + $0xb74] sm:$0xf0]  ;;  %v4762_v8 = vor.u32 %v5297_v2, %v4761_v1  ;;  %v4617_v11 = vld [vmem:[%s5624_s6 + $0x948] sm:$0xf]  ;;  %v5023_v1 = vld [vmem:[%s5624_s6 + $0x1ec] sm:$0xf] }
 0x12f   : > { %3086 = vmatpush.bf16.msra.mxu3 %v4954_v12  ;;  %v5229_v10 = vld [vmem:[%s5624_s6 + $0x854] sm:$0xf0]  ;;  %v4890_v13 = vor.u32 %v5329_v5, %v4889_v4  ;;  %v4745_v16 = vld [vmem:[%s5624_s6 + $0xa48] sm:$0xf]  ;;  %v5055_v4 = vld [vmem:[%s5624_s6 + $0x2ec] sm:$0xf] }
 0x130   : > { %3048 = vmatpush.bf16.msra.mxu0 %v4554_v20  ;;  %v2822_v12 = vpop.f32.mrf.mxu2  ;;  %v5261_v15 = vld [vmem:[%s5624_s6 + $0x954] sm:$0xf0]  ;;  %v4490_v29 = vor.u32 %v5229_v10, %v4489_v9  ;;  %v2798_v31 = vpop.f32.mrf.mxu0  ;;  %v4473_v36 = vld [vmem:[%s5624_s6 + $0x828] sm:$0xf]  ;;  %v3803_v5 = vld [vmem:[%s5624_s6 + $0x2f8] sm:$0xf0] }
 0x131   : > { %3061 = vmatpush.bf16.msra.mxu1 %v4682_v21  ;;  %v5293_v17 = vld [vmem:[%s5624_s6 + $0xa54] sm:$0xf0]  ;;  %v2823_v19 = vadd.f32 %v2822_v12, %v2810_v3  ;;  %v2835_v20 = vpop.f32.mrf.mxu3  ;;  %v4873_v21 = vld [vmem:[%s5624_s6 + $0xb48] sm:$0xf]  ;;  %v2811_v42 = vpop.f32.mrf.mxu1  ;;  %v3675_v3 = vld [vmem:[%s5624_s6 + $0x1f8] sm:$0xf0] }
 0x132   : > { %3074 = vmatpush.bf16.msra.mxu2 %v4810_v25  ;;  %v5325_v25 = vld [vmem:[%s5624_s6 + $0xb54] sm:$0xf0]  ;;  %v4746_v35 = vor.u32 %v5293_v17, %v4745_v16  ;;  %v4601_v39 = vld [vmem:[%s5624_s6 + $0x928] sm:$0xf]  ;;  %v3931_v9 = vld [vmem:[%s5624_s6 + $0x3f8] sm:$0xf0]  ;;  %v3678_v12 = vor.u32 %v5023_v1, %v3675_v3 }
 0x133   : > { %3087 = vmatpush.bf16.msra.mxu3 %v4938_v34  ;;  %v6266_v30 = vadd.f32 %v2835_v20, %v2823_v19  ;;  %v4618_v34 = vor.u32 %v5261_v15, %v4617_v11  ;;  %v5225_v38 = vld [vmem:[%s5624_s6 + $0x834] sm:$0xf0]  ;;  %v4857_v48 = vld [vmem:[%s5624_s6 + $0xb28] sm:$0xf]  ;;  %v4987_v15 = vld [vmem:[%s5624_s6 + $0xcc] sm:$0xf] }
 0x134   : > { %3049 = vmatpush.bf16.msra.mxu0 %v4538_v44  ;;  %v4874_v44 = vor.u32 %v5325_v25, %v4873_v21  ;;  %v5289_v47 = vld [vmem:[%s5624_s6 + $0xa34] sm:$0xf0]  ;;  %v4457_v51 = vld [vmem:[%s5624_s6 + $0x808] sm:$0xf]  ;;  %v3531_v16 = vld [vmem:[%s5624_s6 + $0xd8] sm:$0xf0] }
 0x135   : > { %3062 = vmatpush.bf16.msra.mxu1 %v4666_v45  ;;  %v5257_v45 = vld [vmem:[%s5624_s6 + $0x934] sm:$0xf0]  ;;  %v4585_v55 = vld [vmem:[%s5624_s6 + $0x908] sm:$0xf]  ;;  %v5019_v17 = vld [vmem:[%s5624_s6 + $0x1cc] sm:$0xf] }
 0x136   : > { %3075 = vmatpush.bf16.msra.mxu2 %v4794_v46  ;;  %v4729_v46 = vld [vmem:[%s5624_s6 + $0xa28] sm:$0xf]  ;;  %v5321_v49 = vld [vmem:[%s5624_s6 + $0xb34] sm:$0xf0]  ;;  %v4602_v53 = vor.u32 %v5257_v45, %v4601_v39  ;;  %v3659_v20 = vld [vmem:[%s5624_s6 + $0x1d8] sm:$0xf0] }
 0x137   : > { %3088 = vmatpush.bf16.msra.mxu3 %v4922_v50  ;;  %v4474_v50 = vor.u32 %v5225_v38, %v4473_v36  ;;  %v5221_v52 = vld [vmem:[%s5624_s6 + $0x814] sm:$0xf0]  ;;  %v4730_v54 = vor.u32 %v5289_v47, %v4729_v46  ;;  %v4713_v57 = vld [vmem:[%s5624_s6 + $0xa08] sm:$0xf]  ;;  %v5051_v21 = vld [vmem:[%s5624_s6 + $0x2cc] sm:$0xf] }
 0x138   : > { %3050 = vmatpush.bf16.msra.mxu0 %v4522_v56  ;;  %v5253_v56 = vld [vmem:[%s5624_s6 + $0x914] sm:$0xf0]  ;;  %v4841_v61 = vld [vmem:[%s5624_s6 + $0xb08] sm:$0xf]  ;;  %v4458_v2 = vor.u32 %v5221_v52, %v4457_v51  ;;  %v3787_v25 = vld [vmem:[%s5624_s6 + $0x2d8] sm:$0xf0] }
 0x139   : > { %3063 = vmatpush.bf16.msra.mxu1 %v4650_v58  ;;  %v2824_v58 = vpop.f32.mrf.mxu2  ;;  %v5285_v60 = vld [vmem:[%s5624_s6 + $0xa14] sm:$0xf0]  ;;  %v2837_v63 = vpop.f32.mrf.mxu3  ;;  %v3915_v31 = vld [vmem:[%s5624_s6 + $0x3d8] sm:$0xf0]  ;;  %v3790_v36 = vor.u32 %v5051_v21, %v3787_v25  ;;  %v4983_v38 = vld [vmem:[%s5624_s6 + $0xac] sm:$0xf] }
 0x13a   : > { %3076 = vmatpush.bf16.msra.mxu2 %v4778_v59  ;;  %v4858_v59 = vor.u32 %v5321_v49, %v4857_v48  ;;  %v5317_v62 = vld [vmem:[%s5624_s6 + $0xb14] sm:$0xf0]  ;;  %v3515_v39 = vld [vmem:[%s5624_s6 + $0xb8] sm:$0xf0]  ;;  %v5015_v42 = vld [vmem:[%s5624_s6 + $0x1ac] sm:$0xf] }
 0x13b   : > { %3089 = vmatpush.bf16.msra.mxu3 %v4906_v14  ;;  %v4991_v14 = vld [vmem:[%s5624_s6 + $0xec] sm:$0xf]  ;;  %v4842_v10 = vor.u32 %v5317_v62, %v4841_v61  ;;  %v3643_v45 = vld [vmem:[%s5624_s6 + $0x1b8] sm:$0xf0] }
 0x13c   : > { %3051 = vmatpush.bf16.msra.mxu0 %v4506_v6  ;;  %v4586_v6 = vor.u32 %v5253_v56, %v4585_v55  ;;  %v3550_v11 = vor.u32 %v4991_v14, %v3547_v0  ;;  %v5047_v46 = vld [vmem:[%s5624_s6 + $0x2ac] sm:$0xf]  ;;  %v3771_v47 = vld [vmem:[%s5624_s6 + $0x2b8] sm:$0xf0]  ;;  %v3646_v51 = vor.u32 %v5015_v42, %v3643_v45 }
 0x13d   : > { %3064 = vmatpush.bf16.msra.mxu1 %v4634_v7  ;;  %v4714_v7 = vor.u32 %v5285_v60, %v4713_v57  ;;  %v5079_v48 = vld [vmem:[%s5624_s6 + $0x3ac] sm:$0xf]  ;;  %v3899_v49 = vld [vmem:[%s5624_s6 + $0x3b8] sm:$0xf0]  ;;  %v3774_v52 = vor.u32 %v5047_v46, %v3771_v47 }
 0x13e   : > { %3077 = vmatpush.bf16.msra.mxu2 %v4762_v8  ;;  %v5087_v8 = vld [vmem:[%s5624_s6 + $0x3ec] sm:$0xf]  ;;  %v3902_v56 = vor.u32 %v5079_v48, %v3899_v49  ;;  %v3627_v57 = vld [vmem:[%s5624_s6 + $0x198] sm:$0xf0] }
 0x13f   : > { %3090 = vmatpush.bf16.msra.mxu3 %v4890_v13  ;;  %v3806_v13 = vor.u32 %v5055_v4, %v3803_v5  ;;  %v3934_v19 = vor.u32 %v5087_v8, %v3931_v9  ;;  %v5011_v55 = vld [vmem:[%s5624_s6 + $0x18c] sm:$0xf]  ;;  %v3883_v61 = vld [vmem:[%s5624_s6 + $0x398] sm:$0xf0] }
 0x140   : > { %3052 = vmatpush.bf16.msra.mxu0 %v4490_v29  ;;  %v5083_v29 = vld [vmem:[%s5624_s6 + $0x3cc] sm:$0xf]  ;;  %v3630_v14 = vor.u32 %v5011_v55, %v3627_v57  ;;  %v3739_v9 = vld [vmem:[%s5624_s6 + $0x278] sm:$0xf0] }
 0x141   : > { %3065 = vmatpush.bf16.msra.mxu1 %v4618_v34  ;;  %v3534_v34 = vor.u32 %v4987_v15, %v3531_v16  ;;  %v5043_v58 = vld [vmem:[%s5624_s6 + $0x28c] sm:$0xf]  ;;  %v3595_v25 = vld [vmem:[%s5624_s6 + $0x158] sm:$0xf0] }
 0x142   : > { %3078 = vmatpush.bf16.msra.mxu2 %v4746_v35  ;;  %v3662_v35 = vor.u32 %v5019_v17, %v3659_v20  ;;  %v5075_v60 = vld [vmem:[%s5624_s6 + $0x38c] sm:$0xf]  ;;  %v3467_v17 = vld [vmem:[%s5624_s6 + $0x58] sm:$0xf0] }
 0x143   : > { %3091 = vmatpush.bf16.msra.mxu3 %v4874_v44  ;;  %v3918_v44 = vor.u32 %v5083_v29, %v3915_v31  ;;  %v4975_v1 = vld [vmem:[%s5624_s6 + $0x6c] sm:$0xf]  ;;  %v3723_v31 = vld [vmem:[%s5624_s6 + $0x258] sm:$0xf0] }
 0x144   : > { %3053 = vmatpush.bf16.msra.mxu0 %v4474_v50  ;;  %v3518_v50 = vor.u32 %v4983_v38, %v3515_v39  ;;  %v5007_v3 = vld [vmem:[%s5624_s6 + $0x16c] sm:$0xf]  ;;  %v3851_v38 = vld [vmem:[%s5624_s6 + $0x358] sm:$0xf0] }
 0x145   : > { %3066 = vmatpush.bf16.msra.mxu1 %v4602_v53  ;;  %v4979_v53 = vld [vmem:[%s5624_s6 + $0x8c] sm:$0xf]  ;;  %v3451_v48 = vld [vmem:[%s5624_s6 + $0x38] sm:$0xf0] }
 0x146   : > { %3079 = vmatpush.bf16.msra.mxu2 %v4730_v54  ;;  %v3499_v54 = vld [vmem:[%s5624_s6 + $0x98] sm:$0xf0]  ;;  %v5039_v8 = vld [vmem:[%s5624_s6 + $0x26c] sm:$0xf] }
 0x147   : > { %3092 = vmatpush.bf16.msra.mxu3 %v4858_v59  ;;  %v3755_v59 = vld [vmem:[%s5624_s6 + $0x298] sm:$0xf0]  ;;  %v3502_v62 = vor.u32 %v4979_v53, %v3499_v54  ;;  %v3742_v15 = vor.u32 %v5039_v8, %v3739_v9  ;;  %v4971_v16 = vld [vmem:[%s5624_s6 + $0x4c] sm:$0xf] }
 0x148   : > { %3054 = vmatpush.bf16.msra.mxu0 %v4458_v2  ;;  %v2848_v63 = vpop.f32.mrf.mxu0  ;;  %v3758_v0 = vor.u32 %v5043_v58, %v3755_v59  ;;  %v3483_v2 = vld [vmem:[%s5624_s6 + $0x78] sm:$0xf0]  ;;  %v5035_v29 = vld [vmem:[%s5624_s6 + $0x24c] sm:$0xf]  ;;  %v3470_v39 = vor.u32 %v4971_v16, %v3467_v17 }
 0x149   : > { %3067 = vmatpush.bf16.msra.mxu1 %v4586_v6  ;;  %v2849_v4 = vadd.f32 %v2848_v63, %v6266_v30  ;;  %v2861_v5 = vpop.f32.mrf.mxu1  ;;  %v3886_v6 = vor.u32 %v5075_v60, %v3883_v61  ;;  %v3726_v46 = vor.u32 %v5035_v29, %v3723_v31  ;;  %v4967_v47 = vld [vmem:[%s5624_s6 + $0x2c] sm:$0xf]  ;;  %v3707_v54 = vld [vmem:[%s5624_s6 + $0x238] sm:$0xf0] }
 0x14a   : > { %3080 = vmatpush.bf16.msra.mxu2 %v4714_v7  ;;  %v3611_v7 = vld [vmem:[%s5624_s6 + $0x178] sm:$0xf0]  ;;  %v4999_v49 = vld [vmem:[%s5624_s6 + $0x12c] sm:$0xf]  ;;  %v3454_v57 = vor.u32 %v4967_v47, %v3451_v48 }
 0x14b   : > { %3093 = vmatpush.bf16.msra.mxu3 %v4842_v10  ;;  %3055 = vmatmul.bf16.vlgmr.msra.gmra.mxu0 %v5872_v18  ;;  %v5071_v10 = vld [vmem:[%s5624_s6 + $0x36c] sm:$0xf]  ;;  %v3614_v30 = vor.u32 %v5007_v3, %v3611_v7  ;;  %v3435_v59 = vld [vmem:[%s5624_s6 + $0x18] sm:$0xf0] }
 0x14c   : > { %3099 = vmatpush.bf16.msrb.mxu0 %v3550_v11  ;;  %3068 = vmatmul.bf16.vlgmr.msra.gmra.mxu1 %v5879_v23  ;;  %v3867_v11 = vld [vmem:[%s5624_s6 + $0x378] sm:$0xf0]  ;;  %v5031_v53 = vld [vmem:[%s5624_s6 + $0x22c] sm:$0xf] }
 0x14d   : > { %3112 = vmatpush.bf16.msrb.mxu1 %v3678_v12  ;;  %3081 = vmatmul.bf16.vlgmr.msra.gmra.mxu2 %v5877_v22  ;;  %v2862_v12 = vadd.f32 %v2861_v5, %v2849_v4  ;;  %v3870_v21 = vor.u32 %v5071_v10, %v3867_v11  ;;  %v5063_v55 = vld [vmem:[%s5624_s6 + $0x32c] sm:$0xf]  ;;  %v3710_v61 = vor.u32 %v5031_v53, %v3707_v54  ;;  %v3563_v63 = vld [vmem:[%s5624_s6 + $0x118] sm:$0xf0] }
 0x14e   : > { %3125 = vmatpush.bf16.msrb.mxu2 %v3806_v13  ;;  %3094 = vmatmul.bf16.vlgmr.msra.gmra.mxu3 %v5883_v28  ;;  %v3486_v13 = vor.u32 %v4975_v1, %v3483_v2  ;;  %v4963_v58 = vld [vmem:[%s5624_s6 + $0xc] sm:$0xf]  ;;  %v3691_v2 = vld [vmem:[%s5624_s6 + $0x218] sm:$0xf0] }
 0x14f   : > { %3138 = vmatpush.bf16.msrb.mxu3 %v3934_v19  ;;  %v5003_v19 = vld [vmem:[%s5624_s6 + $0x14c] sm:$0xf]  ;;  %v3819_v4 = vld [vmem:[%s5624_s6 + $0x318] sm:$0xf0]  ;;  %v3438_v9 = vor.u32 %v4963_v58, %v3435_v59 }
 0x150   : > { %3100 = vmatpush.bf16.msrb.mxu0 %v3534_v34  ;;  %v2874_v20 = vpop.f32.mrf.mxu2  ;;  %v3598_v45 = vor.u32 %v5003_v19, %v3595_v25  ;;  %v5059_v3 = vld [vmem:[%s5624_s6 + $0x30c] sm:$0xf]  ;;  %v4059_v7 = vld [vmem:[%s5624_s6 + $0x4f8] sm:$0xf0] }
 0x151   : > { %3113 = vmatpush.bf16.msrb.mxu1 %v3662_v35  ;;  %v2875_v34 = vadd.f32 %v2874_v20, %v2862_v12  ;;  %v2887_v35 = vpop.f32.mrf.mxu3  ;;  %v5151_v8 = vld [vmem:[%s5624_s6 + $0x5ec] sm:$0xf]  ;;  %v4187_v10 = vld [vmem:[%s5624_s6 + $0x5f8] sm:$0xf0]  ;;  %v3822_v17 = vor.u32 %v5059_v3, %v3819_v4 }
 0x152   : > { %3126 = vmatpush.bf16.msrb.mxu2 %v3790_v36  ;;  %v5067_v36 = vld [vmem:[%s5624_s6 + $0x34c] sm:$0xf]  ;;  %v4315_v12 = vld [vmem:[%s5624_s6 + $0x6f8] sm:$0xf0]  ;;  %v4190_v20 = vor.u32 %v5151_v8, %v4187_v10 }
 0x153   : > { %3139 = vmatpush.bf16.msrb.mxu3 %v3918_v44  ;;  %v6337_v42 = vadd.f32 %v2887_v35, %v2875_v34  ;;  %v2850_v44 = vpop.f32.mrf.mxu0  ;;  %v5183_v11 = vld [vmem:[%s5624_s6 + $0x6ec] sm:$0xf]  ;;  %v4443_v16 = vld [vmem:[%s5624_s6 + $0x7f8] sm:$0xf0] }
 0x154   : > { %3101 = vmatpush.bf16.msrb.mxu0 %v3518_v50  ;;  %v2863_v50 = vpop.f32.mrf.mxu1  ;;  %v5115_v25 = vld [vmem:[%s5624_s6 + $0x4cc] sm:$0xf]  ;;  %v4043_v29 = vld [vmem:[%s5624_s6 + $0x4d8] sm:$0xf0] }
 0x155   : > { %3114 = vmatpush.bf16.msrb.mxu1 %v3646_v51  ;;  %v3854_v51 = vor.u32 %v5067_v36, %v3851_v38  ;;  %v5147_v31 = vld [vmem:[%s5624_s6 + $0x5cc] sm:$0xf]  ;;  %v4171_v35 = vld [vmem:[%s5624_s6 + $0x5d8] sm:$0xf0] }
 0x156   : > { %3127 = vmatpush.bf16.msrb.mxu2 %v3774_v52  ;;  %v3579_v52 = vld [vmem:[%s5624_s6 + $0x138] sm:$0xf0]  ;;  %v5179_v36 = vld [vmem:[%s5624_s6 + $0x6cc] sm:$0xf] }
 0x157   : > { %3140 = vmatpush.bf16.msrb.mxu3 %v3902_v56  ;;  %v3835_v56 = vld [vmem:[%s5624_s6 + $0x338] sm:$0xf0]  ;;  %v3582_v60 = vor.u32 %v4999_v49, %v3579_v52  ;;  %v5111_v48 = vld [vmem:[%s5624_s6 + $0x4ac] sm:$0xf] }
 0x158   : > { %3102 = vmatpush.bf16.msrb.mxu0 %v3502_v62  ;;  %v4995_v62 = vld [vmem:[%s5624_s6 + $0x10c] sm:$0xf]  ;;  %v3838_v1 = vor.u32 %v5063_v55, %v3835_v56  ;;  %v4299_v38 = vld [vmem:[%s5624_s6 + $0x6d8] sm:$0xf0] }
 0x159   : > { %3115 = vmatpush.bf16.msrb.mxu1 %v3630_v14  ;;  %v5027_v14 = vld [vmem:[%s5624_s6 + $0x20c] sm:$0xf]  ;;  %v2889_v5 = vpop.f32.mrf.mxu3  ;;  %v4427_v44 = vld [vmem:[%s5624_s6 + $0x7d8] sm:$0xf0]  ;;  %v4302_v47 = vor.u32 %v5179_v36, %v4299_v38 }
 0x15a   : > { %3128 = vmatpush.bf16.msrb.mxu2 %v3758_v0  ;;  %v2876_v0 = vpop.f32.mrf.mxu2  ;;  %v4027_v49 = vld [vmem:[%s5624_s6 + $0x4b8] sm:$0xf0]  ;;  %v5143_v50 = vld [vmem:[%s5624_s6 + $0x5ac] sm:$0xf] }
 0x15b   : > { %3141 = vmatpush.bf16.msrb.mxu3 %v3886_v6  ;;  %v5119_v6 = vld [vmem:[%s5624_s6 + $0x4ec] sm:$0xf]  ;;  %v4155_v52 = vld [vmem:[%s5624_s6 + $0x5b8] sm:$0xf0] }
 0x15c   : > { %3103 = vmatpush.bf16.msrb.mxu0 %v3486_v13  ;;  %v3566_v13 = vor.u32 %v4995_v62, %v3563_v63  ;;  %v4062_v19 = vor.u32 %v5119_v6, %v4059_v7  ;;  %v5175_v53 = vld [vmem:[%s5624_s6 + $0x6ac] sm:$0xf]  ;;  %v4283_v54 = vld [vmem:[%s5624_s6 + $0x6b8] sm:$0xf0]  ;;  %v4158_v58 = vor.u32 %v5143_v50, %v4155_v52 }
 0x15d   : > { %3116 = vmatpush.bf16.msrb.mxu1 %v3614_v30  ;;  %v3694_v30 = vor.u32 %v5027_v14, %v3691_v2  ;;  %v5207_v55 = vld [vmem:[%s5624_s6 + $0x7ac] sm:$0xf]  ;;  %v4411_v56 = vld [vmem:[%s5624_s6 + $0x7b8] sm:$0xf0]  ;;  %v4286_v59 = vor.u32 %v5175_v53, %v4283_v54 }
 0x15e   : > { %3129 = vmatpush.bf16.msrb.mxu2 %v3742_v15  ;;  %v5215_v15 = vld [vmem:[%s5624_s6 + $0x7ec] sm:$0xf]  ;;  %v4414_v62 = vor.u32 %v5207_v55, %v4411_v56  ;;  %v4267_v63 = vld [vmem:[%s5624_s6 + $0x698] sm:$0xf0] }
 0x15f   : > { %3142 = vmatpush.bf16.msrb.mxu3 %v3870_v21  ;;  %v4318_v21 = vor.u32 %v5183_v11, %v4315_v12  ;;  %v4446_v34 = vor.u32 %v5215_v15, %v4443_v16  ;;  %v5203_v0 = vld [vmem:[%s5624_s6 + $0x78c] sm:$0xf]  ;;  %v3995_v7 = vld [vmem:[%s5624_s6 + $0x478] sm:$0xf0] }
 0x160   : > { %3104 = vmatpush.bf16.msrb.mxu0 %v3470_v39  ;;  %v5211_v39 = vld [vmem:[%s5624_s6 + $0x7cc] sm:$0xf]  ;;  %v4123_v11 = vld [vmem:[%s5624_s6 + $0x578] sm:$0xf0] }
 0x161   : > { %3117 = vmatpush.bf16.msrb.mxu1 %v3598_v45  ;;  %v4046_v45 = vor.u32 %v5115_v25, %v4043_v29  ;;  %v5103_v6 = vld [vmem:[%s5624_s6 + $0x46c] sm:$0xf]  ;;  %v3963_v52 = vld [vmem:[%s5624_s6 + $0x438] sm:$0xf0] }
 0x162   : > { %3130 = vmatpush.bf16.msrb.mxu2 %v3726_v46  ;;  %v4174_v46 = vor.u32 %v5147_v31, %v4171_v35  ;;  %v5135_v8 = vld [vmem:[%s5624_s6 + $0x56c] sm:$0xf]  ;;  %v3998_v15 = vor.u32 %v5103_v6, %v3995_v7  ;;  %v4107_v31 = vld [vmem:[%s5624_s6 + $0x558] sm:$0xf0] }
 0x163   : > { %3143 = vmatpush.bf16.msrb.mxu3 %v3854_v51  ;;  %v4430_v51 = vor.u32 %v5211_v39, %v4427_v44  ;;  %v5167_v12 = vld [vmem:[%s5624_s6 + $0x66c] sm:$0xf]  ;;  %v4126_v16 = vor.u32 %v5135_v8, %v4123_v11  ;;  %v4235_v35 = vld [vmem:[%s5624_s6 + $0x658] sm:$0xf0] }
 0x164   : > { %3105 = vmatpush.bf16.msrb.mxu0 %v3454_v57  ;;  %v4030_v57 = vor.u32 %v5111_v48, %v4027_v49  ;;  %v5195_v39 = vld [vmem:[%s5624_s6 + $0x74c] sm:$0xf]  ;;  %v4363_v44 = vld [vmem:[%s5624_s6 + $0x758] sm:$0xf0] }
 0x165   : > { %3118 = vmatpush.bf16.msrb.mxu1 %v3582_v60  ;;  %v4011_v60 = vld [vmem:[%s5624_s6 + $0x498] sm:$0xf0]  ;;  %v5127_v53 = vld [vmem:[%s5624_s6 + $0x52c] sm:$0xf]  ;;  %v4366_v54 = vor.u32 %v5195_v39, %v4363_v44 }
 0x166   : > { %3131 = vmatpush.bf16.msrb.mxu2 %v3710_v61  ;;  %v5139_v61 = vld [vmem:[%s5624_s6 + $0x58c] sm:$0xf]  ;;  %v4091_v55 = vld [vmem:[%s5624_s6 + $0x538] sm:$0xf0] }
 0x167   : > { %3144 = vmatpush.bf16.msrb.mxu3 %v3838_v1  ;;  %v4395_v1 = vld [vmem:[%s5624_s6 + $0x798] sm:$0xf0]  ;;  %v5159_v56 = vld [vmem:[%s5624_s6 + $0x62c] sm:$0xf] }
 0x168   : > { %3106 = vmatpush.bf16.msrb.mxu0 %v3438_v9  ;;  %v2900_v14 = vpop.f32.mrf.mxu0  ;;  %v4398_v9 = vor.u32 %v5203_v0, %v4395_v1  ;;  %v4075_v0 = vld [vmem:[%s5624_s6 + $0x518] sm:$0xf0]  ;;  %v5155_v1 = vld [vmem:[%s5624_s6 + $0x60c] sm:$0xf] }
 0x169   : > { %3119 = vmatpush.bf16.msrb.mxu1 %v3566_v13  ;;  %v2913_v3 = vpop.f32.mrf.mxu1  ;;  %v5199_v13 = vld [vmem:[%s5624_s6 + $0x76c] sm:$0xf]  ;;  %v4571_v6 = vld [vmem:[%s5624_s6 + $0x8f8] sm:$0xf0] }
 0x16a   : > { %3132 = vmatpush.bf16.msrb.mxu2 %v3694_v30  ;;  %v4379_v30 = vld [vmem:[%s5624_s6 + $0x778] sm:$0xf0]  ;;  %v5279_v7 = vld [vmem:[%s5624_s6 + $0x9ec] sm:$0xf] }
 0x16b   : > { %3145 = vmatpush.bf16.msrb.mxu3 %v3822_v17  ;;  %3107 = vmatmul.bf16.vlgmr.msrb.gmra.mxu0 %v5746_v27  ;;  %v4139_v27 = vld [vmem:[%s5624_s6 + $0x598] sm:$0xf0]  ;;  %v4382_v25 = vor.u32 %v5199_v13, %v4379_v30  ;;  %v5311_v11 = vld [vmem:[%s5624_s6 + $0xaec] sm:$0xf] }
 0x16c   : > { %3151 = vmatpush.bf16.msra.mxu0 %v4062_v19  ;;  %3120 = vmatmul.bf16.vlgmr.msrb.gmra.mxu1 %v5752_v33  ;;  %v2901_v33 = vadd.f32 %v2900_v14, %v6337_v42  ;;  %v4142_v4 = vor.u32 %v5139_v61, %v4139_v27  ;;  %v4251_v42 = vld [vmem:[%s5624_s6 + $0x678] sm:$0xf0]  ;;  %v5099_v19 = vld [vmem:[%s5624_s6 + $0x44c] sm:$0xf] }
 0x16d   : > { %3164 = vmatpush.bf16.msra.mxu1 %v4190_v20  ;;  %3133 = vmatmul.bf16.vlgmr.msrb.gmra.mxu2 %v5744_v26  ;;  %v5107_v26 = vld [vmem:[%s5624_s6 + $0x48c] sm:$0xf]  ;;  %v4254_v17 = vor.u32 %v5167_v12, %v4251_v42  ;;  %v3979_v20 = vld [vmem:[%s5624_s6 + $0x458] sm:$0xf0] }
 0x16e   : > { %3177 = vmatpush.bf16.msra.mxu2 %v4318_v21  ;;  %3146 = vmatmul.bf16.vlgmr.msrb.gmra.mxu3 %v5750_v32  ;;  %v5171_v32 = vld [vmem:[%s5624_s6 + $0x68c] sm:$0xf]  ;;  %v4014_v2 = vor.u32 %v5107_v26, %v4011_v60  ;;  %v2914_v10 = vadd.f32 %v2913_v3, %v2901_v33  ;;  %v4347_v26 = vld [vmem:[%s5624_s6 + $0x738] sm:$0xf0] }
 0x16f   : > { %3190 = vmatpush.bf16.msra.mxu3 %v4446_v34  ;;  %v4270_v5 = vor.u32 %v5171_v32, %v4267_v63  ;;  %v5131_v21 = vld [vmem:[%s5624_s6 + $0x54c] sm:$0xf]  ;;  %v4094_v32 = vor.u32 %v5127_v53, %v4091_v55  ;;  %v4827_v12 = vld [vmem:[%s5624_s6 + $0xaf8] sm:$0xf0] }
 0x170   : > { %3152 = vmatpush.bf16.msra.mxu0 %v4046_v45  ;;  %v2926_v29 = vpop.f32.mrf.mxu2  ;;  %v5163_v34 = vld [vmem:[%s5624_s6 + $0x64c] sm:$0xf]  ;;  %v2902_v45 = vpop.f32.mrf.mxu0  ;;  %v4110_v49 = vor.u32 %v5131_v21, %v4107_v31  ;;  %v4939_v39 = vld [vmem:[%s5624_s6 + $0xbd8] sm:$0xf0] }
 0x171   : > { %3165 = vmatpush.bf16.msra.mxu1 %v4174_v46  ;;  %v2927_v36 = vadd.f32 %v2926_v29, %v2914_v10  ;;  %v2939_v38 = vpop.f32.mrf.mxu3  ;;  %v3982_v46 = vor.u32 %v5099_v19, %v3979_v20  ;;  %v4238_v50 = vor.u32 %v5163_v34, %v4235_v35  ;;  %v5091_v61 = vld [vmem:[%s5624_s6 + $0x40c] sm:$0xf]  ;;  %v4699_v10 = vld [vmem:[%s5624_s6 + $0x9f8] sm:$0xf0]  ;;  %v4830_v20 = vor.u32 %v5311_v11, %v4827_v12 }
 0x172   : > { %3178 = vmatpush.bf16.msra.mxu2 %v4302_v47  ;;  %v2915_v47 = vpop.f32.mrf.mxu1  ;;  %v5123_v14 = vld [vmem:[%s5624_s6 + $0x50c] sm:$0xf]  ;;  %v4702_v19 = vor.u32 %v5279_v7, %v4699_v10  ;;  %v4683_v34 = vld [vmem:[%s5624_s6 + $0x9d8] sm:$0xf0] }
 0x173   : > { %3191 = vmatpush.bf16.msra.mxu3 %v4430_v51  ;;  %v2940_v48 = vadd.f32 %v2939_v38, %v2927_v36  ;;  %v5095_v51 = vld [vmem:[%s5624_s6 + $0x42c] sm:$0xf]  ;;  %v4078_v42 = vor.u32 %v5123_v14, %v4075_v0  ;;  %v4811_v36 = vld [vmem:[%s5624_s6 + $0xad8] sm:$0xf0] }
 0x174   : > { %3153 = vmatpush.bf16.msra.mxu0 %v4030_v57  ;;  %v4219_v57 = vld [vmem:[%s5624_s6 + $0x638] sm:$0xf0]  ;;  %v3966_v60 = vor.u32 %v5095_v51, %v3963_v52  ;;  %v5187_v3 = vld [vmem:[%s5624_s6 + $0x70c] sm:$0xf] }
 0x175   : > { %3166 = vmatpush.bf16.msra.mxu1 %v4158_v58  ;;  %v3259_v58 = vrot.slane %v2940_v48, 6  ;;  %v4222_v63 = vor.u32 %v5159_v56, %v4219_v57  ;;  %v5343_v30 = vld [vmem:[%s5624_s6 + $0xbec] sm:$0xf]  ;;  %v4539_v48 = vld [vmem:[%s5624_s6 + $0x8b8] sm:$0xf0] }
 0x176   : > { %3179 = vmatpush.bf16.msra.mxu2 %v4286_v59  ;;  %v5191_v59 = vld [vmem:[%s5624_s6 + $0x72c] sm:$0xf]  ;;  %v4667_v51 = vld [vmem:[%s5624_s6 + $0x9b8] sm:$0xf0] }
 0x177   : > { %3192 = vmatpush.bf16.msra.mxu3 %v4414_v62  ;;  %v3947_v62 = vld [vmem:[%s5624_s6 + $0x418] sm:$0xf0]  ;;  %v6420_v27 = vsel %vm3262_vm0, %v6196_v24, %v3259_v58  ;;  %v4350_v33 = vor.u32 %v5191_v59, %v4347_v26  ;;  %v5243_v21 = vld [vmem:[%s5624_s6 + $0x8cc] sm:$0xf] }
 0x178   : > { %3154 = vmatpush.bf16.msra.mxu0 %v4014_v2  ;;  %v4203_v2 = vld [vmem:[%s5624_s6 + $0x618] sm:$0xf0]  ;;  %v2928_v24 = vpop.f32.mrf.mxu2  ;;  %v5275_v29 = vld [vmem:[%s5624_s6 + $0x9cc] sm:$0xf] }
 0x179   : > { %3167 = vmatpush.bf16.msra.mxu1 %v4142_v4  ;;  %v4331_v4 = vld [vmem:[%s5624_s6 + $0x718] sm:$0xf0]  ;;  %v2941_v8 = vpop.f32.mrf.mxu3  ;;  %v4206_v13 = vor.u32 %v5155_v1, %v4203_v2  ;;  %v5307_v35 = vld [vmem:[%s5624_s6 + $0xacc] sm:$0xf]  ;;  %v4686_v45 = vor.u32 %v5275_v29, %v4683_v34 }
 0x17a   : > { %3180 = vmatpush.bf16.msra.mxu2 %v4270_v5  ;;  %v5247_v5 = vld [vmem:[%s5624_s6 + $0x8ec] sm:$0xf]  ;;  %v4795_v53 = vld [vmem:[%s5624_s6 + $0xab8] sm:$0xf0] }
 0x17b   : > { %3193 = vmatpush.bf16.msra.mxu3 %v4398_v9  ;;  %v3950_v9 = vor.u32 %v5091_v61, %v3947_v62  ;;  %v5339_v38 = vld [vmem:[%s5624_s6 + $0xbcc] sm:$0xf]  ;;  %v4923_v55 = vld [vmem:[%s5624_s6 + $0xbb8] sm:$0xf0] }
 0x17c   : > { %3155 = vmatpush.bf16.msra.mxu0 %v3998_v15  ;;  %v4955_v15 = vld [vmem:[%s5624_s6 + $0xbf8] sm:$0xf0]  ;;  %v5239_v47 = vld [vmem:[%s5624_s6 + $0x8ac] sm:$0xf] }
 0x17d   : > { %3168 = vmatpush.bf16.msra.mxu1 %v4126_v16  ;;  %v4334_v16 = vor.u32 %v5187_v3, %v4331_v4  ;;  %v4958_v31 = vor.u32 %v5343_v30, %v4955_v15  ;;  %v5303_v52 = vld [vmem:[%s5624_s6 + $0xaac] sm:$0xf]  ;;  %v4542_v56 = vor.u32 %v5239_v47, %v4539_v48  ;;  %v4523_v59 = vld [vmem:[%s5624_s6 + $0x898] sm:$0xf0] }
 0x17e   : > { %3181 = vmatpush.bf16.msra.mxu2 %v4254_v17  ;;  %v4574_v17 = vor.u32 %v5247_v5, %v4571_v6  ;;  %v4798_v57 = vor.u32 %v5303_v52, %v4795_v53  ;;  %v5235_v58 = vld [vmem:[%s5624_s6 + $0x88c] sm:$0xf]  ;;  %v4651_v26 = vld [vmem:[%s5624_s6 + $0x998] sm:$0xf0] }
 0x17f   : > { %3194 = vmatpush.bf16.msra.mxu3 %v4382_v25  ;;  %v4555_v25 = vld [vmem:[%s5624_s6 + $0x8d8] sm:$0xf0]  ;;  %v5331_v62 = vld [vmem:[%s5624_s6 + $0xb8c] sm:$0xf] }
 0x180   : > { %3156 = vmatpush.bf16.msra.mxu0 %v3982_v46  ;;  %v4558_v44 = vor.u32 %v5243_v21, %v4555_v25  ;;  %v4814_v46 = vor.u32 %v5307_v35, %v4811_v36  ;;  %v4779_v61 = vld [vmem:[%s5624_s6 + $0xa98] sm:$0xf0]  ;;  %v5231_v1 = vld [vmem:[%s5624_s6 + $0x86c] sm:$0xf] }
 0x181   : > { %3169 = vmatpush.bf16.msra.mxu1 %v4110_v49  ;;  %v5271_v49 = vld [vmem:[%s5624_s6 + $0x9ac] sm:$0xf]  ;;  %v4635_v24 = vld [vmem:[%s5624_s6 + $0x978] sm:$0xf0] }
 0x182   : > { %3182 = vmatpush.bf16.msra.mxu2 %v4238_v50  ;;  %v4942_v50 = vor.u32 %v5339_v38, %v4939_v39  ;;  %v5263_v2 = vld [vmem:[%s5624_s6 + $0x96c] sm:$0xf]  ;;  %v4763_v6 = vld [vmem:[%s5624_s6 + $0xa78] sm:$0xf0] }
 0x183   : > { %3195 = vmatpush.bf16.msra.mxu3 %v4366_v54  ;;  %v5335_v54 = vld [vmem:[%s5624_s6 + $0xbac] sm:$0xf]  ;;  %v4638_v11 = vor.u32 %v5263_v2, %v4635_v24  ;;  %v4859_v53 = vld [vmem:[%s5624_s6 + $0xb38] sm:$0xf0] }
 0x184   : > { %3157 = vmatpush.bf16.msra.mxu0 %v3966_v60  ;;  %v5299_v60 = vld [vmem:[%s5624_s6 + $0xa8c] sm:$0xf] }
 0x185   : > { %3170 = vmatpush.bf16.msra.mxu1 %v4094_v32  ;;  %v4907_v32 = vld [vmem:[%s5624_s6 + $0xb98] sm:$0xf0]  ;;  %v4782_v0 = vor.u32 %v5299_v60, %v4779_v61  ;;  %v5295_v5 = vld [vmem:[%s5624_s6 + $0xa6c] sm:$0xf] }
 0x186   : > { %3183 = vmatpush.bf16.msra.mxu2 %v4222_v63  ;;  %v4910_v4 = vor.u32 %v5331_v62, %v4907_v32  ;;  %v5327_v8 = vld [vmem:[%s5624_s6 + $0xb6c] sm:$0xf]  ;;  %v4766_v12 = vor.u32 %v5295_v5, %v4763_v6  ;;  %v4715_v60 = vld [vmem:[%s5624_s6 + $0xa18] sm:$0xf0] }
 0x187   : > { %3196 = vmatpush.bf16.msra.mxu3 %v4350_v33  ;;  %v4507_v33 = vld [vmem:[%s5624_s6 + $0x878] sm:$0xf0]  ;;  %v5259_v30 = vld [vmem:[%s5624_s6 + $0x94c] sm:$0xf] }
 0x188   : > { %3158 = vmatpush.bf16.msra.mxu0 %v3950_v9  ;;  %v2952_v63 = vpop.f32.mrf.mxu0  ;;  %v4891_v9 = vld [vmem:[%s5624_s6 + $0xb78] sm:$0xf0]  ;;  %v4510_v10 = vor.u32 %v5231_v1, %v4507_v33  ;;  %v5323_v29 = vld [vmem:[%s5624_s6 + $0xb4c] sm:$0xf] }
 0x189   : > { %3171 = vmatpush.bf16.msra.mxu1 %v4078_v42  ;;  %v2965_v3 = vpop.f32.mrf.mxu1  ;;  %v5227_v42 = vld [vmem:[%s5624_s6 + $0x84c] sm:$0xf]  ;;  %v4843_v32 = vld [vmem:[%s5624_s6 + $0xb18] sm:$0xf0] }
 0x18a   : > { %3184 = vmatpush.bf16.msra.mxu2 %v4206_v13  ;;  %v2966_v7 = vadd.f32 %v2965_v3, %v2952_v63  ;;  %v4491_v13 = vld [vmem:[%s5624_s6 + $0x858] sm:$0xf0]  ;;  %v5319_v52 = vld [vmem:[%s5624_s6 + $0xb2c] sm:$0xf] }
 0x18b   : > { %3197 = vmatpush.bf16.msra.mxu3 %v4334_v16  ;;  %3159 = vmatmul.bf16.vlgmr.msra.gmra.mxu0 %v5803_v40  ;;  %v5267_v40 = vld [vmem:[%s5624_s6 + $0x98c] sm:$0xf]  ;;  %v4894_v16 = vor.u32 %v5327_v8, %v4891_v9  ;;  %v4494_v34 = vor.u32 %v5227_v42, %v4491_v13 }
 0x18c   : > { %3203 = vmatpush.bf16.msrb.mxu0 %v4574_v17  ;;  %3172 = vmatmul.bf16.vlgmr.msra.gmra.mxu1 %v5807_v43  ;;  %v4526_v43 = vor.u32 %v5235_v58, %v4523_v59  ;;  %v4654_v14 = vor.u32 %v5267_v40, %v4651_v26  ;;  %v4619_v17 = vld [vmem:[%s5624_s6 + $0x958] sm:$0xf0]  ;;  %v5251_v58 = vld [vmem:[%s5624_s6 + $0x90c] sm:$0xf]  ;;  %v4862_v40 = vor.u32 %v5319_v52, %v4859_v53 }
 0x18d   : > { %3216 = vmatpush.bf16.msrb.mxu1 %v4702_v19  ;;  %3185 = vmatmul.bf16.vlgmr.msra.gmra.mxu2 %v5799_v37  ;;  %v4670_v37 = vor.u32 %v5271_v49, %v4667_v51  ;;  %v5291_v19 = vld [vmem:[%s5624_s6 + $0xa4c] sm:$0xf]  ;;  %v4622_v38 = vor.u32 %v5259_v30, %v4619_v17  ;;  %v4603_v49 = vld [vmem:[%s5624_s6 + $0x938] sm:$0xf0] }
 0x18e   : > { %3229 = vmatpush.bf16.msrb.mxu2 %v4830_v20  ;;  %3198 = vmatmul.bf16.vlgmr.msra.gmra.mxu3 %v5805_v41  ;;  %v4926_v41 = vor.u32 %v5335_v54, %v4923_v55  ;;  %v4747_v20 = vld [vmem:[%s5624_s6 + $0xa58] sm:$0xf0]  ;;  %v5283_v26 = vld [vmem:[%s5624_s6 + $0xa0c] sm:$0xf] }
 0x18f   : > { %3242 = vmatpush.bf16.msrb.mxu3 %v4958_v31  ;;  %v4875_v31 = vld [vmem:[%s5624_s6 + $0xb58] sm:$0xf0]  ;;  %v4750_v39 = vor.u32 %v5291_v19, %v4747_v20  ;;  %v5315_v62 = vld [vmem:[%s5624_s6 + $0xb0c] sm:$0xf] }
 0x190   : > { %3204 = vmatpush.bf16.msrb.mxu0 %v4558_v44  ;;  %v2978_v15 = vpop.f32.mrf.mxu2  ;;  %v2954_v36 = vpop.f32.mrf.mxu0  ;;  %v5223_v44 = vld [vmem:[%s5624_s6 + $0x82c] sm:$0xf]  ;;  %v4878_v48 = vor.u32 %v5323_v29, %v4875_v31  ;;  %v4731_v51 = vld [vmem:[%s5624_s6 + $0xa38] sm:$0xf0] }
 0x191   : > { %3217 = vmatpush.bf16.msrb.mxu1 %v4686_v45  ;;  %v2979_v21 = vadd.f32 %v2978_v15, %v2966_v7  ;;  %v2991_v25 = vpop.f32.mrf.mxu3  ;;  %v4475_v45 = vld [vmem:[%s5624_s6 + $0x838] sm:$0xf0]  ;;  %v2967_v47 = vpop.f32.mrf.mxu1 }
 0x192   : > { %3230 = vmatpush.bf16.msrb.mxu2 %v4814_v46  ;;  %v5255_v46 = vld [vmem:[%s5624_s6 + $0x92c] sm:$0xf]  ;;  %v4478_v54 = vor.u32 %v5223_v44, %v4475_v45 }
 0x193   : > { %3243 = vmatpush.bf16.msrb.mxu3 %v4942_v50  ;;  %v2992_v35 = vadd.f32 %v2991_v25, %v2979_v21  ;;  %v5287_v50 = vld [vmem:[%s5624_s6 + $0xa2c] sm:$0xf]  ;;  %v4606_v55 = vor.u32 %v5255_v46, %v4603_v49 }
 0x194   : > { %3205 = vmatpush.bf16.msrb.mxu0 %v4542_v56  ;;  %v4734_v56 = vor.u32 %v5287_v50, %v4731_v51 }
 0x195   : > { %3218 = vmatpush.bf16.msrb.mxu1 %v4670_v37  ;;  %v5219_v37 = vld [vmem:[%s5624_s6 + $0x80c] sm:$0xf] }
 0x196   : > { %3231 = vmatpush.bf16.msrb.mxu2 %v4798_v57  ;;  %v4459_v57 = vld [vmem:[%s5624_s6 + $0x818] sm:$0xf0] }
 0x197   : > { %3244 = vmatpush.bf16.msrb.mxu3 %v4926_v41  ;;  %v4587_v41 = vld [vmem:[%s5624_s6 + $0x918] sm:$0xf0] }
 0x198   : > { %3206 = vmatpush.bf16.msrb.mxu0 %v4526_v43  ;;  %v2980_v59 = vpop.f32.mrf.mxu2  ;;  %v4462_v43 = vor.u32 %v5219_v37, %v4459_v57  ;;  %v4590_v63 = vor.u32 %v5251_v58, %v4587_v41 }
 0x199   : > { %3219 = vmatpush.bf16.msrb.mxu1 %v4654_v14  ;;  %v2993_v61 = vpop.f32.mrf.mxu3  ;;  %v4718_v14 = vor.u32 %v5283_v26, %v4715_v60 }
 0x19a   : > { %3232 = vmatpush.bf16.msrb.mxu2 %v4782_v0  ;;  %v4846_v0 = vor.u32 %v5315_v62, %v4843_v32 }
 0x19b   : > { %3245 = vmatpush.bf16.msrb.mxu3 %v4910_v4 }
 0x19c   : > { %3207 = vmatpush.bf16.msrb.mxu0 %v4510_v10 }
 0x19d   : > { %3220 = vmatpush.bf16.msrb.mxu1 %v4638_v11 }
 0x19e   : > { %3233 = vmatpush.bf16.msrb.mxu2 %v4766_v12 }
 0x19f   : > { %3246 = vmatpush.bf16.msrb.mxu3 %v4894_v16 }
 0x1a0   : > { %3208 = vmatpush.bf16.msrb.mxu0 %v4494_v34 }
 0x1a1   : > { %3221 = vmatpush.bf16.msrb.mxu1 %v4622_v38 }
 0x1a2   : > { %3234 = vmatpush.bf16.msrb.mxu2 %v4750_v39 }
 0x1a3   : > { %3247 = vmatpush.bf16.msrb.mxu3 %v4878_v48 }
 0x1a4   : > { %3209 = vmatpush.bf16.msrb.mxu0 %v4478_v54 }
 0x1a5   : > { %3222 = vmatpush.bf16.msrb.mxu1 %v4606_v55  ;;  %v3275_v55 = vld [vmem:[%s5630_s9] sm:$0xf] }
 0x1a6   : > { %3235 = vmatpush.bf16.msrb.mxu2 %v4734_v56  ;;  %v3278_v59 = vperm.slane %v3275_v55, 1  ;;  %v3280_v41 = vperm.slane %v3275_v55, 3  ;;  %v3277_v60 = vperm.slane %v3275_v55, 0 }
 0x1a7   : > { %3248 = vmatpush.bf16.msrb.mxu3 %v4862_v40  ;;  %v3279_v40 = vperm.slane %v3275_v55, 2 }
 0x1a8   : > { %3210 = vmatpush.bf16.msrb.mxu0 %v4462_v43  ;;  %v3004_v1 = vpop.f32.mrf.mxu0  ;;  %v3281_v61 = vrot.slane %v3278_v59, 6 }
 0x1a9   : > { %3223 = vmatpush.bf16.msrb.mxu1 %v4590_v63  ;;  %v3005_v33 = vadd.f32 %v3004_v1, %v2992_v35  ;;  %v3017_v2 = vpop.f32.mrf.mxu1  ;;  %v3282_v63 = vrot.slane %v3279_v40, 4 }
 0x1aa   : > { %3236 = vmatpush.bf16.msrb.mxu2 %v4718_v14  ;;  %v3283_v14 = vrot.slane %v3280_v41, 2 }
 0x1ab   : > { %3249 = vmatpush.bf16.msrb.mxu3 %v4846_v0  ;;  %3211 = vmatmul.bf16.vlgmr.msrb.gmra.mxu0 %v5872_v18  ;;  %v3018_v3 = vadd.f32 %v3017_v2, %v3005_v33  ;;  %v3284_v2 = vsel %vm3262_vm0, %v3277_v60, %v3281_v61 }
 0x1ac   : > { %3224 = vmatmul.bf16.vlgmr.msrb.gmra.mxu1 %v5879_v23 }
 0x1ad   : > { %3237 = vmatmul.bf16.vlgmr.msrb.gmra.mxu2 %v5877_v22 }
 0x1ae   : > { %3250 = vmatmul.bf16.vlgmr.msrb.gmra.mxu3 %v5883_v28 }
 0x1b0   : > { %v3030_v4 = vpop.f32.mrf.mxu2  ;;  %v3006_v7 = vpop.f32.mrf.mxu0 }
 0x1b1   : > { %v3031_v24 = vadd.f32 %v3030_v4, %v3018_v3  ;;  %v3043_v5 = vpop.f32.mrf.mxu3  ;;  %v3019_v8 = vpop.f32.mrf.mxu1 }
 0x1b3   : > { %v3044_v6 = vadd.f32 %v3043_v5, %v3031_v24  ;;  %v3285_v24 = vsel %vm3264_vm1, %v3282_v63, %v3283_v14 }
 0x1b4   : > { %v3286_v7 = vsel %vm3266_vm2, %v3284_v2, %v3285_v24 }
 0x1b8   : > { %v3032_v9 = vpop.f32.mrf.mxu2 }
 0x1b9   : > { %v3045_v10 = vpop.f32.mrf.mxu3 }
 0x1c8   : > { %v3056_v11 = vpop.f32.mrf.mxu0 }
 0x1c9   : > { %v3057_v18 = vadd.f32 %v3056_v11, %v3044_v6  ;;  %v3069_v12 = vpop.f32.mrf.mxu1 }
 0x1cb   : > { %v3070_v23 = vadd.f32 %v3069_v12, %v3057_v18 }
 0x1d0   : > { %v3082_v42 = vpop.f32.mrf.mxu2  ;;  %v3058_v28 = vpop.f32.mrf.mxu0 }
 0x1d1   : > { %v3083_v22 = vadd.f32 %v3082_v42, %v3070_v23  ;;  %v3095_v13 = vpop.f32.mrf.mxu3  ;;  %v3071_v30 = vpop.f32.mrf.mxu1 }
 0x1d3   : > { %v3096_v15 = vadd.f32 %v3095_v13, %v3083_v22 }
 0x1d5   : > { %v3260_v3 = vrot.slane %v3096_v15, 4 }
 0x1d8   : > { %v3084_v16 = vpop.f32.mrf.mxu2 }
 0x1d9   : > { %v3097_v17 = vpop.f32.mrf.mxu3 }
 0x1e8   : > { %v3108_v19 = vpop.f32.mrf.mxu0 }
 0x1e9   : > { %v3121_v20 = vpop.f32.mrf.mxu1 }
 0x1ea   : > { %v3122_v39 = vadd.f32 %v3121_v20, %v3108_v19 }
 0x1f0   : > { %v3134_v21 = vpop.f32.mrf.mxu2  ;;  %v3110_v29 = vpop.f32.mrf.mxu0 }
 0x1f1   : > { %v3147_v25 = vpop.f32.mrf.mxu3  ;;  %v3123_v31 = vpop.f32.mrf.mxu1  ;;  %v3135_v46 = vadd.f32 %v3134_v21, %v3122_v39 }
 0x1f3   : > { %v3148_v49 = vadd.f32 %v3147_v25, %v3135_v46 }
 0x1f8   : > { %v3136_v34 = vpop.f32.mrf.mxu2 }
 0x1f9   : > { %v3149_v35 = vpop.f32.mrf.mxu3 }
 0x208   : > { %v3160_v36 = vpop.f32.mrf.mxu0 }
 0x209   : > { %v3173_v38 = vpop.f32.mrf.mxu1  ;;  %v3161_v52 = vadd.f32 %v3160_v36, %v3148_v49 }
 0x20b   : > { %v3174_v53 = vadd.f32 %v3173_v38, %v3161_v52 }
 0x210   : > { %v3186_v44 = vpop.f32.mrf.mxu2  ;;  %v3162_v47 = vpop.f32.mrf.mxu0 }
 0x211   : > { %v3199_v45 = vpop.f32.mrf.mxu3  ;;  %v3175_v48 = vpop.f32.mrf.mxu1  ;;  %v3187_v54 = vadd.f32 %v3186_v44, %v3174_v53 }
 0x213   : > { %v3200_v56 = vadd.f32 %v3199_v45, %v3187_v54 }
 0x218   : > { %v3188_v50 = vpop.f32.mrf.mxu2 }
 0x219   : > { %v3201_v51 = vpop.f32.mrf.mxu3 }
 0x228   : > { %v3212_v37 = vpop.f32.mrf.mxu0 }
 0x229   : > { %v3225_v57 = vpop.f32.mrf.mxu1  ;;  %v3213_v58 = vadd.f32 %v3212_v37, %v3200_v56 }
 0x22b   : > { %v3226_v26 = vadd.f32 %v3225_v57, %v3213_v58 }
 0x230   : > { %v3238_v62 = vpop.f32.mrf.mxu2  ;;  %v3214_v0 = vpop.f32.mrf.mxu0 }
 0x231   : > { %v3239_v32 = vadd.f32 %v3238_v62, %v3226_v26  ;;  %v3251_v43 = vpop.f32.mrf.mxu3  ;;  %v3227_v1 = vpop.f32.mrf.mxu1 }
 0x233   : > { %v3252_v33 = vadd.f32 %v3251_v43, %v3239_v32 }
 0x235   : > { %v3261_v4 = vrot.slane %v3252_v33, 2 }
 0x237   : > { %v3265_v5 = vsel %vm3264_vm1, %v3260_v3, %v3261_v4 }
 0x238   : > { %v3267_v6 = vsel %vm3266_vm2, %v6420_v27, %v3265_v5  ;;  %v3240_v8 = vpop.f32.mrf.mxu2 }
 0x239   : > { %v3253_v9 = vpop.f32.mrf.mxu3  ;;  %v3288_v10 = vadd.f32 %v3286_v7, %v3267_v6 }
 0x23b   : > { %vm3289_vm3 = vcmp.ge.f32.partialorder %v3288_v10, 0.0  ;;  %v3290_v11 = vmul.f32 0.2, %v3288_v10 }
 0x23d   : > { %v3291_v18 = vsel %vm3289_vm3, %v3288_v10, %v3290_v11 }
 0x23e   : > { %3292 = vst [vmem:[%s273_s25] sm:$0xff] %v3291_v18 }
 0x23f PF: > { %s19_s17 = sadd.s32 1, %s5526_s17   ;;  %s6531_s12 = smov %s5510_s13 }
 0x240   : > { %p16_p0 = scmp.ge.s32.totalorder %s19_s17, 4   ;;  %s6532_s13 = smov %s5514_s14 }
 0x241   : > { %s6533_s14 = smov %s5596_s23  ;;  %s6534_s15 = smov %s5522_s16 }
 0x242   : > { %s6535_s16 = smov %s6537_s19  ;;  %18 = sbr.rel (!%p16_p0) target bundleno = 6 (0x6), region = 97 }
 0x247   :  { %3315 = vsyncpa [#allocation3], 1 }
 0x248   :  { %3317 = vsyncpa [#allocation3 + $0x1], 1 }
 0x249   :  { %3318 = vsyncpa [#allocation5], 1 }
 0x24a   :  { %3320 = vsyncpa [#allocation5 + $0x1], 1 }

</bundles_post_ra>
